<compile_context>
chip_gen: v6e
topology: v6e:2x2x1
jax: 0.10.0
libtpu: 0.0.40
codegen_flags: <defaults>
</compile_context>

<pallas_src>
import math
from functools import partial

import jax
import jax.numpy as jnp
from jax import lax
from jax.experimental import pallas as pl
from jax.experimental.pallas import tpu as pltpu


def _round_up(x, m):
    return ((x + m - 1) // m) * m


def _cdiv(a, b):
    return -(-a // b)


# ----------------------------------------------------------------------------
# Tile pickers: full-extent blocks for small dims, exact divisors otherwise,
# so activations are never padded/copied on the wrapper side.
# ----------------------------------------------------------------------------
def _pick_m_tile(M, cap=512):
    if M <= cap:
        # Split in two when comfortably large so the parallel m-grid has >= 2
        # tiles (keeps both v7x TensorCores busy on mid-size layers).
        if M >= 256 and M % 16 == 0:
            return M // 2
        return M
    for t in range(cap, 7, -8):
        if M % t == 0:
            return t
    return M


def _pick_n_tile(N, cap=1024):
    if N <= cap:
        return N
    for t in range(1024, 127, -128):
        if N % t == 0:
            return t
    return N


_VMEM_LIMIT = 48 * 1024 * 1024   # safe on v7x (64 MiB physical), ample headroom


# ----------------------------------------------------------------------------
# Pallas kernel 1: single-shot fused matmul   O = [relu]( (A @ B) * ns + nb )
# K and N are small enough everywhere this is used that no K/N pipelining is
# needed: one MXU dot per output tile, epilogue affine(+ReLU) fused.
# Used for: conv0 im2col GEMM (epilogue = norm0+relu0), the kn2row tap GEMM of
# every 3x3 conv, and the classifier (epilogue = bias add).
# ----------------------------------------------------------------------------
def _matmul2d_kernel(a_ref, b_ref, ns_ref, nb_ref, o_ref, *, post_relu):
    y = jnp.dot(a_ref[...], b_ref[...], preferred_element_type=jnp.float32)
    y = y * ns_ref[...] + nb_ref[...]
    if post_relu:
        y = jnp.maximum(y, 0.0)
    o_ref[...] = y.astype(o_ref.dtype)


def matmul2d(a, b, *, n_scale=None, n_shift=None, post_relu=False,
             out_dtype=jnp.bfloat16):
    M, K = a.shape
    K2, N = b.shape
    assert K == K2
    tm = _pick_m_tile(M)
    tn = _pick_n_tile(N)
    ns = jnp.ones((N,), jnp.float32) if n_scale is None else n_scale
    nb = jnp.zeros((N,), jnp.float32) if n_shift is None else n_shift
    ns = ns.astype(jnp.float32).reshape(1, N)
    nb = nb.astype(jnp.float32).reshape(1, N)
    return pl.pallas_call(
        partial(_matmul2d_kernel, post_relu=post_relu),
        out_shape=jax.ShapeDtypeStruct((M, N), out_dtype),
        grid=(M // tm, N // tn),
        in_specs=[
            pl.BlockSpec((tm, K), lambda i, j: (i, 0)),
            pl.BlockSpec((K, tn), lambda i, j: (0, j)),
            pl.BlockSpec((1, tn), lambda i, j: (0, j)),
            pl.BlockSpec((1, tn), lambda i, j: (0, j)),
        ],
        out_specs=pl.BlockSpec((tm, tn), lambda i, j: (i, j)),
        compiler_params=pltpu.CompilerParams(
            dimension_semantics=("parallel", "parallel"),
            vmem_limit_bytes=_VMEM_LIMIT),
    )(a.astype(jnp.bfloat16), b.astype(jnp.bfloat16), ns, nb)


# ----------------------------------------------------------------------------
# Pallas kernel 2: chunked-K fused matmul over the dense-block feature stack.
# A is the chunk stack F[n_chunks, M, G]; the K reduction runs over chunk
# groups as the (arbitrary, last) grid axis -> the dense-block channel concat
# is never materialised in HBM.  Prologue: per-chunk BN+ReLU (norm1/relu1 or
# the transition norm/relu).  Epilogue: affine(+ReLU) (norm2/relu2).
# ----------------------------------------------------------------------------
def _chunked_matmul_kernel(a_ref, b_ref, ks_ref, kb_ref, ns_ref, nb_ref,
                           o_ref, acc_ref, *, g, post_relu):
    c = pl.program_id(1)

    part = None
    for q in range(g):                      # static unroll over chunks in group
        a = a_ref[q].astype(jnp.float32)
        a = jnp.maximum(a * ks_ref[q] + kb_ref[q], 0.0).astype(jnp.bfloat16)
        d = jnp.dot(a, b_ref[q], preferred_element_type=jnp.float32)
        part = d if part is None else part + d

    @pl.when(c == 0)
    def _():
        acc_ref[...] = part

    @pl.when(c > 0)
    def _():
        acc_ref[...] += part

    @pl.when(c == pl.num_programs(1) - 1)
    def _():
        y = acc_ref[...] * ns_ref[...] + nb_ref[...]
        if post_relu:
            y = jnp.maximum(y, 0.0)
        o_ref[...] = y.astype(o_ref.dtype)


def chunked_matmul(F, w, ks, kb, *, g, n_groups, n_scale=None, n_shift=None,
                   post_relu=False, out_dtype=jnp.bfloat16):
    n_alloc, M, G = F.shape
    n_read, G2, N = w.shape
    assert G == G2 and n_read == g * n_groups and n_read <= n_alloc
    tm = _pick_m_tile(M)
    ns = jnp.ones((N,), jnp.float32) if n_scale is None else n_scale
    nb = jnp.zeros((N,), jnp.float32) if n_shift is None else n_shift
    ns = ns.astype(jnp.float32).reshape(1, N)
    nb = nb.astype(jnp.float32).reshape(1, N)
    return pl.pallas_call(
        partial(_chunked_matmul_kernel, g=g, post_relu=post_relu),
        out_shape=jax.ShapeDtypeStruct((M, N), out_dtype),
        grid=(M // tm, n_groups),
        in_specs=[
            pl.BlockSpec((g, tm, G), lambda i, c: (c, i, 0)),
            pl.BlockSpec((g, G, N), lambda i, c: (c, 0, 0)),
            pl.BlockSpec((g, 1, G), lambda i, c: (c, 0, 0)),
            pl.BlockSpec((g, 1, G), lambda i, c: (c, 0, 0)),
            pl.BlockSpec((1, N), lambda i, c: (0, 0)),
            pl.BlockSpec((1, N), lambda i, c: (0, 0)),
        ],
        out_specs=pl.BlockSpec((tm, N), lambda i, c: (i, 0)),
        scratch_shapes=[pltpu.VMEM((tm, N), jnp.float32)],
        compiler_params=pltpu.CompilerParams(
            dimension_semantics=("parallel", "arbitrary"),
            vmem_limit_bytes=_VMEM_LIMIT),
    )(F, w, ks, kb, ns, nb)


# ----------------------------------------------------------------------------
# Pallas kernel 3: fused norm5 + ReLU + global average pool over the chunked
# feature stack (emits only the pooled result; the full f32 feature map is
# never written back to HBM).
# ----------------------------------------------------------------------------
def _bn_relu_gap_kernel(x_ref, s_ref, b_ref, o_ref, *, inv_hw):
    x = x_ref[0, 0].astype(jnp.float32)                       # (HW, G)
    y = jnp.maximum(x * s_ref[0] + b_ref[0], 0.0)
    o_ref[...] = (jnp.sum(y, axis=0, keepdims=True) * inv_hw)[None, None]


def bn_relu_gap(F, scale_c, shift_c, nb_images, hw):
    """F: [n_chunks, nb_images*hw, G]; returns pooled [nb_images, n_chunks*G]."""
    n_alloc, M, G = F.shape
    assert M == nb_images * hw
    F4 = F.reshape(n_alloc, nb_images, hw, G)
    out = pl.pallas_call(
        partial(_bn_relu_gap_kernel, inv_hw=1.0 / hw),
        out_shape=jax.ShapeDtypeStruct((n_alloc, nb_images, 1, G), jnp.float32),
        grid=(n_alloc, nb_images),
        in_specs=[
            pl.BlockSpec((1, 1, hw, G), lambda c, b: (c, b, 0, 0)),
            pl.BlockSpec((1, 1, G), lambda c, b: (c, 0, 0)),
            pl.BlockSpec((1, 1, G), lambda c, b: (c, 0, 0)),
        ],
        out_specs=pl.BlockSpec((1, 1, 1, G), lambda c, b: (c, b, 0, 0)),
        compiler_params=pltpu.CompilerParams(
            dimension_semantics=("parallel", "parallel")),
    )(F4, scale_c, shift_c)
    return out.reshape(n_alloc, nb_images, G).transpose(1, 0, 2).reshape(
        nb_images, n_alloc * G)


# ----------------------------------------------------------------------------
# Convolution wrappers
# ----------------------------------------------------------------------------
def _im2col(x, kh, kw, stride, pad, dilation):
    """x: [N,H,W,C] -> cols [N*oh*ow, kh*kw*C], feature order (kh, kw, C).
    Only used for conv0 (3 input channels).
    TODO(synk): the stride-2 7x7 conv0 still materialises a 49x (on 3 channels)
    im2col blob; a true implicit GEMM needs Element-indexed tap offsets."""
    N, H, W, C = x.shape
    x_p = jnp.pad(x, ((0, 0), (pad, pad), (pad, pad), (0, 0)))
    Hp, Wp = H + 2 * pad, W + 2 * pad
    oh = (Hp - dilation * (kh - 1) - 1) // stride + 1
    ow = (Wp - dilation * (kw - 1) - 1) // stride + 1
    patches = []
    for i in range(kh):
        for j in range(kw):
            sl = x_p[:,
                     i * dilation: i * dilation + stride * (oh - 1) + 1: stride,
                     j * dilation: j * dilation + stride * (ow - 1) + 1: stride,
                     :]
            patches.append(sl)
    cols = jnp.stack(patches, axis=3)              # [N, oh, ow, kh*kw, C]
    return cols.reshape(N * oh * ow, kh * kw * C), oh, ow


def conv3x3_kn2row(h2d, w_kn, nb_images, H, W, G, dilation=1):
    """SAME 3x3 conv (stride 1, pad == dilation) with NO im2col: one aligned
    Pallas GEMM produces all 9 tap partial products, then a shift-and-add
    (kn2row) that XLA fuses into a single pass over the partial products."""
    P = matmul2d(h2d, w_kn)                        # [M, 9*G] bf16
    P = P.reshape(nb_images, H, W, 9, G)
    d = dilation
    Pp = jnp.pad(P, ((0, 0), (d, d), (d, d), (0, 0), (0, 0)))
    out = jnp.zeros((nb_images, H, W, G), jnp.float32)
    for ti in range(3):
        for tj in range(3):
            t = ti * 3 + tj
            out = out + Pp[:, ti * d:ti * d + H,
                           tj * d:tj * d + W, t, :].astype(jnp.float32)
    return out.astype(jnp.bfloat16).reshape(nb_images * H * W, G)


def maxpool_3x3_s2_p1(x):
    # TODO(synk): pooling windows stay in lax.reduce_window (glue), not Pallas.
    neg = jnp.array(-jnp.inf, dtype=x.dtype)
    return lax.reduce_window(x, neg, lax.max, (1, 3, 3, 1), (1, 2, 2, 1),
                             [(0, 0), (1, 1), (1, 1), (0, 0)])


def avgpool_2x2_s2(x):
    zero = jnp.array(0, dtype=x.dtype)
    s = lax.reduce_window(x, zero, lax.add, (1, 2, 2, 1), (1, 2, 2, 1),
                          [(0, 0), (0, 0), (0, 0), (0, 0)])
    return s * 0.25


# ----------------------------------------------------------------------------
# Dense-block chunk layout (static): features live as a stack of growth-wide
# chunks F[n_chunks, N*H*W, G]; the block input occupies the first n0 chunks
# (zero-padded up to a multiple of G), each dense layer appends one chunk.
# All consumers read the stack directly -> the O(L^2) concat is never built.
# ----------------------------------------------------------------------------
def _block_layout(C0, L, G):
    n0 = _cdiv(C0, G)
    pad0 = n0 * G - C0
    n_total = n0 + L
    g_base = max(1, 128 // G)              # chunks per grid step (~128-wide K)
    n_alloc = _round_up(n_total, g_base)
    layers = []
    for li in range(L):
        n_live = n0 + li
        g = min(g_base, n_live)
        layers.append((g, _cdiv(n_live, g)))
    g_t = min(g_base, n_total)
    return dict(n0=n0, pad0=pad0, n_total=n_total, n_alloc=n_alloc,
                layers=layers, g_t=g_t, ng_t=_cdiv(n_total, g_t))


def _chunk_pad_vec(v, C0, pad0, total):
    parts = [v[:C0]]
    if pad0:
        parts.append(jnp.zeros((pad0,), v.dtype))
    if v.shape[0] > C0:
        parts.append(v[C0:])
    cur = v.shape[0] + pad0
    if total > cur:
        parts.append(jnp.zeros((total - cur,), v.dtype))
    return jnp.concatenate(parts, axis=0)


def _chunk_pad_rows(m, C0, pad0, total):
    cols = m.shape[1]
    parts = [m[:C0]]
    if pad0:
        parts.append(jnp.zeros((pad0, cols), m.dtype))
    if m.shape[0] > C0:
        parts.append(m[C0:])
    cur = m.shape[0] + pad0
    if total > cur:
        parts.append(jnp.zeros((total - cur, cols), m.dtype))
    return jnp.concatenate(parts, axis=0)


# ----------------------------------------------------------------------------
# Parameter init (deterministic, mirrors module __init__; pre-packed/padded)
# ----------------------------------------------------------------------------
def _kaiming_conv(key, cout, cin, kh, kw):
    std = math.sqrt(2.0 / (cin * kh * kw))
    return std * jax.random.normal(key, (cout, cin, kh, kw), jnp.float32)


def _bn_scale_shift(c, eps=1e-5):
    # gamma=1, beta=0 (module init); running_mean=0, running_var=1 (defaults)
    gamma = jnp.ones((c,), jnp.float32)
    beta = jnp.zeros((c,), jnp.float32)
    mean = jnp.zeros((c,), jnp.float32)
    var = jnp.ones((c,), jnp.float32)
    scale = gamma / jnp.sqrt(var + eps)
    shift = beta - mean * scale
    return scale, shift


def init_densenet(key, *, growth_rate, block_config, num_init_features,
                  bn_size, num_classes):
    G = growth_rate
    keys = iter(jax.random.split(key, 1024))
    params = {}

    w0 = _kaiming_conv(next(keys), num_init_features, 3, 7, 7)
    params["conv0"] = (jnp.transpose(w0, (2, 3, 1, 0))
                       .reshape(7 * 7 * 3, num_init_features)
                       .astype(jnp.bfloat16))
    params["bn0"] = _bn_scale_shift(num_init_features)

    C0 = num_init_features
    blocks, transitions = [], []
    n_blocks = len(block_config)
    Cmid = bn_size * G
    for bi, L in enumerate(block_config):
        lay = _block_layout(C0, L, G)
        layer_params = []
        for li in range(L):
            Cin = C0 + li * G
            g, ng = lay["layers"][li]
            n_read = g * ng
            s1, b1 = _bn_scale_shift(Cin)
            w1 = _kaiming_conv(next(keys), Cmid, Cin, 1, 1)[:, :, 0, 0].T
            s2, b2 = _bn_scale_shift(Cmid)
            w2 = _kaiming_conv(next(keys), G, Cmid, 3, 3)
            layer_params.append({
                "bn1_s": _chunk_pad_vec(s1, C0, lay["pad0"],
                                        n_read * G).reshape(n_read, 1, G),
                "bn1_b": _chunk_pad_vec(b1, C0, lay["pad0"],
                                        n_read * G).reshape(n_read, 1, G),
                "w1": _chunk_pad_rows(w1, C0, lay["pad0"], n_read * G)
                      .reshape(n_read, G, Cmid).astype(jnp.bfloat16),
                "bn2_s": s2, "bn2_b": b2,
                # kn2row pack: [Cmid, (ti*3+tj)*G + cout]
                "w2": jnp.transpose(w2, (1, 2, 3, 0))
                      .reshape(Cmid, 9 * G).astype(jnp.bfloat16),
            })
        blocks.append(layer_params)
        C_total = C0 + L * G
        if bi != n_blocks - 1:
            n_read_t = lay["g_t"] * lay["ng_t"]
            st, bt = _bn_scale_shift(C_total)
            C_next = C_total // 2
            wt = _kaiming_conv(next(keys), C_next, C_total, 1, 1)[:, :, 0, 0].T
            transitions.append({
                "bn_s": _chunk_pad_vec(st, C0, lay["pad0"],
                                       n_read_t * G).reshape(n_read_t, 1, G),
                "bn_b": _chunk_pad_vec(bt, C0, lay["pad0"],
                                       n_read_t * G).reshape(n_read_t, 1, G),
                "w": _chunk_pad_rows(wt, C0, lay["pad0"], n_read_t * G)
                     .reshape(n_read_t, G, C_next).astype(jnp.bfloat16),
            })
            C0 = C_next
        else:
            s5, b5 = _bn_scale_shift(C_total)
            na = lay["n_alloc"]
            params["bn5_s"] = _chunk_pad_vec(s5, C0, lay["pad0"],
                                             na * G).reshape(na, 1, G)
            params["bn5_b"] = _chunk_pad_vec(b5, C0, lay["pad0"],
                                             na * G).reshape(na, 1, G)
            wl = 0.05 * jax.random.normal(next(keys), (num_classes, C_total),
                                          jnp.float32)
            params["classifier_w"] = (_chunk_pad_rows(wl.T, C0, lay["pad0"],
                                                      na * G)
                                      .astype(jnp.bfloat16))
            params["classifier_b"] = jnp.zeros((num_classes,), jnp.float32)

    params["blocks"] = blocks
    params["transitions"] = transitions
    return params


# ----------------------------------------------------------------------------
# Forward (matches DenseNet.forward / nn.Sequential feature stack)
# ----------------------------------------------------------------------------
def densenet_forward(params, x_nchw, *, cfg):
    G = cfg["growth_rate"]
    bc = cfg["block_config"]
    x = jnp.transpose(x_nchw, (0, 2, 3, 1)).astype(jnp.bfloat16)   # NCHW->NHWC
    nb_im = x.shape[0]

    # conv0 7x7 s2 p3 with fused norm0+relu0 epilogue, then pool0
    a, oh, ow = _im2col(x, 7, 7, 2, 3, 1)
    s0, b0 = params["bn0"]
    y = matmul2d(a, params["conv0"], n_scale=s0, n_shift=b0, post_relu=True)
    x = y.reshape(nb_im, oh, ow, -1)
    x = maxpool_3x3_s2_p1(x)

    C0 = cfg["num_init_features"]
    n_blocks = len(bc)
    pooled = None
    for bi, L in enumerate(bc):
        lay = _block_layout(C0, L, G)
        Nb, H, W, _ = x.shape
        M = Nb * H * W
        # chunk stack for this dense block (seeded with the block input)
        F = jnp.zeros((lay["n_alloc"], M, G), jnp.bfloat16)
        x2 = x.reshape(M, C0)
        if lay["pad0"]:
            x2 = jnp.pad(x2, ((0, 0), (0, lay["pad0"])))
        F = F.at[0:lay["n0"]].set(
            jnp.transpose(x2.reshape(M, lay["n0"], G), (1, 0, 2)))

        for li in range(L):
            lp = params["blocks"][bi][li]
            g, ng = lay["layers"][li]
            # conv1 (1x1): chunked-K GEMM over the live prefix of F
            #   prologue = norm1+relu1 (per chunk), epilogue = norm2+relu2
            h1 = chunked_matmul(F, lp["w1"], lp["bn1_s"], lp["bn1_b"],
                                g=g, n_groups=ng,
                                n_scale=lp["bn2_s"], n_shift=lp["bn2_b"],
                                post_relu=True)
            # conv2 (3x3): kn2row implicit GEMM (no im2col)
            h = conv3x3_kn2row(h1, lp["w2"], Nb, H, W, G)
            F = F.at[lay["n0"] + li].set(h)
            # drop_rate == 0 -> dropout is a no-op

        C_total = C0 + L * G
        if bi != n_blocks - 1:
            tp = params["transitions"][bi]
            # TODO(synk): transition is still conv-then-pool; the linear
            # pool-before-conv reordering (4x fewer GEMM rows) is not applied.
            y = chunked_matmul(F, tp["w"], tp["bn_s"], tp["bn_b"],
                               g=lay["g_t"], n_groups=lay["ng_t"])
            C0 = C_total // 2
            x = avgpool_2x2_s2(y.reshape(Nb, H, W, C0))
        else:
            # features.norm5 + forward's F.relu + adaptive_avg_pool2d((1,1))
            pooled = bn_relu_gap(F, params["bn5_s"], params["bn5_b"],
                                 Nb, H * W)

    # classifier Linear with fused bias epilogue
    out = matmul2d(pooled.astype(jnp.bfloat16), params["classifier_w"],
                   n_shift=params["classifier_b"], out_dtype=jnp.float32)
    return out


# ----------------------------------------------------------------------------
if __name__ == "__main__":
    # Small config consistent with the module's constructor arguments.
    growth_rate = 8
    block_config = (2, 2)
    num_init_features = 16
    bn_size = 2
    num_classes = 10

    cfg = dict(growth_rate=growth_rate, block_config=block_config,
               num_init_features=num_init_features, bn_size=bn_size,
               num_classes=num_classes)

    key = jax.random.PRNGKey(0)
    pkey, xkey = jax.random.split(key)
    params = init_densenet(pkey, **cfg)

    x = jax.random.normal(xkey, (2, 3, 32, 32), jnp.float32)   # NCHW, as PyTorch

    fwd = jax.jit(partial(densenet_forward, cfg=cfg))
    out = jax.block_until_ready(fwd(params, x))

    assert out.shape == (2, num_classes), out.shape
    assert bool(jnp.all(jnp.isfinite(out)))
    print("KERNEL_OK")
</pallas_src>

<mosaic_0001>
module attributes {stable_mosaic.version = 11 : i64} {
  func.func @_matmul2d_kernel(%arg0: i32, %arg1: i32, %arg2: memref<256x147xbf16, #tpu.memory_space<vmem>>, %arg3: memref<147x16xbf16, #tpu.memory_space<vmem>>, %arg4: memref<1x16xf32, #tpu.memory_space<vmem>>, %arg5: memref<1x16xf32, #tpu.memory_space<vmem>>, %arg6: memref<256x16xbf16, #tpu.memory_space<vmem>>) attributes {dimension_semantics = [#tpu.dimension_semantics<parallel>, #tpu.dimension_semantics<parallel>], iteration_bounds = array<i64: 2, 1>, scalar_prefetch = 0 : i64, scratch_operands = 0 : i64, tpu.core_type = #tpu.core_type<tc>, window_params = [{transform_indices = @transform_0, window_bounds = array<i64: 256, 147>}, {transform_indices = @transform_1, window_bounds = array<i64: 147, 16>}, {transform_indices = @transform_2, window_bounds = array<i64: 1, 16>}, {transform_indices = @transform_3, window_bounds = array<i64: 1, 16>}, {transform_indices = @transform_4, window_bounds = array<i64: 256, 16>}]} {
    %c0 = arith.constant 0 : index
    %c0_0 = arith.constant 0 : index
    %0 = vector.load %arg2[%c0, %c0_0] : memref<256x147xbf16, #tpu.memory_space<vmem>>, vector<256x147xbf16>
    %c0_1 = arith.constant 0 : index
    %c0_2 = arith.constant 0 : index
    %1 = vector.load %arg3[%c0_1, %c0_2] : memref<147x16xbf16, #tpu.memory_space<vmem>>, vector<147x16xbf16>
    %cst = arith.constant dense<0.000000e+00> : vector<256x16xf32>
    %2 = tpu.matmul %0, %1, %cst {dimension_numbers = #tpu.dot_dimension_numbers<[1], [0], [0], [1], [0, 0, 1, 1], [], []>} : vector<256x147xbf16>, vector<147x16xbf16>, vector<256x16xf32> -> vector<256x16xf32>
    %c0_3 = arith.constant 0 : index
    %c0_4 = arith.constant 0 : index
    %3 = vector.load %arg4[%c0_3, %c0_4] : memref<1x16xf32, #tpu.memory_space<vmem>>, vector<1x16xf32>
    %4 = vector.broadcast %3 : vector<1x16xf32> to vector<256x16xf32>
    %5 = arith.mulf %2, %4 : vector<256x16xf32>
    %c0_5 = arith.constant 0 : index
    %c0_6 = arith.constant 0 : index
    %6 = vector.load %arg5[%c0_5, %c0_6] : memref<1x16xf32, #tpu.memory_space<vmem>>, vector<1x16xf32>
    %7 = vector.broadcast %6 : vector<1x16xf32> to vector<256x16xf32>
    %8 = arith.addf %5, %7 : vector<256x16xf32>
    %cst_7 = arith.constant 0.000000e+00 : f32
    %9 = vector.broadcast %cst_7 : f32 to vector<256x16xf32>
    %10 = arith.maximumf %8, %9 : vector<256x16xf32>
    %11 = arith.truncf %10 : vector<256x16xf32> to vector<256x16xbf16>
    %c0_8 = arith.constant 0 : index
    %c0_9 = arith.constant 0 : index
    %12 = vector.load %arg6[%c0_8, %c0_9] : memref<256x16xbf16, #tpu.memory_space<vmem>>, vector<256x16xbf16>
    tpu.vector_store %arg6[%c0_8, %c0_9], %11 {strides = array<i32>} : memref<256x16xbf16, #tpu.memory_space<vmem>>, vector<256x16xbf16>,
    return
  }
  func.func @transform_0(%arg0: i32, %arg1: i32) -> (i32, i32) {
    %c0_i32 = arith.constant 0 : i32
    %c0_i32_0 = arith.constant 0 : i32
    return %arg0, %c0_i32 : i32, i32
  }
  func.func @transform_1(%arg0: i32, %arg1: i32) -> (i32, i32) {
    %c0_i32 = arith.constant 0 : i32
    %c0_i32_0 = arith.constant 0 : i32
    return %c0_i32, %arg1 : i32, i32
  }
  func.func @transform_2(%arg0: i32, %arg1: i32) -> (i32, i32) {
    %c0_i32 = arith.constant 0 : i32
    %c0_i32_0 = arith.constant 0 : i32
    return %c0_i32, %arg1 : i32, i32
  }
  func.func @transform_3(%arg0: i32, %arg1: i32) -> (i32, i32) {
    %c0_i32 = arith.constant 0 : i32
    %c0_i32_0 = arith.constant 0 : i32
    return %c0_i32, %arg1 : i32, i32
  }
  func.func @transform_4(%arg0: i32, %arg1: i32) -> (i32, i32) {
    %c0_i32 = arith.constant 0 : i32
    return %arg0, %arg1 : i32, i32
  }
}

module attributes {stable_mosaic.version = 11 : i64} {
  func.func @_chunked_matmul_kernel(%arg0: i32, %arg1: i32, %arg2: memref<2x128x8xbf16, #tpu.memory_space<vmem>>, %arg3: memref<2x8x16xbf16, #tpu.memory_space<vmem>>, %arg4: memref<2x1x8xf32, #tpu.memory_space<vmem>>, %arg5: memref<2x1x8xf32, #tpu.memory_space<vmem>>, %arg6: memref<1x16xf32, #tpu.memory_space<vmem>>, %arg7: memref<1x16xf32, #tpu.memory_space<vmem>>, %arg8: memref<128x16xbf16, #tpu.memory_space<vmem>>, %arg9: memref<128x16xf32, #tpu.memory_space<vmem>>) attributes {dimension_semantics = [#tpu.dimension_semantics<parallel>, #tpu.dimension_semantics<arbitrary>], iteration_bounds = array<i64: 1, 1>, scalar_prefetch = 0 : i64, scratch_operands = 1 : i64, tpu.core_type = #tpu.core_type<tc>, window_params = [{transform_indices = @transform_0, window_bounds = array<i64: 2, 128, 8>}, {transform_indices = @transform_1, window_bounds = array<i64: 2, 8, 16>}, {transform_indices = @transform_2, window_bounds = array<i64: 2, 1, 8>}, {transform_indices = @transform_3, window_bounds = array<i64: 2, 1, 8>}, {pipeline_mode = #tpu.pipeline_mode<synchronous>, transform_indices = @transform_4, window_bounds = array<i64: 1, 16>}, {pipeline_mode = #tpu.pipeline_mode<synchronous>, transform_indices = @transform_5, window_bounds = array<i64: 1, 16>}, {transform_indices = @transform_6, window_bounds = array<i64: 128, 16>}]} {
    %c0 = arith.constant 0 : index
    %c0_0 = arith.constant 0 : index
    %c0_1 = arith.constant 0 : index
    %0 = vector.load %arg2[%c0, %c0_0, %c0_1] : memref<2x128x8xbf16, #tpu.memory_space<vmem>>, vector<1x128x8xbf16>
    %1 = vector.shape_cast %0 : vector<1x128x8xbf16> to vector<128x8xbf16>
    %2 = arith.extf %1 : vector<128x8xbf16> to vector<128x8xf32>
    %c0_2 = arith.constant 0 : index
    %c0_3 = arith.constant 0 : index
    %c0_4 = arith.constant 0 : index
    %3 = vector.load %arg4[%c0_2, %c0_3, %c0_4] : memref<2x1x8xf32, #tpu.memory_space<vmem>>, vector<1x1x8xf32>
    %4 = vector.shape_cast %3 : vector<1x1x8xf32> to vector<1x8xf32>
    %5 = vector.broadcast %4 : vector<1x8xf32> to vector<128x8xf32>
    %6 = arith.mulf %2, %5 : vector<128x8xf32>
    %c0_5 = arith.constant 0 : index
    %c0_6 = arith.constant 0 : index
    %c0_7 = arith.constant 0 : index
    %7 = vector.load %arg5[%c0_5, %c0_6, %c0_7] : memref<2x1x8xf32, #tpu.memory_space<vmem>>, vector<1x1x8xf32>
    %8 = vector.shape_cast %7 : vector<1x1x8xf32> to vector<1x8xf32>
    %9 = vector.broadcast %8 : vector<1x8xf32> to vector<128x8xf32>
    %10 = arith.addf %6, %9 : vector<128x8xf32>
    %cst = arith.constant 0.000000e+00 : f32
    %11 = vector.broadcast %cst : f32 to vector<128x8xf32>
    %12 = arith.maximumf %10, %11 : vector<128x8xf32>
    %13 = arith.truncf %12 : vector<128x8xf32> to vector<128x8xbf16>
    %c0_8 = arith.constant 0 : index
    %c0_9 = arith.constant 0 : index
    %c0_10 = arith.constant 0 : index
    %14 = vector.load %arg3[%c0_8, %c0_9, %c0_10] : memref<2x8x16xbf16, #tpu.memory_space<vmem>>, vector<1x8x16xbf16>
    %15 = vector.shape_cast %14 : vector<1x8x16xbf16> to vector<8x16xbf16>
    %cst_11 = arith.constant dense<0.000000e+00> : vector<128x16xf32>
    %16 = tpu.matmul %13, %15, %cst_11 {dimension_numbers = #tpu.dot_dimension_numbers<[1], [0], [0], [1], [0, 0, 1, 1], [], []>} : vector<128x8xbf16>, vector<8x16xbf16>, vector<128x16xf32> -> vector<128x16xf32>
    %c1 = arith.constant 1 : index
    %c0_12 = arith.constant 0 : index
    %c0_13 = arith.constant 0 : index
    %17 = vector.load %arg2[%c1, %c0_12, %c0_13] : memref<2x128x8xbf16, #tpu.memory_space<vmem>>, vector<1x128x8xbf16>
    %18 = vector.shape_cast %17 : vector<1x128x8xbf16> to vector<128x8xbf16>
    %19 = arith.extf %18 : vector<128x8xbf16> to vector<128x8xf32>
    %c1_14 = arith.constant 1 : index
    %c0_15 = arith.constant 0 : index
    %c0_16 = arith.constant 0 : index
    %20 = vector.load %arg4[%c1_14, %c0_15, %c0_16] : memref<2x1x8xf32, #tpu.memory_space<vmem>>, vector<1x1x8xf32>
    %21 = vector.shape_cast %20 : vector<1x1x8xf32> to vector<1x8xf32>
    %22 = vector.broadcast %21 : vector<1x8xf32> to vector<128x8xf32>
    %23 = arith.mulf %19, %22 : vector<128x8xf32>
    %c1_17 = arith.constant 1 : index
    %c0_18 = arith.constant 0 : index
    %c0_19 = arith.constant 0 : index
    %24 = vector.load %arg5[%c1_17, %c0_18, %c0_19] : memref<2x1x8xf32, #tpu.memory_space<vmem>>, vector<1x1x8xf32>
    %25 = vector.shape_cast %24 : vector<1x1x8xf32> to vector<1x8xf32>
    %26 = vector.broadcast %25 : vector<1x8xf32> to vector<128x8xf32>
    %27 = arith.addf %23, %26 : vector<128x8xf32>
    %cst_20 = arith.constant 0.000000e+00 : f32
    %28 = vector.broadcast %cst_20 : f32 to vector<128x8xf32>
    %29 = arith.maximumf %27, %28 : vector<128x8xf32>
    %30 = arith.truncf %29 : vector<128x8xf32> to vector<128x8xbf16>
    %c1_21 = arith.constant 1 : index
    %c0_22 = arith.constant 0 : index
    %c0_23 = arith.constant 0 : index
    %31 = vector.load %arg3[%c1_21, %c0_22, %c0_23] : memref<2x8x16xbf16, #tpu.memory_space<vmem>>, vector<1x8x16xbf16>
    %32 = vector.shape_cast %31 : vector<1x8x16xbf16> to vector<8x16xbf16>
    %cst_24 = arith.constant dense<0.000000e+00> : vector<128x16xf32>
    %33 = tpu.matmul %30, %32, %cst_24 {dimension_numbers = #tpu.dot_dimension_numbers<[1], [0], [0], [1], [0, 0, 1, 1], [], []>} : vector<128x8xbf16>, vector<8x16xbf16>, vector<128x16xf32> -> vector<128x16xf32>
    %34 = arith.addf %16, %33 : vector<128x16xf32>
    %c0_i32 = arith.constant 0 : i32
    %35 = arith.cmpi eq, %arg1, %c0_i32 : i32
    %36 = arith.extui %35 : i1 to i32
    %c0_i32_25 = arith.constant 0 : i32
    %37 = arith.cmpi ne, %36, %c0_i32_25 : i32
    scf.if %37 {
      %c0_30 = arith.constant 0 : index
      %c0_31 = arith.constant 0 : index
      %44 = vector.load %arg9[%c0_30, %c0_31] : memref<128x16xf32, #tpu.memory_space<vmem>>, vector<128x16xf32>
      tpu.vector_store %arg9[%c0_30, %c0_31], %34 {strides = array<i32>} : memref<128x16xf32, #tpu.memory_space<vmem>>, vector<128x16xf32>,
    } else {
    }
    %c0_i32_26 = arith.constant 0 : i32
    %38 = arith.cmpi sgt, %arg1, %c0_i32_26 : i32
    %39 = arith.extui %38 : i1 to i32
    %c0_i32_27 = arith.constant 0 : i32
    %40 = arith.cmpi ne, %39, %c0_i32_27 : i32
    scf.if %40 {
      %c0_30 = arith.constant 0 : index
      %c0_31 = arith.constant 0 : index
      %44 = vector.load %arg9[%c0_30, %c0_31] : memref<128x16xf32, #tpu.memory_space<vmem>>, vector<128x16xf32>
      %45 = arith.addf %44, %34 : vector<128x16xf32>
      %c0_32 = arith.constant 0 : index
      %c0_33 = arith.constant 0 : index
      %46 = vector.load %arg9[%c0_32, %c0_33] : memref<128x16xf32, #tpu.memory_space<vmem>>, vector<128x16xf32>
      tpu.vector_store %arg9[%c0_32, %c0_33], %45 {strides = array<i32>} : memref<128x16xf32, #tpu.memory_space<vmem>>, vector<128x16xf32>,
    } else {
    }
    %c0_i32_28 = arith.constant 0 : i32
    %41 = arith.cmpi eq, %arg1, %c0_i32_28 : i32
    %42 = arith.extui %41 : i1 to i32
    %c0_i32_29 = arith.constant 0 : i32
    %43 = arith.cmpi ne, %42, %c0_i32_29 : i32
    scf.if %43 {
      %c0_30 = arith.constant 0 : index
      %c0_31 = arith.constant 0 : index
      %44 = vector.load %arg9[%c0_30, %c0_31] : memref<128x16xf32, #tpu.memory_space<vmem>>, vector<128x16xf32>
      %c0_32 = arith.constant 0 : index
      %c0_33 = arith.constant 0 : index
      %45 = vector.load %arg6[%c0_32, %c0_33] : memref<1x16xf32, #tpu.memory_space<vmem>>, vector<1x16xf32>
      %46 = vector.broadcast %45 : vector<1x16xf32> to vector<128x16xf32>
      %47 = arith.mulf %44, %46 : vector<128x16xf32>
      %c0_34 = arith.constant 0 : index
      %c0_35 = arith.constant 0 : index
      %48 = vector.load %arg7[%c0_34, %c0_35] : memref<1x16xf32, #tpu.memory_space<vmem>>, vector<1x16xf32>
      %49 = vector.broadcast %48 : vector<1x16xf32> to vector<128x16xf32>
      %50 = arith.addf %47, %49 : vector<128x16xf32>
      %cst_36 = arith.constant 0.000000e+00 : f32
      %51 = vector.broadcast %cst_36 : f32 to vector<128x16xf32>
      %52 = arith.maximumf %50, %51 : vector<128x16xf32>
      %53 = arith.truncf %52 : vector<128x16xf32> to vector<128x16xbf16>
      %c0_37 = arith.constant 0 : index
      %c0_38 = arith.constant 0 : index
      %54 = vector.load %arg8[%c0_37, %c0_38] : memref<128x16xbf16, #tpu.memory_space<vmem>>, vector<128x16xbf16>
      tpu.vector_store %arg8[%c0_37, %c0_38], %53 {strides = array<i32>} : memref<128x16xbf16, #tpu.memory_space<vmem>>, vector<128x16xbf16>,
    } else {
    }
    return
  }
  func.func @transform_0(%arg0: i32, %arg1: i32) -> (i32, i32, i32) {
    %c0_i32 = arith.constant 0 : i32
    %c0_i32_0 = arith.constant 0 : i32
    return %arg1, %arg0, %c0_i32 : i32, i32, i32
  }
  func.func @transform_1(%arg0: i32, %arg1: i32) -> (i32, i32, i32) {
    %c0_i32 = arith.constant 0 : i32
    %c0_i32_0 = arith.constant 0 : i32
    %c0_i32_1 = arith.constant 0 : i32
    return %arg1, %c0_i32, %c0_i32_0 : i32, i32, i32
  }
  func.func @transform_2(%arg0: i32, %arg1: i32) -> (i32, i32, i32) {
    %c0_i32 = arith.constant 0 : i32
    %c0_i32_0 = arith.constant 0 : i32
    %c0_i32_1 = arith.constant 0 : i32
    return %arg1, %c0_i32, %c0_i32_0 : i32, i32, i32
  }
  func.func @transform_3(%arg0: i32, %arg1: i32) -> (i32, i32, i32) {
    %c0_i32 = arith.constant 0 : i32
    %c0_i32_0 = arith.constant 0 : i32
    %c0_i32_1 = arith.constant 0 : i32
    return %arg1, %c0_i32, %c0_i32_0 : i32, i32, i32
  }
  func.func @transform_4(%arg0: i32, %arg1: i32) -> (i32, i32) {
    %c0_i32 = arith.constant 0 : i32
    %c0_i32_0 = arith.constant 0 : i32
    %c0_i32_1 = arith.constant 0 : i32
    return %c0_i32, %c0_i32_0 : i32, i32
  }
  func.func @transform_5(%arg0: i32, %arg1: i32) -> (i32, i32) {
    %c0_i32 = arith.constant 0 : i32
    %c0_i32_0 = arith.constant 0 : i32
    %c0_i32_1 = arith.constant 0 : i32
    return %c0_i32, %c0_i32_0 : i32, i32
  }
  func.func @transform_6(%arg0: i32, %arg1: i32) -> (i32, i32) {
    %c0_i32 = arith.constant 0 : i32
    %c0_i32_0 = arith.constant 0 : i32
    return %arg0, %c0_i32 : i32, i32
  }
}

module attributes {stable_mosaic.version = 11 : i64} {
  func.func @_matmul2d_kernel(%arg0: i32, %arg1: i32, %arg2: memref<128x16xbf16, #tpu.memory_space<vmem>>, %arg3: memref<16x72xbf16, #tpu.memory_space<vmem>>, %arg4: memref<1x72xf32, #tpu.memory_space<vmem>>, %arg5: memref<1x72xf32, #tpu.memory_space<vmem>>, %arg6: memref<128x72xbf16, #tpu.memory_space<vmem>>) attributes {dimension_semantics = [#tpu.dimension_semantics<parallel>, #tpu.dimension_semantics<parallel>], iteration_bounds = array<i64: 1, 1>, scalar_prefetch = 0 : i64, scratch_operands = 0 : i64, tpu.core_type = #tpu.core_type<tc>, window_params = [{transform_indices = @transform_0, window_bounds = array<i64: 128, 16>}, {transform_indices = @transform_1, window_bounds = array<i64: 16, 72>}, {transform_indices = @transform_2, window_bounds = array<i64: 1, 72>}, {transform_indices = @transform_3, window_bounds = array<i64: 1, 72>}, {transform_indices = @transform_4, window_bounds = array<i64: 128, 72>}]} {
    %c0 = arith.constant 0 : index
    %c0_0 = arith.constant 0 : index
    %0 = vector.load %arg2[%c0, %c0_0] : memref<128x16xbf16, #tpu.memory_space<vmem>>, vector<128x16xbf16>
    %c0_1 = arith.constant 0 : index
    %c0_2 = arith.constant 0 : index
    %1 = vector.load %arg3[%c0_1, %c0_2] : memref<16x72xbf16, #tpu.memory_space<vmem>>, vector<16x72xbf16>
    %cst = arith.constant dense<0.000000e+00> : vector<128x72xf32>
    %2 = tpu.matmul %0, %1, %cst {dimension_numbers = #tpu.dot_dimension_numbers<[1], [0], [0], [1], [0, 0, 1, 1], [], []>} : vector<128x16xbf16>, vector<16x72xbf16>, vector<128x72xf32> -> vector<128x72xf32>
    %c0_3 = arith.constant 0 : index
    %c0_4 = arith.constant 0 : index
    %3 = vector.load %arg4[%c0_3, %c0_4] : memref<1x72xf32, #tpu.memory_space<vmem>>, vector<1x72xf32>
    %4 = vector.broadcast %3 : vector<1x72xf32> to vector<128x72xf32>
    %5 = arith.mulf %2, %4 : vector<128x72xf32>
    %c0_5 = arith.constant 0 : index
    %c0_6 = arith.constant 0 : index
    %6 = vector.load %arg5[%c0_5, %c0_6] : memref<1x72xf32, #tpu.memory_space<vmem>>, vector<1x72xf32>
    %7 = vector.broadcast %6 : vector<1x72xf32> to vector<128x72xf32>
    %8 = arith.addf %5, %7 : vector<128x72xf32>
    %9 = arith.truncf %8 : vector<128x72xf32> to vector<128x72xbf16>
    %c0_7 = arith.constant 0 : index
    %c0_8 = arith.constant 0 : index
    %10 = vector.load %arg6[%c0_7, %c0_8] : memref<128x72xbf16, #tpu.memory_space<vmem>>, vector<128x72xbf16>
    tpu.vector_store %arg6[%c0_7, %c0_8], %9 {strides = array<i32>} : memref<128x72xbf16, #tpu.memory_space<vmem>>, vector<128x72xbf16>,
    return
  }
  func.func @transform_0(%arg0: i32, %arg1: i32) -> (i32, i32) {
    %c0_i32 = arith.constant 0 : i32
    %c0_i32_0 = arith.constant 0 : i32
    return %arg0, %c0_i32 : i32, i32
  }
  func.func @transform_1(%arg0: i32, %arg1: i32) -> (i32, i32) {
    %c0_i32 = arith.constant 0 : i32
    %c0_i32_0 = arith.constant 0 : i32
    return %c0_i32, %arg1 : i32, i32
  }
  func.func @transform_2(%arg0: i32, %arg1: i32) -> (i32, i32) {
    %c0_i32 = arith.constant 0 : i32
    %c0_i32_0 = arith.constant 0 : i32
    return %c0_i32, %arg1 : i32, i32
  }
  func.func @transform_3(%arg0: i32, %arg1: i32) -> (i32, i32) {
    %c0_i32 = arith.constant 0 : i32
    %c0_i32_0 = arith.constant 0 : i32
    return %c0_i32, %arg1 : i32, i32
  }
  func.func @transform_4(%arg0: i32, %arg1: i32) -> (i32, i32) {
    %c0_i32 = arith.constant 0 : i32
    return %arg0, %arg1 : i32, i32
  }
}

module attributes {stable_mosaic.version = 11 : i64} {
  func.func @_chunked_matmul_kernel(%arg0: i32, %arg1: i32, %arg2: memref<3x128x8xbf16, #tpu.memory_space<vmem>>, %arg3: memref<3x8x16xbf16, #tpu.memory_space<vmem>>, %arg4: memref<3x1x8xf32, #tpu.memory_space<vmem>>, %arg5: memref<3x1x8xf32, #tpu.memory_space<vmem>>, %arg6: memref<1x16xf32, #tpu.memory_space<vmem>>, %arg7: memref<1x16xf32, #tpu.memory_space<vmem>>, %arg8: memref<128x16xbf16, #tpu.memory_space<vmem>>, %arg9: memref<128x16xf32, #tpu.memory_space<vmem>>) attributes {dimension_semantics = [#tpu.dimension_semantics<parallel>, #tpu.dimension_semantics<arbitrary>], iteration_bounds = array<i64: 1, 1>, scalar_prefetch = 0 : i64, scratch_operands = 1 : i64, tpu.core_type = #tpu.core_type<tc>, window_params = [{transform_indices = @transform_0, window_bounds = array<i64: 3, 128, 8>}, {transform_indices = @transform_1, window_bounds = array<i64: 3, 8, 16>}, {transform_indices = @transform_2, window_bounds = array<i64: 3, 1, 8>}, {transform_indices = @transform_3, window_bounds = array<i64: 3, 1, 8>}, {pipeline_mode = #tpu.pipeline_mode<synchronous>, transform_indices = @transform_4, window_bounds = array<i64: 1, 16>}, {pipeline_mode = #tpu.pipeline_mode<synchronous>, transform_indices = @transform_5, window_bounds = array<i64: 1, 16>}, {transform_indices = @transform_6, window_bounds = array<i64: 128, 16>}]} {
    %c0 = arith.constant 0 : index
    %c0_0 = arith.constant 0 : index
    %c0_1 = arith.constant 0 : index
    %0 = vector.load %arg2[%c0, %c0_0, %c0_1] : memref<3x128x8xbf16, #tpu.memory_space<vmem>>, vector<1x128x8xbf16>
    %1 = vector.shape_cast %0 : vector<1x128x8xbf16> to vector<128x8xbf16>
    %2 = arith.extf %1 : vector<128x8xbf16> to vector<128x8xf32>
    %c0_2 = arith.constant 0 : index
    %c0_3 = arith.constant 0 : index
    %c0_4 = arith.constant 0 : index
    %3 = vector.load %arg4[%c0_2, %c0_3, %c0_4] : memref<3x1x8xf32, #tpu.memory_space<vmem>>, vector<1x1x8xf32>
    %4 = vector.shape_cast %3 : vector<1x1x8xf32> to vector<1x8xf32>
    %5 = vector.broadcast %4 : vector<1x8xf32> to vector<128x8xf32>
    %6 = arith.mulf %2, %5 : vector<128x8xf32>
    %c0_5 = arith.constant 0 : index
    %c0_6 = arith.constant 0 : index
    %c0_7 = arith.constant 0 : index
    %7 = vector.load %arg5[%c0_5, %c0_6, %c0_7] : memref<3x1x8xf32, #tpu.memory_space<vmem>>, vector<1x1x8xf32>
    %8 = vector.shape_cast %7 : vector<1x1x8xf32> to vector<1x8xf32>
    %9 = vector.broadcast %8 : vector<1x8xf32> to vector<128x8xf32>
    %10 = arith.addf %6, %9 : vector<128x8xf32>
    %cst = arith.constant 0.000000e+00 : f32
    %11 = vector.broadcast %cst : f32 to vector<128x8xf32>
    %12 = arith.maximumf %10, %11 : vector<128x8xf32>
    %13 = arith.truncf %12 : vector<128x8xf32> to vector<128x8xbf16>
    %c0_8 = arith.constant 0 : index
    %c0_9 = arith.constant 0 : index
    %c0_10 = arith.constant 0 : index
    %14 = vector.load %arg3[%c0_8, %c0_9, %c0_10] : memref<3x8x16xbf16, #tpu.memory_space<vmem>>, vector<1x8x16xbf16>
    %15 = vector.shape_cast %14 : vector<1x8x16xbf16> to vector<8x16xbf16>
    %cst_11 = arith.constant dense<0.000000e+00> : vector<128x16xf32>
    %16 = tpu.matmul %13, %15, %cst_11 {dimension_numbers = #tpu.dot_dimension_numbers<[1], [0], [0], [1], [0, 0, 1, 1], [], []>} : vector<128x8xbf16>, vector<8x16xbf16>, vector<128x16xf32> -> vector<128x16xf32>
    %c1 = arith.constant 1 : index
    %c0_12 = arith.constant 0 : index
    %c0_13 = arith.constant 0 : index
    %17 = vector.load %arg2[%c1, %c0_12, %c0_13] : memref<3x128x8xbf16, #tpu.memory_space<vmem>>, vector<1x128x8xbf16>
    %18 = vector.shape_cast %17 : vector<1x128x8xbf16> to vector<128x8xbf16>
    %19 = arith.extf %18 : vector<128x8xbf16> to vector<128x8xf32>
    %c1_14 = arith.constant 1 : index
    %c0_15 = arith.constant 0 : index
    %c0_16 = arith.constant 0 : index
    %20 = vector.load %arg4[%c1_14, %c0_15, %c0_16] : memref<3x1x8xf32, #tpu.memory_space<vmem>>, vector<1x1x8xf32>
    %21 = vector.shape_cast %20 : vector<1x1x8xf32> to vector<1x8xf32>
    %22 = vector.broadcast %21 : vector<1x8xf32> to vector<128x8xf32>
    %23 = arith.mulf %19, %22 : vector<128x8xf32>
    %c1_17 = arith.constant 1 : index
    %c0_18 = arith.constant 0 : index
    %c0_19 = arith.constant 0 : index
    %24 = vector.load %arg5[%c1_17, %c0_18, %c0_19] : memref<3x1x8xf32, #tpu.memory_space<vmem>>, vector<1x1x8xf32>
    %25 = vector.shape_cast %24 : vector<1x1x8xf32> to vector<1x8xf32>
    %26 = vector.broadcast %25 : vector<1x8xf32> to vector<128x8xf32>
    %27 = arith.addf %23, %26 : vector<128x8xf32>
    %cst_20 = arith.constant 0.000000e+00 : f32
    %28 = vector.broadcast %cst_20 : f32 to vector<128x8xf32>
    %29 = arith.maximumf %27, %28 : vector<128x8xf32>
    %30 = arith.truncf %29 : vector<128x8xf32> to vector<128x8xbf16>
    %c1_21 = arith.constant 1 : index
    %c0_22 = arith.constant 0 : index
    %c0_23 = arith.constant 0 : index
    %31 = vector.load %arg3[%c1_21, %c0_22, %c0_23] : memref<3x8x16xbf16, #tpu.memory_space<vmem>>, vector<1x8x16xbf16>
    %32 = vector.shape_cast %31 : vector<1x8x16xbf16> to vector<8x16xbf16>
    %cst_24 = arith.constant dense<0.000000e+00> : vector<128x16xf32>
    %33 = tpu.matmul %30, %32, %cst_24 {dimension_numbers = #tpu.dot_dimension_numbers<[1], [0], [0], [1], [0, 0, 1, 1], [], []>} : vector<128x8xbf16>, vector<8x16xbf16>, vector<128x16xf32> -> vector<128x16xf32>
    %34 = arith.addf %16, %33 : vector<128x16xf32>
    %c2 = arith.constant 2 : index
    %c0_25 = arith.constant 0 : index
    %c0_26 = arith.constant 0 : index
    %35 = vector.load %arg2[%c2, %c0_25, %c0_26] : memref<3x128x8xbf16, #tpu.memory_space<vmem>>, vector<1x128x8xbf16>
    %36 = vector.shape_cast %35 : vector<1x128x8xbf16> to vector<128x8xbf16>
    %37 = arith.extf %36 : vector<128x8xbf16> to vector<128x8xf32>
    %c2_27 = arith.constant 2 : index
    %c0_28 = arith.constant 0 : index
    %c0_29 = arith.constant 0 : index
    %38 = vector.load %arg4[%c2_27, %c0_28, %c0_29] : memref<3x1x8xf32, #tpu.memory_space<vmem>>, vector<1x1x8xf32>
    %39 = vector.shape_cast %38 : vector<1x1x8xf32> to vector<1x8xf32>
    %40 = vector.broadcast %39 : vector<1x8xf32> to vector<128x8xf32>
    %41 = arith.mulf %37, %40 : vector<128x8xf32>
    %c2_30 = arith.constant 2 : index
    %c0_31 = arith.constant 0 : index
    %c0_32 = arith.constant 0 : index
    %42 = vector.load %arg5[%c2_30, %c0_31, %c0_32] : memref<3x1x8xf32, #tpu.memory_space<vmem>>, vector<1x1x8xf32>
    %43 = vector.shape_cast %42 : vector<1x1x8xf32> to vector<1x8xf32>
    %44 = vector.broadcast %43 : vector<1x8xf32> to vector<128x8xf32>
    %45 = arith.addf %41, %44 : vector<128x8xf32>
    %cst_33 = arith.constant 0.000000e+00 : f32
    %46 = vector.broadcast %cst_33 : f32 to vector<128x8xf32>
    %47 = arith.maximumf %45, %46 : vector<128x8xf32>
    %48 = arith.truncf %47 : vector<128x8xf32> to vector<128x8xbf16>
    %c2_34 = arith.constant 2 : index
    %c0_35 = arith.constant 0 : index
    %c0_36 = arith.constant 0 : index
    %49 = vector.load %arg3[%c2_34, %c0_35, %c0_36] : memref<3x8x16xbf16, #tpu.memory_space<vmem>>, vector<1x8x16xbf16>
    %50 = vector.shape_cast %49 : vector<1x8x16xbf16> to vector<8x16xbf16>
    %cst_37 = arith.constant dense<0.000000e+00> : vector<128x16xf32>
    %51 = tpu.matmul %48, %50, %cst_37 {dimension_numbers = #tpu.dot_dimension_numbers<[1], [0], [0], [1], [0, 0, 1, 1], [], []>} : vector<128x8xbf16>, vector<8x16xbf16>, vector<128x16xf32> -> vector<128x16xf32>
    %52 = arith.addf %34, %51 : vector<128x16xf32>
    %c0_i32 = arith.constant 0 : i32
    %53 = arith.cmpi eq, %arg1, %c0_i32 : i32
    %54 = arith.extui %53 : i1 to i32
    %c0_i32_38 = arith.constant 0 : i32
    %55 = arith.cmpi ne, %54, %c0_i32_38 : i32
    scf.if %55 {
      %c0_43 = arith.constant 0 : index
      %c0_44 = arith.constant 0 : index
      %62 = vector.load %arg9[%c0_43, %c0_44] : memref<128x16xf32, #tpu.memory_space<vmem>>, vector<128x16xf32>
      tpu.vector_store %arg9[%c0_43, %c0_44], %52 {strides = array<i32>} : memref<128x16xf32, #tpu.memory_space<vmem>>, vector<128x16xf32>,
    } else {
    }
    %c0_i32_39 = arith.constant 0 : i32
    %56 = arith.cmpi sgt, %arg1, %c0_i32_39 : i32
    %57 = arith.extui %56 : i1 to i32
    %c0_i32_40 = arith.constant 0 : i32
    %58 = arith.cmpi ne, %57, %c0_i32_40 : i32
    scf.if %58 {
      %c0_43 = arith.constant 0 : index
      %c0_44 = arith.constant 0 : index
      %62 = vector.load %arg9[%c0_43, %c0_44] : memref<128x16xf32, #tpu.memory_space<vmem>>, vector<128x16xf32>
      %63 = arith.addf %62, %52 : vector<128x16xf32>
      %c0_45 = arith.constant 0 : index
      %c0_46 = arith.constant 0 : index
      %64 = vector.load %arg9[%c0_45, %c0_46] : memref<128x16xf32, #tpu.memory_space<vmem>>, vector<128x16xf32>
      tpu.vector_store %arg9[%c0_45, %c0_46], %63 {strides = array<i32>} : memref<128x16xf32, #tpu.memory_space<vmem>>, vector<128x16xf32>,
    } else {
    }
    %c0_i32_41 = arith.constant 0 : i32
    %59 = arith.cmpi eq, %arg1, %c0_i32_41 : i32
    %60 = arith.extui %59 : i1 to i32
    %c0_i32_42 = arith.constant 0 : i32
    %61 = arith.cmpi ne, %60, %c0_i32_42 : i32
    scf.if %61 {
      %c0_43 = arith.constant 0 : index
      %c0_44 = arith.constant 0 : index
      %62 = vector.load %arg9[%c0_43, %c0_44] : memref<128x16xf32, #tpu.memory_space<vmem>>, vector<128x16xf32>
      %c0_45 = arith.constant 0 : index
      %c0_46 = arith.constant 0 : index
      %63 = vector.load %arg6[%c0_45, %c0_46] : memref<1x16xf32, #tpu.memory_space<vmem>>, vector<1x16xf32>
      %64 = vector.broadcast %63 : vector<1x16xf32> to vector<128x16xf32>
      %65 = arith.mulf %62, %64 : vector<128x16xf32>
      %c0_47 = arith.constant 0 : index
      %c0_48 = arith.constant 0 : index
      %66 = vector.load %arg7[%c0_47, %c0_48] : memref<1x16xf32, #tpu.memory_space<vmem>>, vector<1x16xf32>
      %67 = vector.broadcast %66 : vector<1x16xf32> to vector<128x16xf32>
      %68 = arith.addf %65, %67 : vector<128x16xf32>
      %cst_49 = arith.constant 0.000000e+00 : f32
      %69 = vector.broadcast %cst_49 : f32 to vector<128x16xf32>
      %70 = arith.maximumf %68, %69 : vector<128x16xf32>
      %71 = arith.truncf %70 : vector<128x16xf32> to vector<128x16xbf16>
      %c0_50 = arith.constant 0 : index
      %c0_51 = arith.constant 0 : index
      %72 = vector.load %arg8[%c0_50, %c0_51] : memref<128x16xbf16, #tpu.memory_space<vmem>>, vector<128x16xbf16>
      tpu.vector_store %arg8[%c0_50, %c0_51], %71 {strides = array<i32>} : memref<128x16xbf16, #tpu.memory_space<vmem>>, vector<128x16xbf16>,
    } else {
    }
    return
  }
  func.func @transform_0(%arg0: i32, %arg1: i32) -> (i32, i32, i32) {
    %c0_i32 = arith.constant 0 : i32
    %c0_i32_0 = arith.constant 0 : i32
    return %arg1, %arg0, %c0_i32 : i32, i32, i32
  }
  func.func @transform_1(%arg0: i32, %arg1: i32) -> (i32, i32, i32) {
    %c0_i32 = arith.constant 0 : i32
    %c0_i32_0 = arith.constant 0 : i32
    %c0_i32_1 = arith.constant 0 : i32
    return %arg1, %c0_i32, %c0_i32_0 : i32, i32, i32
  }
  func.func @transform_2(%arg0: i32, %arg1: i32) -> (i32, i32, i32) {
    %c0_i32 = arith.constant 0 : i32
    %c0_i32_0 = arith.constant 0 : i32
    %c0_i32_1 = arith.constant 0 : i32
    return %arg1, %c0_i32, %c0_i32_0 : i32, i32, i32
  }
  func.func @transform_3(%arg0: i32, %arg1: i32) -> (i32, i32, i32) {
    %c0_i32 = arith.constant 0 : i32
    %c0_i32_0 = arith.constant 0 : i32
    %c0_i32_1 = arith.constant 0 : i32
    return %arg1, %c0_i32, %c0_i32_0 : i32, i32, i32
  }
  func.func @transform_4(%arg0: i32, %arg1: i32) -> (i32, i32) {
    %c0_i32 = arith.constant 0 : i32
    %c0_i32_0 = arith.constant 0 : i32
    %c0_i32_1 = arith.constant 0 : i32
    return %c0_i32, %c0_i32_0 : i32, i32
  }
  func.func @transform_5(%arg0: i32, %arg1: i32) -> (i32, i32) {
    %c0_i32 = arith.constant 0 : i32
    %c0_i32_0 = arith.constant 0 : i32
    %c0_i32_1 = arith.constant 0 : i32
    return %c0_i32, %c0_i32_0 : i32, i32
  }
  func.func @transform_6(%arg0: i32, %arg1: i32) -> (i32, i32) {
    %c0_i32 = arith.constant 0 : i32
    %c0_i32_0 = arith.constant 0 : i32
    return %arg0, %c0_i32 : i32, i32
  }
}

module attributes {stable_mosaic.version = 11 : i64} {
  func.func @_chunked_matmul_kernel(%arg0: i32, %arg1: i32, %arg2: memref<4x128x8xbf16, #tpu.memory_space<vmem>>, %arg3: memref<4x8x16xbf16, #tpu.memory_space<vmem>>, %arg4: memref<4x1x8xf32, #tpu.memory_space<vmem>>, %arg5: memref<4x1x8xf32, #tpu.memory_space<vmem>>, %arg6: memref<1x16xf32, #tpu.memory_space<vmem>>, %arg7: memref<1x16xf32, #tpu.memory_space<vmem>>, %arg8: memref<128x16xbf16, #tpu.memory_space<vmem>>, %arg9: memref<128x16xf32, #tpu.memory_space<vmem>>) attributes {dimension_semantics = [#tpu.dimension_semantics<parallel>, #tpu.dimension_semantics<arbitrary>], iteration_bounds = array<i64: 1, 1>, scalar_prefetch = 0 : i64, scratch_operands = 1 : i64, tpu.core_type = #tpu.core_type<tc>, window_params = [{transform_indices = @transform_0, window_bounds = array<i64: 4, 128, 8>}, {transform_indices = @transform_1, window_bounds = array<i64: 4, 8, 16>}, {transform_indices = @transform_2, window_bounds = array<i64: 4, 1, 8>}, {transform_indices = @transform_3, window_bounds = array<i64: 4, 1, 8>}, {pipeline_mode = #tpu.pipeline_mode<synchronous>, transform_indices = @transform_4, window_bounds = array<i64: 1, 16>}, {pipeline_mode = #tpu.pipeline_mode<synchronous>, transform_indices = @transform_5, window_bounds = array<i64: 1, 16>}, {transform_indices = @transform_6, window_bounds = array<i64: 128, 16>}]} {
    %c0 = arith.constant 0 : index
    %c0_0 = arith.constant 0 : index
    %c0_1 = arith.constant 0 : index
    %0 = vector.load %arg2[%c0, %c0_0, %c0_1] : memref<4x128x8xbf16, #tpu.memory_space<vmem>>, vector<1x128x8xbf16>
    %1 = vector.shape_cast %0 : vector<1x128x8xbf16> to vector<128x8xbf16>
    %2 = arith.extf %1 : vector<128x8xbf16> to vector<128x8xf32>
    %c0_2 = arith.constant 0 : index
    %c0_3 = arith.constant 0 : index
    %c0_4 = arith.constant 0 : index
    %3 = vector.load %arg4[%c0_2, %c0_3, %c0_4] : memref<4x1x8xf32, #tpu.memory_space<vmem>>, vector<1x1x8xf32>
    %4 = vector.shape_cast %3 : vector<1x1x8xf32> to vector<1x8xf32>
    %5 = vector.broadcast %4 : vector<1x8xf32> to vector<128x8xf32>
    %6 = arith.mulf %2, %5 : vector<128x8xf32>
    %c0_5 = arith.constant 0 : index
    %c0_6 = arith.constant 0 : index
    %c0_7 = arith.constant 0 : index
    %7 = vector.load %arg5[%c0_5, %c0_6, %c0_7] : memref<4x1x8xf32, #tpu.memory_space<vmem>>, vector<1x1x8xf32>
    %8 = vector.shape_cast %7 : vector<1x1x8xf32> to vector<1x8xf32>
    %9 = vector.broadcast %8 : vector<1x8xf32> to vector<128x8xf32>
    %10 = arith.addf %6, %9 : vector<128x8xf32>
    %cst = arith.constant 0.000000e+00 : f32
    %11 = vector.broadcast %cst : f32 to vector<128x8xf32>
    %12 = arith.maximumf %10, %11 : vector<128x8xf32>
    %13 = arith.truncf %12 : vector<128x8xf32> to vector<128x8xbf16>
    %c0_8 = arith.constant 0 : index
    %c0_9 = arith.constant 0 : index
    %c0_10 = arith.constant 0 : index
    %14 = vector.load %arg3[%c0_8, %c0_9, %c0_10] : memref<4x8x16xbf16, #tpu.memory_space<vmem>>, vector<1x8x16xbf16>
    %15 = vector.shape_cast %14 : vector<1x8x16xbf16> to vector<8x16xbf16>
    %cst_11 = arith.constant dense<0.000000e+00> : vector<128x16xf32>
    %16 = tpu.matmul %13, %15, %cst_11 {dimension_numbers = #tpu.dot_dimension_numbers<[1], [0], [0], [1], [0, 0, 1, 1], [], []>} : vector<128x8xbf16>, vector<8x16xbf16>, vector<128x16xf32> -> vector<128x16xf32>
    %c1 = arith.constant 1 : index
    %c0_12 = arith.constant 0 : index
    %c0_13 = arith.constant 0 : index
    %17 = vector.load %arg2[%c1, %c0_12, %c0_13] : memref<4x128x8xbf16, #tpu.memory_space<vmem>>, vector<1x128x8xbf16>
    %18 = vector.shape_cast %17 : vector<1x128x8xbf16> to vector<128x8xbf16>
    %19 = arith.extf %18 : vector<128x8xbf16> to vector<128x8xf32>
    %c1_14 = arith.constant 1 : index
    %c0_15 = arith.constant 0 : index
    %c0_16 = arith.constant 0 : index
    %20 = vector.load %arg4[%c1_14, %c0_15, %c0_16] : memref<4x1x8xf32, #tpu.memory_space<vmem>>, vector<1x1x8xf32>
    %21 = vector.shape_cast %20 : vector<1x1x8xf32> to vector<1x8xf32>
    %22 = vector.broadcast %21 : vector<1x8xf32> to vector<128x8xf32>
    %23 = arith.mulf %19, %22 : vector<128x8xf32>
    %c1_17 = arith.constant 1 : index
    %c0_18 = arith.constant 0 : index
    %c0_19 = arith.constant 0 : index
    %24 = vector.load %arg5[%c1_17, %c0_18, %c0_19] : memref<4x1x8xf32, #tpu.memory_space<vmem>>, vector<1x1x8xf32>
    %25 = vector.shape_cast %24 : vector<1x1x8xf32> to vector<1x8xf32>
    %26 = vector.broadcast %25 : vector<1x8xf32> to vector<128x8xf32>
    %27 = arith.addf %23, %26 : vector<128x8xf32>
    %cst_20 = arith.constant 0.000000e+00 : f32
    %28 = vector.broadcast %cst_20 : f32 to vector<128x8xf32>
    %29 = arith.maximumf %27, %28 : vector<128x8xf32>
    %30 = arith.truncf %29 : vector<128x8xf32> to vector<128x8xbf16>
    %c1_21 = arith.constant 1 : index
    %c0_22 = arith.constant 0 : index
    %c0_23 = arith.constant 0 : index
    %31 = vector.load %arg3[%c1_21, %c0_22, %c0_23] : memref<4x8x16xbf16, #tpu.memory_space<vmem>>, vector<1x8x16xbf16>
    %32 = vector.shape_cast %31 : vector<1x8x16xbf16> to vector<8x16xbf16>
    %cst_24 = arith.constant dense<0.000000e+00> : vector<128x16xf32>
    %33 = tpu.matmul %30, %32, %cst_24 {dimension_numbers = #tpu.dot_dimension_numbers<[1], [0], [0], [1], [0, 0, 1, 1], [], []>} : vector<128x8xbf16>, vector<8x16xbf16>, vector<128x16xf32> -> vector<128x16xf32>
    %34 = arith.addf %16, %33 : vector<128x16xf32>
    %c2 = arith.constant 2 : index
    %c0_25 = arith.constant 0 : index
    %c0_26 = arith.constant 0 : index
    %35 = vector.load %arg2[%c2, %c0_25, %c0_26] : memref<4x128x8xbf16, #tpu.memory_space<vmem>>, vector<1x128x8xbf16>
    %36 = vector.shape_cast %35 : vector<1x128x8xbf16> to vector<128x8xbf16>
    %37 = arith.extf %36 : vector<128x8xbf16> to vector<128x8xf32>
    %c2_27 = arith.constant 2 : index
    %c0_28 = arith.constant 0 : index
    %c0_29 = arith.constant 0 : index
    %38 = vector.load %arg4[%c2_27, %c0_28, %c0_29] : memref<4x1x8xf32, #tpu.memory_space<vmem>>, vector<1x1x8xf32>
    %39 = vector.shape_cast %38 : vector<1x1x8xf32> to vector<1x8xf32>
    %40 = vector.broadcast %39 : vector<1x8xf32> to vector<128x8xf32>
    %41 = arith.mulf %37, %40 : vector<128x8xf32>
    %c2_30 = arith.constant 2 : index
    %c0_31 = arith.constant 0 : index
    %c0_32 = arith.constant 0 : index
    %42 = vector.load %arg5[%c2_30, %c0_31, %c0_32] : memref<4x1x8xf32, #tpu.memory_space<vmem>>, vector<1x1x8xf32>
    %43 = vector.shape_cast %42 : vector<1x1x8xf32> to vector<1x8xf32>
    %44 = vector.broadcast %43 : vector<1x8xf32> to vector<128x8xf32>
    %45 = arith.addf %41, %44 : vector<128x8xf32>
    %cst_33 = arith.constant 0.000000e+00 : f32
    %46 = vector.broadcast %cst_33 : f32 to vector<128x8xf32>
    %47 = arith.maximumf %45, %46 : vector<128x8xf32>
    %48 = arith.truncf %47 : vector<128x8xf32> to vector<128x8xbf16>
    %c2_34 = arith.constant 2 : index
    %c0_35 = arith.constant 0 : index
    %c0_36 = arith.constant 0 : index
    %49 = vector.load %arg3[%c2_34, %c0_35, %c0_36] : memref<4x8x16xbf16, #tpu.memory_space<vmem>>, vector<1x8x16xbf16>
    %50 = vector.shape_cast %49 : vector<1x8x16xbf16> to vector<8x16xbf16>
    %cst_37 = arith.constant dense<0.000000e+00> : vector<128x16xf32>
    %51 = tpu.matmul %48, %50, %cst_37 {dimension_numbers = #tpu.dot_dimension_numbers<[1], [0], [0], [1], [0, 0, 1, 1], [], []>} : vector<128x8xbf16>, vector<8x16xbf16>, vector<128x16xf32> -> vector<128x16xf32>
    %52 = arith.addf %34, %51 : vector<128x16xf32>
    %c3 = arith.constant 3 : index
    %c0_38 = arith.constant 0 : index
    %c0_39 = arith.constant 0 : index
    %53 = vector.load %arg2[%c3, %c0_38, %c0_39] : memref<4x128x8xbf16, #tpu.memory_space<vmem>>, vector<1x128x8xbf16>
    %54 = vector.shape_cast %53 : vector<1x128x8xbf16> to vector<128x8xbf16>
    %55 = arith.extf %54 : vector<128x8xbf16> to vector<128x8xf32>
    %c3_40 = arith.constant 3 : index
    %c0_41 = arith.constant 0 : index
    %c0_42 = arith.constant 0 : index
    %56 = vector.load %arg4[%c3_40, %c0_41, %c0_42] : memref<4x1x8xf32, #tpu.memory_space<vmem>>, vector<1x1x8xf32>
    %57 = vector.shape_cast %56 : vector<1x1x8xf32> to vector<1x8xf32>
    %58 = vector.broadcast %57 : vector<1x8xf32> to vector<128x8xf32>
    %59 = arith.mulf %55, %58 : vector<128x8xf32>
    %c3_43 = arith.constant 3 : index
    %c0_44 = arith.constant 0 : index
    %c0_45 = arith.constant 0 : index
    %60 = vector.load %arg5[%c3_43, %c0_44, %c0_45] : memref<4x1x8xf32, #tpu.memory_space<vmem>>, vector<1x1x8xf32>
    %61 = vector.shape_cast %60 : vector<1x1x8xf32> to vector<1x8xf32>
    %62 = vector.broadcast %61 : vector<1x8xf32> to vector<128x8xf32>
    %63 = arith.addf %59, %62 : vector<128x8xf32>
    %cst_46 = arith.constant 0.000000e+00 : f32
    %64 = vector.broadcast %cst_46 : f32 to vector<128x8xf32>
    %65 = arith.maximumf %63, %64 : vector<128x8xf32>
    %66 = arith.truncf %65 : vector<128x8xf32> to vector<128x8xbf16>
    %c3_47 = arith.constant 3 : index
    %c0_48 = arith.constant 0 : index
    %c0_49 = arith.constant 0 : index
    %67 = vector.load %arg3[%c3_47, %c0_48, %c0_49] : memref<4x8x16xbf16, #tpu.memory_space<vmem>>, vector<1x8x16xbf16>
    %68 = vector.shape_cast %67 : vector<1x8x16xbf16> to vector<8x16xbf16>
    %cst_50 = arith.constant dense<0.000000e+00> : vector<128x16xf32>
    %69 = tpu.matmul %66, %68, %cst_50 {dimension_numbers = #tpu.dot_dimension_numbers<[1], [0], [0], [1], [0, 0, 1, 1], [], []>} : vector<128x8xbf16>, vector<8x16xbf16>, vector<128x16xf32> -> vector<128x16xf32>
    %70 = arith.addf %52, %69 : vector<128x16xf32>
    %c0_i32 = arith.constant 0 : i32
    %71 = arith.cmpi eq, %arg1, %c0_i32 : i32
    %72 = arith.extui %71 : i1 to i32
    %c0_i32_51 = arith.constant 0 : i32
    %73 = arith.cmpi ne, %72, %c0_i32_51 : i32
    scf.if %73 {
      %c0_56 = arith.constant 0 : index
      %c0_57 = arith.constant 0 : index
      %80 = vector.load %arg9[%c0_56, %c0_57] : memref<128x16xf32, #tpu.memory_space<vmem>>, vector<128x16xf32>
      tpu.vector_store %arg9[%c0_56, %c0_57], %70 {strides = array<i32>} : memref<128x16xf32, #tpu.memory_space<vmem>>, vector<128x16xf32>,
    } else {
    }
    %c0_i32_52 = arith.constant 0 : i32
    %74 = arith.cmpi sgt, %arg1, %c0_i32_52 : i32
    %75 = arith.extui %74 : i1 to i32
    %c0_i32_53 = arith.constant 0 : i32
    %76 = arith.cmpi ne, %75, %c0_i32_53 : i32
    scf.if %76 {
      %c0_56 = arith.constant 0 : index
      %c0_57 = arith.constant 0 : index
      %80 = vector.load %arg9[%c0_56, %c0_57] : memref<128x16xf32, #tpu.memory_space<vmem>>, vector<128x16xf32>
      %81 = arith.addf %80, %70 : vector<128x16xf32>
      %c0_58 = arith.constant 0 : index
      %c0_59 = arith.constant 0 : index
      %82 = vector.load %arg9[%c0_58, %c0_59] : memref<128x16xf32, #tpu.memory_space<vmem>>, vector<128x16xf32>
      tpu.vector_store %arg9[%c0_58, %c0_59], %81 {strides = array<i32>} : memref<128x16xf32, #tpu.memory_space<vmem>>, vector<128x16xf32>,
    } else {
    }
    %c0_i32_54 = arith.constant 0 : i32
    %77 = arith.cmpi eq, %arg1, %c0_i32_54 : i32
    %78 = arith.extui %77 : i1 to i32
    %c0_i32_55 = arith.constant 0 : i32
    %79 = arith.cmpi ne, %78, %c0_i32_55 : i32
    scf.if %79 {
      %c0_56 = arith.constant 0 : index
      %c0_57 = arith.constant 0 : index
      %80 = vector.load %arg9[%c0_56, %c0_57] : memref<128x16xf32, #tpu.memory_space<vmem>>, vector<128x16xf32>
      %c0_58 = arith.constant 0 : index
      %c0_59 = arith.constant 0 : index
      %81 = vector.load %arg6[%c0_58, %c0_59] : memref<1x16xf32, #tpu.memory_space<vmem>>, vector<1x16xf32>
      %82 = vector.broadcast %81 : vector<1x16xf32> to vector<128x16xf32>
      %83 = arith.mulf %80, %82 : vector<128x16xf32>
      %c0_60 = arith.constant 0 : index
      %c0_61 = arith.constant 0 : index
      %84 = vector.load %arg7[%c0_60, %c0_61] : memref<1x16xf32, #tpu.memory_space<vmem>>, vector<1x16xf32>
      %85 = vector.broadcast %84 : vector<1x16xf32> to vector<128x16xf32>
      %86 = arith.addf %83, %85 : vector<128x16xf32>
      %87 = arith.truncf %86 : vector<128x16xf32> to vector<128x16xbf16>
      %c0_62 = arith.constant 0 : index
      %c0_63 = arith.constant 0 : index
      %88 = vector.load %arg8[%c0_62, %c0_63] : memref<128x16xbf16, #tpu.memory_space<vmem>>, vector<128x16xbf16>
      tpu.vector_store %arg8[%c0_62, %c0_63], %87 {strides = array<i32>} : memref<128x16xbf16, #tpu.memory_space<vmem>>, vector<128x16xbf16>,
    } else {
    }
    return
  }
  func.func @transform_0(%arg0: i32, %arg1: i32) -> (i32, i32, i32) {
    %c0_i32 = arith.constant 0 : i32
    %c0_i32_0 = arith.constant 0 : i32
    return %arg1, %arg0, %c0_i32 : i32, i32, i32
  }
  func.func @transform_1(%arg0: i32, %arg1: i32) -> (i32, i32, i32) {
    %c0_i32 = arith.constant 0 : i32
    %c0_i32_0 = arith.constant 0 : i32
    %c0_i32_1 = arith.constant 0 : i32
    return %arg1, %c0_i32, %c0_i32_0 : i32, i32, i32
  }
  func.func @transform_2(%arg0: i32, %arg1: i32) -> (i32, i32, i32) {
    %c0_i32 = arith.constant 0 : i32
    %c0_i32_0 = arith.constant 0 : i32
    %c0_i32_1 = arith.constant 0 : i32
    return %arg1, %c0_i32, %c0_i32_0 : i32, i32, i32
  }
  func.func @transform_3(%arg0: i32, %arg1: i32) -> (i32, i32, i32) {
    %c0_i32 = arith.constant 0 : i32
    %c0_i32_0 = arith.constant 0 : i32
    %c0_i32_1 = arith.constant 0 : i32
    return %arg1, %c0_i32, %c0_i32_0 : i32, i32, i32
  }
  func.func @transform_4(%arg0: i32, %arg1: i32) -> (i32, i32) {
    %c0_i32 = arith.constant 0 : i32
    %c0_i32_0 = arith.constant 0 : i32
    %c0_i32_1 = arith.constant 0 : i32
    return %c0_i32, %c0_i32_0 : i32, i32
  }
  func.func @transform_5(%arg0: i32, %arg1: i32) -> (i32, i32) {
    %c0_i32 = arith.constant 0 : i32
    %c0_i32_0 = arith.constant 0 : i32
    %c0_i32_1 = arith.constant 0 : i32
    return %c0_i32, %c0_i32_0 : i32, i32
  }
  func.func @transform_6(%arg0: i32, %arg1: i32) -> (i32, i32) {
    %c0_i32 = arith.constant 0 : i32
    %c0_i32_0 = arith.constant 0 : i32
    return %arg0, %c0_i32 : i32, i32
  }
}

module attributes {stable_mosaic.version = 11 : i64} {
  func.func @_chunked_matmul_kernel(%arg0: i32, %arg1: i32, %arg2: memref<2x32x8xbf16, #tpu.memory_space<vmem>>, %arg3: memref<2x8x16xbf16, #tpu.memory_space<vmem>>, %arg4: memref<2x1x8xf32, #tpu.memory_space<vmem>>, %arg5: memref<2x1x8xf32, #tpu.memory_space<vmem>>, %arg6: memref<1x16xf32, #tpu.memory_space<vmem>>, %arg7: memref<1x16xf32, #tpu.memory_space<vmem>>, %arg8: memref<32x16xbf16, #tpu.memory_space<vmem>>, %arg9: memref<32x16xf32, #tpu.memory_space<vmem>>) attributes {dimension_semantics = [#tpu.dimension_semantics<parallel>, #tpu.dimension_semantics<arbitrary>], iteration_bounds = array<i64: 1, 1>, scalar_prefetch = 0 : i64, scratch_operands = 1 : i64, tpu.core_type = #tpu.core_type<tc>, window_params = [{transform_indices = @transform_0, window_bounds = array<i64: 2, 32, 8>}, {transform_indices = @transform_1, window_bounds = array<i64: 2, 8, 16>}, {transform_indices = @transform_2, window_bounds = array<i64: 2, 1, 8>}, {transform_indices = @transform_3, window_bounds = array<i64: 2, 1, 8>}, {pipeline_mode = #tpu.pipeline_mode<synchronous>, transform_indices = @transform_4, window_bounds = array<i64: 1, 16>}, {pipeline_mode = #tpu.pipeline_mode<synchronous>, transform_indices = @transform_5, window_bounds = array<i64: 1, 16>}, {transform_indices = @transform_6, window_bounds = array<i64: 32, 16>}]} {
    %c0 = arith.constant 0 : index
    %c0_0 = arith.constant 0 : index
    %c0_1 = arith.constant 0 : index
    %0 = vector.load %arg2[%c0, %c0_0, %c0_1] : memref<2x32x8xbf16, #tpu.memory_space<vmem>>, vector<1x32x8xbf16>
    %1 = vector.shape_cast %0 : vector<1x32x8xbf16> to vector<32x8xbf16>
    %2 = arith.extf %1 : vector<32x8xbf16> to vector<32x8xf32>
    %c0_2 = arith.constant 0 : index
    %c0_3 = arith.constant 0 : index
    %c0_4 = arith.constant 0 : index
    %3 = vector.load %arg4[%c0_2, %c0_3, %c0_4] : memref<2x1x8xf32, #tpu.memory_space<vmem>>, vector<1x1x8xf32>
    %4 = vector.shape_cast %3 : vector<1x1x8xf32> to vector<1x8xf32>
    %5 = vector.broadcast %4 : vector<1x8xf32> to vector<32x8xf32>
    %6 = arith.mulf %2, %5 : vector<32x8xf32>
    %c0_5 = arith.constant 0 : index
    %c0_6 = arith.constant 0 : index
    %c0_7 = arith.constant 0 : index
    %7 = vector.load %arg5[%c0_5, %c0_6, %c0_7] : memref<2x1x8xf32, #tpu.memory_space<vmem>>, vector<1x1x8xf32>
    %8 = vector.shape_cast %7 : vector<1x1x8xf32> to vector<1x8xf32>
    %9 = vector.broadcast %8 : vector<1x8xf32> to vector<32x8xf32>
    %10 = arith.addf %6, %9 : vector<32x8xf32>
    %cst = arith.constant 0.000000e+00 : f32
    %11 = vector.broadcast %cst : f32 to vector<32x8xf32>
    %12 = arith.maximumf %10, %11 : vector<32x8xf32>
    %13 = arith.truncf %12 : vector<32x8xf32> to vector<32x8xbf16>
    %c0_8 = arith.constant 0 : index
    %c0_9 = arith.constant 0 : index
    %c0_10 = arith.constant 0 : index
    %14 = vector.load %arg3[%c0_8, %c0_9, %c0_10] : memref<2x8x16xbf16, #tpu.memory_space<vmem>>, vector<1x8x16xbf16>
    %15 = vector.shape_cast %14 : vector<1x8x16xbf16> to vector<8x16xbf16>
    %cst_11 = arith.constant dense<0.000000e+00> : vector<32x16xf32>
    %16 = tpu.matmul %13, %15, %cst_11 {dimension_numbers = #tpu.dot_dimension_numbers<[1], [0], [0], [1], [0, 0, 1, 1], [], []>} : vector<32x8xbf16>, vector<8x16xbf16>, vector<32x16xf32> -> vector<32x16xf32>
    %c1 = arith.constant 1 : index
    %c0_12 = arith.constant 0 : index
    %c0_13 = arith.constant 0 : index
    %17 = vector.load %arg2[%c1, %c0_12, %c0_13] : memref<2x32x8xbf16, #tpu.memory_space<vmem>>, vector<1x32x8xbf16>
    %18 = vector.shape_cast %17 : vector<1x32x8xbf16> to vector<32x8xbf16>
    %19 = arith.extf %18 : vector<32x8xbf16> to vector<32x8xf32>
    %c1_14 = arith.constant 1 : index
    %c0_15 = arith.constant 0 : index
    %c0_16 = arith.constant 0 : index
    %20 = vector.load %arg4[%c1_14, %c0_15, %c0_16] : memref<2x1x8xf32, #tpu.memory_space<vmem>>, vector<1x1x8xf32>
    %21 = vector.shape_cast %20 : vector<1x1x8xf32> to vector<1x8xf32>
    %22 = vector.broadcast %21 : vector<1x8xf32> to vector<32x8xf32>
    %23 = arith.mulf %19, %22 : vector<32x8xf32>
    %c1_17 = arith.constant 1 : index
    %c0_18 = arith.constant 0 : index
    %c0_19 = arith.constant 0 : index
    %24 = vector.load %arg5[%c1_17, %c0_18, %c0_19] : memref<2x1x8xf32, #tpu.memory_space<vmem>>, vector<1x1x8xf32>
    %25 = vector.shape_cast %24 : vector<1x1x8xf32> to vector<1x8xf32>
    %26 = vector.broadcast %25 : vector<1x8xf32> to vector<32x8xf32>
    %27 = arith.addf %23, %26 : vector<32x8xf32>
    %cst_20 = arith.constant 0.000000e+00 : f32
    %28 = vector.broadcast %cst_20 : f32 to vector<32x8xf32>
    %29 = arith.maximumf %27, %28 : vector<32x8xf32>
    %30 = arith.truncf %29 : vector<32x8xf32> to vector<32x8xbf16>
    %c1_21 = arith.constant 1 : index
    %c0_22 = arith.constant 0 : index
    %c0_23 = arith.constant 0 : index
    %31 = vector.load %arg3[%c1_21, %c0_22, %c0_23] : memref<2x8x16xbf16, #tpu.memory_space<vmem>>, vector<1x8x16xbf16>
    %32 = vector.shape_cast %31 : vector<1x8x16xbf16> to vector<8x16xbf16>
    %cst_24 = arith.constant dense<0.000000e+00> : vector<32x16xf32>
    %33 = tpu.matmul %30, %32, %cst_24 {dimension_numbers = #tpu.dot_dimension_numbers<[1], [0], [0], [1], [0, 0, 1, 1], [], []>} : vector<32x8xbf16>, vector<8x16xbf16>, vector<32x16xf32> -> vector<32x16xf32>
    %34 = arith.addf %16, %33 : vector<32x16xf32>
    %c0_i32 = arith.constant 0 : i32
    %35 = arith.cmpi eq, %arg1, %c0_i32 : i32
    %36 = arith.extui %35 : i1 to i32
    %c0_i32_25 = arith.constant 0 : i32
    %37 = arith.cmpi ne, %36, %c0_i32_25 : i32
    scf.if %37 {
      %c0_30 = arith.constant 0 : index
      %c0_31 = arith.constant 0 : index
      %44 = vector.load %arg9[%c0_30, %c0_31] : memref<32x16xf32, #tpu.memory_space<vmem>>, vector<32x16xf32>
      tpu.vector_store %arg9[%c0_30, %c0_31], %34 {strides = array<i32>} : memref<32x16xf32, #tpu.memory_space<vmem>>, vector<32x16xf32>,
    } else {
    }
    %c0_i32_26 = arith.constant 0 : i32
    %38 = arith.cmpi sgt, %arg1, %c0_i32_26 : i32
    %39 = arith.extui %38 : i1 to i32
    %c0_i32_27 = arith.constant 0 : i32
    %40 = arith.cmpi ne, %39, %c0_i32_27 : i32
    scf.if %40 {
      %c0_30 = arith.constant 0 : index
      %c0_31 = arith.constant 0 : index
      %44 = vector.load %arg9[%c0_30, %c0_31] : memref<32x16xf32, #tpu.memory_space<vmem>>, vector<32x16xf32>
      %45 = arith.addf %44, %34 : vector<32x16xf32>
      %c0_32 = arith.constant 0 : index
      %c0_33 = arith.constant 0 : index
      %46 = vector.load %arg9[%c0_32, %c0_33] : memref<32x16xf32, #tpu.memory_space<vmem>>, vector<32x16xf32>
      tpu.vector_store %arg9[%c0_32, %c0_33], %45 {strides = array<i32>} : memref<32x16xf32, #tpu.memory_space<vmem>>, vector<32x16xf32>,
    } else {
    }
    %c0_i32_28 = arith.constant 0 : i32
    %41 = arith.cmpi eq, %arg1, %c0_i32_28 : i32
    %42 = arith.extui %41 : i1 to i32
    %c0_i32_29 = arith.constant 0 : i32
    %43 = arith.cmpi ne, %42, %c0_i32_29 : i32
    scf.if %43 {
      %c0_30 = arith.constant 0 : index
      %c0_31 = arith.constant 0 : index
      %44 = vector.load %arg9[%c0_30, %c0_31] : memref<32x16xf32, #tpu.memory_space<vmem>>, vector<32x16xf32>
      %c0_32 = arith.constant 0 : index
      %c0_33 = arith.constant 0 : index
      %45 = vector.load %arg6[%c0_32, %c0_33] : memref<1x16xf32, #tpu.memory_space<vmem>>, vector<1x16xf32>
      %46 = vector.broadcast %45 : vector<1x16xf32> to vector<32x16xf32>
      %47 = arith.mulf %44, %46 : vector<32x16xf32>
      %c0_34 = arith.constant 0 : index
      %c0_35 = arith.constant 0 : index
      %48 = vector.load %arg7[%c0_34, %c0_35] : memref<1x16xf32, #tpu.memory_space<vmem>>, vector<1x16xf32>
      %49 = vector.broadcast %48 : vector<1x16xf32> to vector<32x16xf32>
      %50 = arith.addf %47, %49 : vector<32x16xf32>
      %cst_36 = arith.constant 0.000000e+00 : f32
      %51 = vector.broadcast %cst_36 : f32 to vector<32x16xf32>
      %52 = arith.maximumf %50, %51 : vector<32x16xf32>
      %53 = arith.truncf %52 : vector<32x16xf32> to vector<32x16xbf16>
      %c0_37 = arith.constant 0 : index
      %c0_38 = arith.constant 0 : index
      %54 = vector.load %arg8[%c0_37, %c0_38] : memref<32x16xbf16, #tpu.memory_space<vmem>>, vector<32x16xbf16>
      tpu.vector_store %arg8[%c0_37, %c0_38], %53 {strides = array<i32>} : memref<32x16xbf16, #tpu.memory_space<vmem>>, vector<32x16xbf16>,
    } else {
    }
    return
  }
  func.func @transform_0(%arg0: i32, %arg1: i32) -> (i32, i32, i32) {
    %c0_i32 = arith.constant 0 : i32
    %c0_i32_0 = arith.constant 0 : i32
    return %arg1, %arg0, %c0_i32 : i32, i32, i32
  }
  func.func @transform_1(%arg0: i32, %arg1: i32) -> (i32, i32, i32) {
    %c0_i32 = arith.constant 0 : i32
    %c0_i32_0 = arith.constant 0 : i32
    %c0_i32_1 = arith.constant 0 : i32
    return %arg1, %c0_i32, %c0_i32_0 : i32, i32, i32
  }
  func.func @transform_2(%arg0: i32, %arg1: i32) -> (i32, i32, i32) {
    %c0_i32 = arith.constant 0 : i32
    %c0_i32_0 = arith.constant 0 : i32
    %c0_i32_1 = arith.constant 0 : i32
    return %arg1, %c0_i32, %c0_i32_0 : i32, i32, i32
  }
  func.func @transform_3(%arg0: i32, %arg1: i32) -> (i32, i32, i32) {
    %c0_i32 = arith.constant 0 : i32
    %c0_i32_0 = arith.constant 0 : i32
    %c0_i32_1 = arith.constant 0 : i32
    return %arg1, %c0_i32, %c0_i32_0 : i32, i32, i32
  }
  func.func @transform_4(%arg0: i32, %arg1: i32) -> (i32, i32) {
    %c0_i32 = arith.constant 0 : i32
    %c0_i32_0 = arith.constant 0 : i32
    %c0_i32_1 = arith.constant 0 : i32
    return %c0_i32, %c0_i32_0 : i32, i32
  }
  func.func @transform_5(%arg0: i32, %arg1: i32) -> (i32, i32) {
    %c0_i32 = arith.constant 0 : i32
    %c0_i32_0 = arith.constant 0 : i32
    %c0_i32_1 = arith.constant 0 : i32
    return %c0_i32, %c0_i32_0 : i32, i32
  }
  func.func @transform_6(%arg0: i32, %arg1: i32) -> (i32, i32) {
    %c0_i32 = arith.constant 0 : i32
    %c0_i32_0 = arith.constant 0 : i32
    return %arg0, %c0_i32 : i32, i32
  }
}

module attributes {stable_mosaic.version = 11 : i64} {
  func.func @_matmul2d_kernel(%arg0: i32, %arg1: i32, %arg2: memref<32x16xbf16, #tpu.memory_space<vmem>>, %arg3: memref<16x72xbf16, #tpu.memory_space<vmem>>, %arg4: memref<1x72xf32, #tpu.memory_space<vmem>>, %arg5: memref<1x72xf32, #tpu.memory_space<vmem>>, %arg6: memref<32x72xbf16, #tpu.memory_space<vmem>>) attributes {dimension_semantics = [#tpu.dimension_semantics<parallel>, #tpu.dimension_semantics<parallel>], iteration_bounds = array<i64: 1, 1>, scalar_prefetch = 0 : i64, scratch_operands = 0 : i64, tpu.core_type = #tpu.core_type<tc>, window_params = [{transform_indices = @transform_0, window_bounds = array<i64: 32, 16>}, {transform_indices = @transform_1, window_bounds = array<i64: 16, 72>}, {transform_indices = @transform_2, window_bounds = array<i64: 1, 72>}, {transform_indices = @transform_3, window_bounds = array<i64: 1, 72>}, {transform_indices = @transform_4, window_bounds = array<i64: 32, 72>}]} {
    %c0 = arith.constant 0 : index
    %c0_0 = arith.constant 0 : index
    %0 = vector.load %arg2[%c0, %c0_0] : memref<32x16xbf16, #tpu.memory_space<vmem>>, vector<32x16xbf16>
    %c0_1 = arith.constant 0 : index
    %c0_2 = arith.constant 0 : index
    %1 = vector.load %arg3[%c0_1, %c0_2] : memref<16x72xbf16, #tpu.memory_space<vmem>>, vector<16x72xbf16>
    %cst = arith.constant dense<0.000000e+00> : vector<32x72xf32>
    %2 = tpu.matmul %0, %1, %cst {dimension_numbers = #tpu.dot_dimension_numbers<[1], [0], [0], [1], [0, 0, 1, 1], [], []>} : vector<32x16xbf16>, vector<16x72xbf16>, vector<32x72xf32> -> vector<32x72xf32>
    %c0_3 = arith.constant 0 : index
    %c0_4 = arith.constant 0 : index
    %3 = vector.load %arg4[%c0_3, %c0_4] : memref<1x72xf32, #tpu.memory_space<vmem>>, vector<1x72xf32>
    %4 = vector.broadcast %3 : vector<1x72xf32> to vector<32x72xf32>
    %5 = arith.mulf %2, %4 : vector<32x72xf32>
    %c0_5 = arith.constant 0 : index
    %c0_6 = arith.constant 0 : index
    %6 = vector.load %arg5[%c0_5, %c0_6] : memref<1x72xf32, #tpu.memory_space<vmem>>, vector<1x72xf32>
    %7 = vector.broadcast %6 : vector<1x72xf32> to vector<32x72xf32>
    %8 = arith.addf %5, %7 : vector<32x72xf32>
    %9 = arith.truncf %8 : vector<32x72xf32> to vector<32x72xbf16>
    %c0_7 = arith.constant 0 : index
    %c0_8 = arith.constant 0 : index
    %10 = vector.load %arg6[%c0_7, %c0_8] : memref<32x72xbf16, #tpu.memory_space<vmem>>, vector<32x72xbf16>
    tpu.vector_store %arg6[%c0_7, %c0_8], %9 {strides = array<i32>} : memref<32x72xbf16, #tpu.memory_space<vmem>>, vector<32x72xbf16>,
    return
  }
  func.func @transform_0(%arg0: i32, %arg1: i32) -> (i32, i32) {
    %c0_i32 = arith.constant 0 : i32
    %c0_i32_0 = arith.constant 0 : i32
    return %arg0, %c0_i32 : i32, i32
  }
  func.func @transform_1(%arg0: i32, %arg1: i32) -> (i32, i32) {
    %c0_i32 = arith.constant 0 : i32
    %c0_i32_0 = arith.constant 0 : i32
    return %c0_i32, %arg1 : i32, i32
  }
  func.func @transform_2(%arg0: i32, %arg1: i32) -> (i32, i32) {
    %c0_i32 = arith.constant 0 : i32
    %c0_i32_0 = arith.constant 0 : i32
    return %c0_i32, %arg1 : i32, i32
  }
  func.func @transform_3(%arg0: i32, %arg1: i32) -> (i32, i32) {
    %c0_i32 = arith.constant 0 : i32
    %c0_i32_0 = arith.constant 0 : i32
    return %c0_i32, %arg1 : i32, i32
  }
  func.func @transform_4(%arg0: i32, %arg1: i32) -> (i32, i32) {
    %c0_i32 = arith.constant 0 : i32
    return %arg0, %arg1 : i32, i32
  }
}

module attributes {stable_mosaic.version = 11 : i64} {
  func.func @_bn_relu_gap_kernel(%arg0: i32, %arg1: i32, %arg2: memref<1x1x16x8xbf16, #tpu.memory_space<vmem>>, %arg3: memref<1x1x8xf32, #tpu.memory_space<vmem>>, %arg4: memref<1x1x8xf32, #tpu.memory_space<vmem>>, %arg5: memref<1x1x1x8xf32, #tpu.memory_space<vmem>>) attributes {dimension_semantics = [#tpu.dimension_semantics<parallel>, #tpu.dimension_semantics<parallel>], iteration_bounds = array<i64: 16, 2>, scalar_prefetch = 0 : i64, scratch_operands = 0 : i64, tpu.core_type = #tpu.core_type<tc>, window_params = [{transform_indices = @transform_0, window_bounds = array<i64: 1, 1, 16, 8>}, {transform_indices = @transform_1, window_bounds = array<i64: 1, 1, 8>}, {transform_indices = @transform_2, window_bounds = array<i64: 1, 1, 8>}, {transform_indices = @transform_3, window_bounds = array<i64: 1, 1, 1, 8>}]} {
    %c0 = arith.constant 0 : index
    %c0_0 = arith.constant 0 : index
    %c0_1 = arith.constant 0 : index
    %c0_2 = arith.constant 0 : index
    %0 = vector.load %arg2[%c0, %c0_0, %c0_1, %c0_2] : memref<1x1x16x8xbf16, #tpu.memory_space<vmem>>, vector<1x1x16x8xbf16>
    %1 = vector.shape_cast %0 : vector<1x1x16x8xbf16> to vector<16x8xbf16>
    %2 = arith.extf %1 : vector<16x8xbf16> to vector<16x8xf32>
    %c0_3 = arith.constant 0 : index
    %c0_4 = arith.constant 0 : index
    %c0_5 = arith.constant 0 : index
    %3 = vector.load %arg3[%c0_3, %c0_4, %c0_5] : memref<1x1x8xf32, #tpu.memory_space<vmem>>, vector<1x1x8xf32>
    %4 = vector.shape_cast %3 : vector<1x1x8xf32> to vector<1x8xf32>
    %5 = vector.broadcast %4 : vector<1x8xf32> to vector<16x8xf32>
    %6 = arith.mulf %2, %5 : vector<16x8xf32>
    %c0_6 = arith.constant 0 : index
    %c0_7 = arith.constant 0 : index
    %c0_8 = arith.constant 0 : index
    %7 = vector.load %arg4[%c0_6, %c0_7, %c0_8] : memref<1x1x8xf32, #tpu.memory_space<vmem>>, vector<1x1x8xf32>
    %8 = vector.shape_cast %7 : vector<1x1x8xf32> to vector<1x8xf32>
    %9 = vector.broadcast %8 : vector<1x8xf32> to vector<16x8xf32>
    %10 = arith.addf %6, %9 : vector<16x8xf32>
    %cst = arith.constant 0.000000e+00 : f32
    %11 = vector.broadcast %cst : f32 to vector<16x8xf32>
    %12 = arith.maximumf %10, %11 : vector<16x8xf32>
    %cst_9 = arith.constant dense<0.000000e+00> : vector<8xf32>
    %13 = vector.multi_reduction <add>, %12, %cst_9 [0] : vector<16x8xf32> to vector<8xf32>
    %14 = vector.shape_cast %13 : vector<8xf32> to vector<1x8xf32>
    %cst_10 = arith.constant 6.250000e-02 : f32
    %15 = vector.broadcast %cst_10 : f32 to vector<1x8xf32>
    %16 = arith.mulf %14, %15 : vector<1x8xf32>
    %17 = vector.shape_cast %16 : vector<1x8xf32> to vector<1x1x1x8xf32>
    %c0_11 = arith.constant 0 : index
    %c0_12 = arith.constant 0 : index
    %c0_13 = arith.constant 0 : index
    %c0_14 = arith.constant 0 : index
    %18 = vector.load %arg5[%c0_11, %c0_12, %c0_13, %c0_14] : memref<1x1x1x8xf32, #tpu.memory_space<vmem>>, vector<1x1x1x8xf32>
    tpu.vector_store %arg5[%c0_11, %c0_12, %c0_13, %c0_14], %17 {strides = array<i32>} : memref<1x1x1x8xf32, #tpu.memory_space<vmem>>, vector<1x1x1x8xf32>,
    return
  }
  func.func @transform_0(%arg0: i32, %arg1: i32) -> (i32, i32, i32, i32) {
    %c0_i32 = arith.constant 0 : i32
    %c0_i32_0 = arith.constant 0 : i32
    %c0_i32_1 = arith.constant 0 : i32
    return %arg0, %arg1, %c0_i32, %c0_i32_0 : i32, i32, i32, i32
  }
  func.func @transform_1(%arg0: i32, %arg1: i32) -> (i32, i32, i32) {
    %c0_i32 = arith.constant 0 : i32
    %c0_i32_0 = arith.constant 0 : i32
    %c0_i32_1 = arith.constant 0 : i32
    return %arg0, %c0_i32, %c0_i32_0 : i32, i32, i32
  }
  func.func @transform_2(%arg0: i32, %arg1: i32) -> (i32, i32, i32) {
    %c0_i32 = arith.constant 0 : i32
    %c0_i32_0 = arith.constant 0 : i32
    %c0_i32_1 = arith.constant 0 : i32
    return %arg0, %c0_i32, %c0_i32_0 : i32, i32, i32
  }
  func.func @transform_3(%arg0: i32, %arg1: i32) -> (i32, i32, i32, i32) {
    %c0_i32 = arith.constant 0 : i32
    %c0_i32_0 = arith.constant 0 : i32
    %c0_i32_1 = arith.constant 0 : i32
    return %arg0, %arg1, %c0_i32, %c0_i32_0 : i32, i32, i32, i32
  }
}

module attributes {stable_mosaic.version = 11 : i64} {
  func.func @_chunked_matmul_kernel(%arg0: i32, %arg1: i32, %arg2: memref<3x32x8xbf16, #tpu.memory_space<vmem>>, %arg3: memref<3x8x16xbf16, #tpu.memory_space<vmem>>, %arg4: memref<3x1x8xf32, #tpu.memory_space<vmem>>, %arg5: memref<3x1x8xf32, #tpu.memory_space<vmem>>, %arg6: memref<1x16xf32, #tpu.memory_space<vmem>>, %arg7: memref<1x16xf32, #tpu.memory_space<vmem>>, %arg8: memref<32x16xbf16, #tpu.memory_space<vmem>>, %arg9: memref<32x16xf32, #tpu.memory_space<vmem>>) attributes {dimension_semantics = [#tpu.dimension_semantics<parallel>, #tpu.dimension_semantics<arbitrary>], iteration_bounds = array<i64: 1, 1>, scalar_prefetch = 0 : i64, scratch_operands = 1 : i64, tpu.core_type = #tpu.core_type<tc>, window_params = [{transform_indices = @transform_0, window_bounds = array<i64: 3, 32, 8>}, {transform_indices = @transform_1, window_bounds = array<i64: 3, 8, 16>}, {transform_indices = @transform_2, window_bounds = array<i64: 3, 1, 8>}, {transform_indices = @transform_3, window_bounds = array<i64: 3, 1, 8>}, {pipeline_mode = #tpu.pipeline_mode<synchronous>, transform_indices = @transform_4, window_bounds = array<i64: 1, 16>}, {pipeline_mode = #tpu.pipeline_mode<synchronous>, transform_indices = @transform_5, window_bounds = array<i64: 1, 16>}, {transform_indices = @transform_6, window_bounds = array<i64: 32, 16>}]} {
    %c0 = arith.constant 0 : index
    %c0_0 = arith.constant 0 : index
    %c0_1 = arith.constant 0 : index
    %0 = vector.load %arg2[%c0, %c0_0, %c0_1] : memref<3x32x8xbf16, #tpu.memory_space<vmem>>, vector<1x32x8xbf16>
    %1 = vector.shape_cast %0 : vector<1x32x8xbf16> to vector<32x8xbf16>
    %2 = arith.extf %1 : vector<32x8xbf16> to vector<32x8xf32>
    %c0_2 = arith.constant 0 : index
    %c0_3 = arith.constant 0 : index
    %c0_4 = arith.constant 0 : index
    %3 = vector.load %arg4[%c0_2, %c0_3, %c0_4] : memref<3x1x8xf32, #tpu.memory_space<vmem>>, vector<1x1x8xf32>
    %4 = vector.shape_cast %3 : vector<1x1x8xf32> to vector<1x8xf32>
    %5 = vector.broadcast %4 : vector<1x8xf32> to vector<32x8xf32>
    %6 = arith.mulf %2, %5 : vector<32x8xf32>
    %c0_5 = arith.constant 0 : index
    %c0_6 = arith.constant 0 : index
    %c0_7 = arith.constant 0 : index
    %7 = vector.load %arg5[%c0_5, %c0_6, %c0_7] : memref<3x1x8xf32, #tpu.memory_space<vmem>>, vector<1x1x8xf32>
    %8 = vector.shape_cast %7 : vector<1x1x8xf32> to vector<1x8xf32>
    %9 = vector.broadcast %8 : vector<1x8xf32> to vector<32x8xf32>
    %10 = arith.addf %6, %9 : vector<32x8xf32>
    %cst = arith.constant 0.000000e+00 : f32
    %11 = vector.broadcast %cst : f32 to vector<32x8xf32>
    %12 = arith.maximumf %10, %11 : vector<32x8xf32>
    %13 = arith.truncf %12 : vector<32x8xf32> to vector<32x8xbf16>
    %c0_8 = arith.constant 0 : index
    %c0_9 = arith.constant 0 : index
    %c0_10 = arith.constant 0 : index
    %14 = vector.load %arg3[%c0_8, %c0_9, %c0_10] : memref<3x8x16xbf16, #tpu.memory_space<vmem>>, vector<1x8x16xbf16>
    %15 = vector.shape_cast %14 : vector<1x8x16xbf16> to vector<8x16xbf16>
    %cst_11 = arith.constant dense<0.000000e+00> : vector<32x16xf32>
    %16 = tpu.matmul %13, %15, %cst_11 {dimension_numbers = #tpu.dot_dimension_numbers<[1], [0], [0], [1], [0, 0, 1, 1], [], []>} : vector<32x8xbf16>, vector<8x16xbf16>, vector<32x16xf32> -> vector<32x16xf32>
    %c1 = arith.constant 1 : index
    %c0_12 = arith.constant 0 : index
    %c0_13 = arith.constant 0 : index
    %17 = vector.load %arg2[%c1, %c0_12, %c0_13] : memref<3x32x8xbf16, #tpu.memory_space<vmem>>, vector<1x32x8xbf16>
    %18 = vector.shape_cast %17 : vector<1x32x8xbf16> to vector<32x8xbf16>
    %19 = arith.extf %18 : vector<32x8xbf16> to vector<32x8xf32>
    %c1_14 = arith.constant 1 : index
    %c0_15 = arith.constant 0 : index
    %c0_16 = arith.constant 0 : index
    %20 = vector.load %arg4[%c1_14, %c0_15, %c0_16] : memref<3x1x8xf32, #tpu.memory_space<vmem>>, vector<1x1x8xf32>
    %21 = vector.shape_cast %20 : vector<1x1x8xf32> to vector<1x8xf32>
    %22 = vector.broadcast %21 : vector<1x8xf32> to vector<32x8xf32>
    %23 = arith.mulf %19, %22 : vector<32x8xf32>
    %c1_17 = arith.constant 1 : index
    %c0_18 = arith.constant 0 : index
    %c0_19 = arith.constant 0 : index
    %24 = vector.load %arg5[%c1_17, %c0_18, %c0_19] : memref<3x1x8xf32, #tpu.memory_space<vmem>>, vector<1x1x8xf32>
    %25 = vector.shape_cast %24 : vector<1x1x8xf32> to vector<1x8xf32>
    %26 = vector.broadcast %25 : vector<1x8xf32> to vector<32x8xf32>
    %27 = arith.addf %23, %26 : vector<32x8xf32>
    %cst_20 = arith.constant 0.000000e+00 : f32
    %28 = vector.broadcast %cst_20 : f32 to vector<32x8xf32>
    %29 = arith.maximumf %27, %28 : vector<32x8xf32>
    %30 = arith.truncf %29 : vector<32x8xf32> to vector<32x8xbf16>
    %c1_21 = arith.constant 1 : index
    %c0_22 = arith.constant 0 : index
    %c0_23 = arith.constant 0 : index
    %31 = vector.load %arg3[%c1_21, %c0_22, %c0_23] : memref<3x8x16xbf16, #tpu.memory_space<vmem>>, vector<1x8x16xbf16>
    %32 = vector.shape_cast %31 : vector<1x8x16xbf16> to vector<8x16xbf16>
    %cst_24 = arith.constant dense<0.000000e+00> : vector<32x16xf32>
    %33 = tpu.matmul %30, %32, %cst_24 {dimension_numbers = #tpu.dot_dimension_numbers<[1], [0], [0], [1], [0, 0, 1, 1], [], []>} : vector<32x8xbf16>, vector<8x16xbf16>, vector<32x16xf32> -> vector<32x16xf32>
    %34 = arith.addf %16, %33 : vector<32x16xf32>
    %c2 = arith.constant 2 : index
    %c0_25 = arith.constant 0 : index
    %c0_26 = arith.constant 0 : index
    %35 = vector.load %arg2[%c2, %c0_25, %c0_26] : memref<3x32x8xbf16, #tpu.memory_space<vmem>>, vector<1x32x8xbf16>
    %36 = vector.shape_cast %35 : vector<1x32x8xbf16> to vector<32x8xbf16>
    %37 = arith.extf %36 : vector<32x8xbf16> to vector<32x8xf32>
    %c2_27 = arith.constant 2 : index
    %c0_28 = arith.constant 0 : index
    %c0_29 = arith.constant 0 : index
    %38 = vector.load %arg4[%c2_27, %c0_28, %c0_29] : memref<3x1x8xf32, #tpu.memory_space<vmem>>, vector<1x1x8xf32>
    %39 = vector.shape_cast %38 : vector<1x1x8xf32> to vector<1x8xf32>
    %40 = vector.broadcast %39 : vector<1x8xf32> to vector<32x8xf32>
    %41 = arith.mulf %37, %40 : vector<32x8xf32>
    %c2_30 = arith.constant 2 : index
    %c0_31 = arith.constant 0 : index
    %c0_32 = arith.constant 0 : index
    %42 = vector.load %arg5[%c2_30, %c0_31, %c0_32] : memref<3x1x8xf32, #tpu.memory_space<vmem>>, vector<1x1x8xf32>
    %43 = vector.shape_cast %42 : vector<1x1x8xf32> to vector<1x8xf32>
    %44 = vector.broadcast %43 : vector<1x8xf32> to vector<32x8xf32>
    %45 = arith.addf %41, %44 : vector<32x8xf32>
    %cst_33 = arith.constant 0.000000e+00 : f32
    %46 = vector.broadcast %cst_33 : f32 to vector<32x8xf32>
    %47 = arith.maximumf %45, %46 : vector<32x8xf32>
    %48 = arith.truncf %47 : vector<32x8xf32> to vector<32x8xbf16>
    %c2_34 = arith.constant 2 : index
    %c0_35 = arith.constant 0 : index
    %c0_36 = arith.constant 0 : index
    %49 = vector.load %arg3[%c2_34, %c0_35, %c0_36] : memref<3x8x16xbf16, #tpu.memory_space<vmem>>, vector<1x8x16xbf16>
    %50 = vector.shape_cast %49 : vector<1x8x16xbf16> to vector<8x16xbf16>
    %cst_37 = arith.constant dense<0.000000e+00> : vector<32x16xf32>
    %51 = tpu.matmul %48, %50, %cst_37 {dimension_numbers = #tpu.dot_dimension_numbers<[1], [0], [0], [1], [0, 0, 1, 1], [], []>} : vector<32x8xbf16>, vector<8x16xbf16>, vector<32x16xf32> -> vector<32x16xf32>
    %52 = arith.addf %34, %51 : vector<32x16xf32>
    %c0_i32 = arith.constant 0 : i32
    %53 = arith.cmpi eq, %arg1, %c0_i32 : i32
    %54 = arith.extui %53 : i1 to i32
    %c0_i32_38 = arith.constant 0 : i32
    %55 = arith.cmpi ne, %54, %c0_i32_38 : i32
    scf.if %55 {
      %c0_43 = arith.constant 0 : index
      %c0_44 = arith.constant 0 : index
      %62 = vector.load %arg9[%c0_43, %c0_44] : memref<32x16xf32, #tpu.memory_space<vmem>>, vector<32x16xf32>
      tpu.vector_store %arg9[%c0_43, %c0_44], %52 {strides = array<i32>} : memref<32x16xf32, #tpu.memory_space<vmem>>, vector<32x16xf32>,
    } else {
    }
    %c0_i32_39 = arith.constant 0 : i32
    %56 = arith.cmpi sgt, %arg1, %c0_i32_39 : i32
    %57 = arith.extui %56 : i1 to i32
    %c0_i32_40 = arith.constant 0 : i32
    %58 = arith.cmpi ne, %57, %c0_i32_40 : i32
    scf.if %58 {
      %c0_43 = arith.constant 0 : index
      %c0_44 = arith.constant 0 : index
      %62 = vector.load %arg9[%c0_43, %c0_44] : memref<32x16xf32, #tpu.memory_space<vmem>>, vector<32x16xf32>
      %63 = arith.addf %62, %52 : vector<32x16xf32>
      %c0_45 = arith.constant 0 : index
      %c0_46 = arith.constant 0 : index
      %64 = vector.load %arg9[%c0_45, %c0_46] : memref<32x16xf32, #tpu.memory_space<vmem>>, vector<32x16xf32>
      tpu.vector_store %arg9[%c0_45, %c0_46], %63 {strides = array<i32>} : memref<32x16xf32, #tpu.memory_space<vmem>>, vector<32x16xf32>,
    } else {
    }
    %c0_i32_41 = arith.constant 0 : i32
    %59 = arith.cmpi eq, %arg1, %c0_i32_41 : i32
    %60 = arith.extui %59 : i1 to i32
    %c0_i32_42 = arith.constant 0 : i32
    %61 = arith.cmpi ne, %60, %c0_i32_42 : i32
    scf.if %61 {
      %c0_43 = arith.constant 0 : index
      %c0_44 = arith.constant 0 : index
      %62 = vector.load %arg9[%c0_43, %c0_44] : memref<32x16xf32, #tpu.memory_space<vmem>>, vector<32x16xf32>
      %c0_45 = arith.constant 0 : index
      %c0_46 = arith.constant 0 : index
      %63 = vector.load %arg6[%c0_45, %c0_46] : memref<1x16xf32, #tpu.memory_space<vmem>>, vector<1x16xf32>
      %64 = vector.broadcast %63 : vector<1x16xf32> to vector<32x16xf32>
      %65 = arith.mulf %62, %64 : vector<32x16xf32>
      %c0_47 = arith.constant 0 : index
      %c0_48 = arith.constant 0 : index
      %66 = vector.load %arg7[%c0_47, %c0_48] : memref<1x16xf32, #tpu.memory_space<vmem>>, vector<1x16xf32>
      %67 = vector.broadcast %66 : vector<1x16xf32> to vector<32x16xf32>
      %68 = arith.addf %65, %67 : vector<32x16xf32>
      %cst_49 = arith.constant 0.000000e+00 : f32
      %69 = vector.broadcast %cst_49 : f32 to vector<32x16xf32>
      %70 = arith.maximumf %68, %69 : vector<32x16xf32>
      %71 = arith.truncf %70 : vector<32x16xf32> to vector<32x16xbf16>
      %c0_50 = arith.constant 0 : index
      %c0_51 = arith.constant 0 : index
      %72 = vector.load %arg8[%c0_50, %c0_51] : memref<32x16xbf16, #tpu.memory_space<vmem>>, vector<32x16xbf16>
      tpu.vector_store %arg8[%c0_50, %c0_51], %71 {strides = array<i32>} : memref<32x16xbf16, #tpu.memory_space<vmem>>, vector<32x16xbf16>,
    } else {
    }
    return
  }
  func.func @transform_0(%arg0: i32, %arg1: i32) -> (i32, i32, i32) {
    %c0_i32 = arith.constant 0 : i32
    %c0_i32_0 = arith.constant 0 : i32
    return %arg1, %arg0, %c0_i32 : i32, i32, i32
  }
  func.func @transform_1(%arg0: i32, %arg1: i32) -> (i32, i32, i32) {
    %c0_i32 = arith.constant 0 : i32
    %c0_i32_0 = arith.constant 0 : i32
    %c0_i32_1 = arith.constant 0 : i32
    return %arg1, %c0_i32, %c0_i32_0 : i32, i32, i32
  }
  func.func @transform_2(%arg0: i32, %arg1: i32) -> (i32, i32, i32) {
    %c0_i32 = arith.constant 0 : i32
    %c0_i32_0 = arith.constant 0 : i32
    %c0_i32_1 = arith.constant 0 : i32
    return %arg1, %c0_i32, %c0_i32_0 : i32, i32, i32
  }
  func.func @transform_3(%arg0: i32, %arg1: i32) -> (i32, i32, i32) {
    %c0_i32 = arith.constant 0 : i32
    %c0_i32_0 = arith.constant 0 : i32
    %c0_i32_1 = arith.constant 0 : i32
    return %arg1, %c0_i32, %c0_i32_0 : i32, i32, i32
  }
  func.func @transform_4(%arg0: i32, %arg1: i32) -> (i32, i32) {
    %c0_i32 = arith.constant 0 : i32
    %c0_i32_0 = arith.constant 0 : i32
    %c0_i32_1 = arith.constant 0 : i32
    return %c0_i32, %c0_i32_0 : i32, i32
  }
  func.func @transform_5(%arg0: i32, %arg1: i32) -> (i32, i32) {
    %c0_i32 = arith.constant 0 : i32
    %c0_i32_0 = arith.constant 0 : i32
    %c0_i32_1 = arith.constant 0 : i32
    return %c0_i32, %c0_i32_0 : i32, i32
  }
  func.func @transform_6(%arg0: i32, %arg1: i32) -> (i32, i32) {
    %c0_i32 = arith.constant 0 : i32
    %c0_i32_0 = arith.constant 0 : i32
    return %arg0, %c0_i32 : i32, i32
  }
}

module attributes {stable_mosaic.version = 11 : i64} {
  func.func @_matmul2d_kernel(%arg0: i32, %arg1: i32, %arg2: memref<2x128xbf16, #tpu.memory_space<vmem>>, %arg3: memref<128x10xbf16, #tpu.memory_space<vmem>>, %arg4: memref<1x10xf32, #tpu.memory_space<vmem>>, %arg5: memref<1x10xf32, #tpu.memory_space<vmem>>, %arg6: memref<2x10xf32, #tpu.memory_space<vmem>>) attributes {dimension_semantics = [#tpu.dimension_semantics<parallel>, #tpu.dimension_semantics<parallel>], iteration_bounds = array<i64: 1, 1>, scalar_prefetch = 0 : i64, scratch_operands = 0 : i64, tpu.core_type = #tpu.core_type<tc>, window_params = [{transform_indices = @transform_0, window_bounds = array<i64: 2, 128>}, {transform_indices = @transform_1, window_bounds = array<i64: 128, 10>}, {transform_indices = @transform_2, window_bounds = array<i64: 1, 10>}, {transform_indices = @transform_3, window_bounds = array<i64: 1, 10>}, {transform_indices = @transform_4, window_bounds = array<i64: 2, 10>}]} {
    %c0 = arith.constant 0 : index
    %c0_0 = arith.constant 0 : index
    %0 = vector.load %arg2[%c0, %c0_0] : memref<2x128xbf16, #tpu.memory_space<vmem>>, vector<2x128xbf16>
    %c0_1 = arith.constant 0 : index
    %c0_2 = arith.constant 0 : index
    %1 = vector.load %arg3[%c0_1, %c0_2] : memref<128x10xbf16, #tpu.memory_space<vmem>>, vector<128x10xbf16>
    %cst = arith.constant dense<0.000000e+00> : vector<2x10xf32>
    %2 = tpu.matmul %0, %1, %cst {dimension_numbers = #tpu.dot_dimension_numbers<[1], [0], [0], [1], [0, 0, 1, 1], [], []>} : vector<2x128xbf16>, vector<128x10xbf16>, vector<2x10xf32> -> vector<2x10xf32>
    %c0_3 = arith.constant 0 : index
    %c0_4 = arith.constant 0 : index
    %3 = vector.load %arg4[%c0_3, %c0_4] : memref<1x10xf32, #tpu.memory_space<vmem>>, vector<1x10xf32>
    %4 = vector.broadcast %3 : vector<1x10xf32> to vector<2x10xf32>
    %5 = arith.mulf %2, %4 : vector<2x10xf32>
    %c0_5 = arith.constant 0 : index
    %c0_6 = arith.constant 0 : index
    %6 = vector.load %arg5[%c0_5, %c0_6] : memref<1x10xf32, #tpu.memory_space<vmem>>, vector<1x10xf32>
    %7 = vector.broadcast %6 : vector<1x10xf32> to vector<2x10xf32>
    %8 = arith.addf %5, %7 : vector<2x10xf32>
    %c0_7 = arith.constant 0 : index
    %c0_8 = arith.constant 0 : index
    %9 = vector.load %arg6[%c0_7, %c0_8] : memref<2x10xf32, #tpu.memory_space<vmem>>, vector<2x10xf32>
    tpu.vector_store %arg6[%c0_7, %c0_8], %8 {strides = array<i32>} : memref<2x10xf32, #tpu.memory_space<vmem>>, vector<2x10xf32>,
    return
  }
  func.func @transform_0(%arg0: i32, %arg1: i32) -> (i32, i32) {
    %c0_i32 = arith.constant 0 : i32
    %c0_i32_0 = arith.constant 0 : i32
    return %arg0, %c0_i32 : i32, i32
  }
  func.func @transform_1(%arg0: i32, %arg1: i32) -> (i32, i32) {
    %c0_i32 = arith.constant 0 : i32
    %c0_i32_0 = arith.constant 0 : i32
    return %c0_i32, %arg1 : i32, i32
  }
  func.func @transform_2(%arg0: i32, %arg1: i32) -> (i32, i32) {
    %c0_i32 = arith.constant 0 : i32
    %c0_i32_0 = arith.constant 0 : i32
    return %c0_i32, %arg1 : i32, i32
  }
  func.func @transform_3(%arg0: i32, %arg1: i32) -> (i32, i32) {
    %c0_i32 = arith.constant 0 : i32
    %c0_i32_0 = arith.constant 0 : i32
    return %c0_i32, %arg1 : i32, i32
  }
  func.func @transform_4(%arg0: i32, %arg1: i32) -> (i32, i32) {
    %c0_i32 = arith.constant 0 : i32
    return %arg0, %arg1 : i32, i32
  }
}

</mosaic_0001>

<bundles_post_ra>
// kernel: densenet_forward.12
= control target key start
LH: loop header
LB: loop body
LE: loop exit
PB: predicated region body
PF: predicated region fallthrough
CT: control target
= control target key end

     0   :  { %s1419_s15 = smov 0   ;;  %s1421_s16 = smov 0   ;;  %s1676_s0 = inlined_call_operand.vmem [shape: bf16[512,147], index: 0, kind: input, shape index: {}]   ;;  %s1677_s1 = inlined_call_operand.vmem [shape: bf16[147,16], index: 1, kind: input, shape index: {}]   ;;  %s1678_s2 = inlined_call_operand.vmem [shape: f32[1,16], index: 2, kind: input, shape index: {}]   ;;  %s1679_s3 = inlined_call_operand.vmem [shape: f32[1,16], index: 3, kind: input, shape index: {}]   ;;  %s1680_s4 = inlined_call_operand.vmem [shape: bf16[512,16], index: 4, kind: output, shape index: {}]  }
   0x1   :  { %s1423_s17 = smov 0  }
   0x2 LB: > { %s26_s18 = sadd.s32 1, %s1386_s16  ;;  %p1131_p0 = scmp.ge.s32.totalorder %s1390_s17, 1  ;;  %s1390_s17 = sphi %s1423_s17, %s14_s17   ;;  %s1386_s16 = sphi %s1421_s16, %s1682_s16   ;;  %s1382_s15 = sphi %s1419_s15, %s1681_s15  }
   0x3   : > { %p28_p1 = scmp.ge.s32.totalorder %s26_s18, 2  ;;  %p203_p2 = scmp.lt.s32.totalorder %s1390_s17, 3 }
   0x5   : > { %s1684_s18 = smov (%p28_p1, %s26_s18), 0  ;;  %p204_p3 = pnand %p1131_p0, %p203_p2 }
   0x6   : > { %s1132_s25 = sshll.u32 (!%p204_p3), %s1382_s15, 5 }
   0x7   : > { %207 = sbr.rel (%p204_p3) target bundleno = 315 (0x13b), region = 36  ;;  %p244_p4 = scmp.lt.s32.totalorder (!%p204_p3), %s1132_s25, 63 }
   0xc   : > { %v1310_v0 = vld [vmem:[%s1677_s1 + $0x38] sm:$0xff]   ;;  %v1392_v1 = vmov 0   ;;  %v1311_v2 = vld [vmem:[%s1677_s1 + $0x30] sm:$0xff]   ;;  %v1312_v3 = vld [vmem:[%s1677_s1 + $0x28] sm:$0xff]   ;;  %s1686_s25 = smov (!%p244_p4, %s1132_s25), 63  ;;  %vm522_vm0 = vcmask 154624  }
   0xd   : > { %578 = vmatprep.subr.bf16.mxu0 %v1392_v1  ;;  %1264 = vmatprep.subr.bf16.mxu1 %v1392_v1  ;;  %v1313_v4 = vld [vmem:[%s1677_s1 + $0x20] sm:$0xff]   ;;  %s1231_s28 = sshll.u32 %s1686_s25, 3  ;;  %v1314_v5 = vld [vmem:[%s1677_s1 + $0x18] sm:$0xff]   ;;  %v1315_v8 = vld [vmem:[%s1677_s1 + $0x10] sm:$0xff]   ;;  %vm571_vm1 = vcmask 1040384   ;;  %vm572_vm2 = vcmask 1041408  }
   0xe   : > { %579 = vmatpush1.bf16.msra.mxu0 %v1310_v0  ;;  %1274 = vmatpush1.bf16.msra.mxu1 %v1310_v0  ;;  %s1455_s5 = scalar_lea.vmem %s1676_s0, %s1231_s28  ;;  %v1316_v9 = vld [vmem:[%s1677_s1 + $0x8] sm:$0xff]   ;;  %v1393_v10 = vmov 65535   ;;  %v1317_v12 = vld [vmem:[%s1677_s1] sm:$0xff]   ;;  %s1136_s26 = sshll.u32 %s1686_s25, 2  ;;  %vm977_vm3 = vcmask 125952  }
   0xf   : > { %580 = vmatprep.subr.bf16.mxu0 %v1392_v1  ;;  %1265 = vmatprep.subr.bf16.mxu1 %v1392_v1  ;;  %v1322_v6 = vld [vmem:[%s1455_s5 + $0x4] ss:$8 sps:$4 sm:$0xff]   ;;  %v573_v11 = vsel %vm571_vm1, 4294967295, %v1393_v10  ;;  %v1318_v13 = vld [vmem:[%s1677_s1 + $0x48] ss:$0 sps:$4 sm:$0x33]   ;;  %s1543_s29 = scalar_lea.vmem %s1680_s4, %s1136_s26 }
  0x10   : > { %v1325_v7 = vld [vmem:[%s1455_s5 + $0x84] ss:$8 sps:$4 sm:$0xff]   ;;  %1179 = vmatprep.mubr.msk.bf16.mxu0 %vm522_vm0, %v1322_v6  ;;  %v574_v14 = vsel %vm572_vm2, %v573_v11, 0  ;;  %v1320_v17 = vld [vmem:[%s1455_s5] ss:$8 sps:$4 sm:$0xff]  }
  0x11   : > { %1187 = vmatprep.mubr.msk.bf16.mxu1 %vm522_vm0, %v1325_v7  ;;  %v576_v15 = vand.u32 %v1318_v13, %v574_v14  ;;  %v1319_v16 = vld [vmem:[%s1677_s1 + $0x40] sm:$0xff]   ;;  %v1326_v19 = vld [vmem:[%s1455_s5 + $0x14] ss:$8 sps:$4 sm:$0xff]   ;;  %v1330_v21 = vld [vmem:[%s1455_s5 + $0x10] ss:$8 sps:$4 sm:$0xff]  }
  0x12   : > { %581 = vmatpush1.bf16.msra.mxu0 %v1311_v2  ;;  %1275 = vmatpush1.bf16.msra.mxu1 %v1311_v2  ;;  %v1323_v18 = vld [vmem:[%s1455_s5 + $0x80] ss:$8 sps:$4 sm:$0xff]   ;;  %v1328_v20 = vld [vmem:[%s1455_s5 + $0x94] ss:$8 sps:$4 sm:$0xff]   ;;  %v1331_v22 = vld [vmem:[%s1455_s5 + $0x90] ss:$8 sps:$4 sm:$0xff]  }
  0x13   : > { %582 = vmatprep.subr.bf16.mxu0 %v1392_v1  ;;  %1266 = vmatprep.subr.bf16.mxu1 %v1392_v1  ;;  %v1332_v23 = vld [vmem:[%s1455_s5 + $0x24] ss:$8 sps:$4 sm:$0xff]   ;;  %v1336_v25 = vld [vmem:[%s1455_s5 + $0x20] ss:$8 sps:$4 sm:$0xff]   ;;  %v1338_v27 = vld [vmem:[%s1455_s5 + $0x34] ss:$8 sps:$4 sm:$0xff]  }
  0x14   : > { %v1334_v24 = vld [vmem:[%s1455_s5 + $0xa4] ss:$8 sps:$4 sm:$0xff]   ;;  %v1337_v26 = vld [vmem:[%s1455_s5 + $0xa0] ss:$8 sps:$4 sm:$0xff]   ;;  %v1340_v28 = vld [vmem:[%s1455_s5 + $0xb4] ss:$8 sps:$4 sm:$0xff]  }
  0x15   : > { %v1342_v29 = vld [vmem:[%s1455_s5 + $0x30] ss:$8 sps:$4 sm:$0xff]   ;;  %v1344_v31 = vld [vmem:[%s1455_s5 + $0x44] ss:$8 sps:$4 sm:$0xff]   ;;  %v1348_v33 = vld [vmem:[%s1455_s5 + $0x40] ss:$8 sps:$4 sm:$0xff]  }
  0x16   : > { %583 = vmatpush1.bf16.msra.mxu0 %v1312_v3  ;;  %1276 = vmatpush1.bf16.msra.mxu1 %v1312_v3  ;;  %v1343_v30 = vld [vmem:[%s1455_s5 + $0xb0] ss:$8 sps:$4 sm:$0xff]   ;;  %v1346_v32 = vld [vmem:[%s1455_s5 + $0xc4] ss:$8 sps:$4 sm:$0xff]   ;;  %v1349_v34 = vld [vmem:[%s1455_s5 + $0xc0] ss:$8 sps:$4 sm:$0xff]  }
  0x17   : > { %584 = vmatprep.subr.bf16.mxu0 %v1392_v1  ;;  %1267 = vmatprep.subr.bf16.mxu1 %v1392_v1  ;;  %v1350_v35 = vld [vmem:[%s1455_s5 + $0x54] ss:$8 sps:$4 sm:$0xff]   ;;  %v1354_v37 = vld [vmem:[%s1455_s5 + $0x50] ss:$8 sps:$4 sm:$0xff]   ;;  %v1356_v39 = vld [vmem:[%s1455_s5 + $0x64] ss:$8 sps:$4 sm:$0xff]  }
  0x18   : > { %v1352_v36 = vld [vmem:[%s1455_s5 + $0xd4] ss:$8 sps:$4 sm:$0xff]   ;;  %v1355_v38 = vld [vmem:[%s1455_s5 + $0xd0] ss:$8 sps:$4 sm:$0xff]   ;;  %v1358_v40 = vld [vmem:[%s1455_s5 + $0xe4] ss:$8 sps:$4 sm:$0xff]  }
  0x19   : > { %v1360_v41 = vld [vmem:[%s1455_s5 + $0x60] ss:$8 sps:$4 sm:$0xff]   ;;  %v1362_v43 = vld [vmem:[%s1455_s5 + $0x74] ss:$8 sps:$4 sm:$0xff]   ;;  %v1366_v45 = vld [vmem:[%s1455_s5 + $0x70] ss:$8 sps:$4 sm:$0xff]  }
  0x1a   : > { %585 = vmatpush1.bf16.msra.mxu0 %v1313_v4  ;;  %1277 = vmatpush1.bf16.msra.mxu1 %v1313_v4  ;;  %v1361_v42 = vld [vmem:[%s1455_s5 + $0xe0] ss:$8 sps:$4 sm:$0xff]   ;;  %v1364_v44 = vld [vmem:[%s1455_s5 + $0xf4] ss:$8 sps:$4 sm:$0xff]   ;;  %v1367_v46 = vld [vmem:[%s1455_s5 + $0xf0] ss:$8 sps:$4 sm:$0xff]  }
  0x1b   : > { %586 = vmatprep.subr.bf16.mxu0 %v1392_v1  ;;  %1268 = vmatprep.subr.bf16.mxu1 %v1392_v1  ;;  %v1526_v47 = vld [vmem:[%s1678_s2] ss:$0 sm:$0xff] }
  0x1c   : > { %v1531_v49 = vld [vmem:[%s1679_s3] ss:$0 sm:$0xff] }
  0x1e   : > { %587 = vmatpush1.bf16.msra.mxu0 %v1314_v5  ;;  %1278 = vmatpush1.bf16.msra.mxu1 %v1314_v5 }
  0x1f   : > { %588 = vmatprep.subr.bf16.mxu0 %v1392_v1  ;;  %1269 = vmatprep.subr.bf16.mxu1 %v1392_v1 }
  0x22   : > { %589 = vmatpush1.bf16.msra.mxu0 %v1315_v8  ;;  %1279 = vmatpush1.bf16.msra.mxu1 %v1315_v8 }
  0x23   : > { %590 = vmatprep.subr.bf16.mxu0 %v1392_v1  ;;  %1270 = vmatprep.subr.bf16.mxu1 %v1392_v1 }
  0x26   : > { %591 = vmatpush1.bf16.msra.mxu0 %v1316_v9  ;;  %1280 = vmatpush1.bf16.msra.mxu1 %v1316_v9 }
  0x27   : > { %592 = vmatprep.subr.bf16.mxu0 %v1392_v1  ;;  %1271 = vmatprep.subr.bf16.mxu1 %v1392_v1 }
  0x2a   : > { %593 = vmatpush1.bf16.msra.mxu0 %v1317_v12  ;;  %1281 = vmatpush1.bf16.msra.mxu1 %v1317_v12 }
  0x2b   : > { %606 = vmatprep.subr.bf16.mxu0 %v1392_v1  ;;  %1272 = vmatprep.subr.bf16.mxu1 %v1392_v1 }
  0x2e   : > { %607 = vmatpush2.bf16.msra.mxu0 %v576_v15  ;;  %1282 = vmatpush2.bf16.msra.mxu1 %v576_v15 }
  0x2f   : > { %608 = vmatprep.subr.bf16.mxu0 %v1392_v1  ;;  %1273 = vmatprep.subr.bf16.mxu1 %v1392_v1 }
  0x32   : > { %609 = vmatpush2.bf16.msra.mxu0 %v1319_v16  ;;  %1283 = vmatpush2.bf16.msra.mxu1 %v1319_v16 }
  0x35   : > { %611 = vmatmul.mubr.bf16.vlgmr.msra.gmra.mxu0 %v1320_v17  ;;  %675 = vmatmul.mubr.bf16.vlgmr.msra.gmra.mxu1 %v1323_v18 }
  0x36   : > { %1180 = vmatprep.mubr.msk.bf16.mxu0 %vm522_vm0, %v1326_v19  ;;  %1188 = vmatprep.mubr.msk.bf16.mxu1 %vm522_vm0, %v1328_v20 }
  0x3d   : > { %619 = vmatmul.mubr.bf16.gmra.mxu0 %v1330_v21  ;;  %683 = vmatmul.mubr.bf16.gmra.mxu1 %v1331_v22 }
  0x3e   : > { %1181 = vmatprep.mubr.msk.bf16.mxu0 %vm522_vm0, %v1332_v23  ;;  %1189 = vmatprep.mubr.msk.bf16.mxu1 %vm522_vm0, %v1334_v24 }
  0x45   : > { %627 = vmatmul.mubr.bf16.gmra.mxu0 %v1336_v25  ;;  %691 = vmatmul.mubr.bf16.gmra.mxu1 %v1337_v26 }
  0x46   : > { %1182 = vmatprep.mubr.msk.bf16.mxu0 %vm522_vm0, %v1338_v27  ;;  %1190 = vmatprep.mubr.msk.bf16.mxu1 %vm522_vm0, %v1340_v28 }
  0x4d   : > { %635 = vmatmul.mubr.bf16.gmra.mxu0 %v1342_v29  ;;  %699 = vmatmul.mubr.bf16.gmra.mxu1 %v1343_v30 }
  0x4e   : > { %1183 = vmatprep.mubr.msk.bf16.mxu0 %vm522_vm0, %v1344_v31  ;;  %1191 = vmatprep.mubr.msk.bf16.mxu1 %vm522_vm0, %v1346_v32 }
  0x55   : > { %643 = vmatmul.mubr.bf16.gmra.mxu0 %v1348_v33  ;;  %707 = vmatmul.mubr.bf16.gmra.mxu1 %v1349_v34 }
  0x56   : > { %1184 = vmatprep.mubr.msk.bf16.mxu0 %vm522_vm0, %v1350_v35  ;;  %1192 = vmatprep.mubr.msk.bf16.mxu1 %vm522_vm0, %v1352_v36 }
  0x5d   : > { %651 = vmatmul.mubr.bf16.gmra.mxu0 %v1354_v37  ;;  %715 = vmatmul.mubr.bf16.gmra.mxu1 %v1355_v38 }
  0x5e   : > { %1185 = vmatprep.mubr.msk.bf16.mxu0 %vm522_vm0, %v1356_v39  ;;  %1193 = vmatprep.mubr.msk.bf16.mxu1 %vm522_vm0, %v1358_v40 }
  0x65   : > { %659 = vmatmul.mubr.bf16.gmra.mxu0 %v1360_v41  ;;  %723 = vmatmul.mubr.bf16.gmra.mxu1 %v1361_v42 }
  0x66   : > { %1186 = vmatprep.mubr.msk.bf16.mxu0 %vm522_vm0, %v1362_v43  ;;  %1194 = vmatprep.mubr.msk.bf16.mxu1 %vm522_vm0, %v1364_v44 }
  0x6d   : > { %667 = vmatmul.mubr.bf16.gmra.mxu0 %v1366_v45  ;;  %731 = vmatmul.mubr.bf16.gmra.mxu1 %v1367_v46 }
  0xf5   : > { %v612_v48 = vpop.f32.mrf.mxu0  ;;  %v676_v50 = vpop.f32.mrf.mxu1 }
  0xf6   : > { %v746_v51 = vmul.f32 %v1526_v47, %v612_v48  ;;  %v762_v52 = vmul.f32 %v1526_v47, %v676_v50 }
  0xf7   : > { %v614_v53 = vpop.f32.mrf.mxu0  ;;  %v678_v54 = vpop.f32.mrf.mxu1 }
  0xf8   : > { %v785_v55 = vadd.f32 %v1531_v49, %v746_v51  ;;  %v801_v56 = vadd.f32 %v1531_v49, %v762_v52 }
  0xf9   : > { %v615_v57 = vpop.f32.mrf.mxu0  ;;  %v679_v58 = vpop.f32.mrf.mxu1 }
  0xfa   : > { %v817_v59 = vmax.f32 %v785_v55, 0.0  ;;  %v833_v60 = vmax.f32 %v801_v56, 0.0  ;;  %v747_v61 = vmul.f32 %v1526_v47, %v615_v57  ;;  %v763_v62 = vmul.f32 %v1526_v47, %v679_v58 }
  0xfb   : > { %v617_v63 = vpop.f32.mrf.mxu0  ;;  %v681_v0 = vpop.f32.mrf.mxu1 }
  0xfc   : > { %v1232_v1 = vpack.c.bf16 %v817_v59, %v817_v59  ;;  %v1248_v2 = vpack.c.bf16 %v833_v60, %v833_v60  ;;  %v786_v3 = vadd.f32 %v1531_v49, %v747_v61  ;;  %v802_v4 = vadd.f32 %v1531_v49, %v763_v62 }
  0xfd   : > { %v620_v5 = vpop.f32.mrf.mxu0  ;;  %v684_v6 = vpop.f32.mrf.mxu1 }
  0xfe   : > { %978 = vst.msk [vmem:[%s1543_s29] sm:$0xf] %vm977_vm3, %v1232_v1  ;;  %994 = vst.msk [vmem:[%s1543_s29 + $0x40] sm:$0xf] %vm977_vm3, %v1248_v2  ;;  %v818_v7 = vmax.f32 %v786_v3, 0.0  ;;  %v834_v8 = vmax.f32 %v802_v4, 0.0  ;;  %v748_v9 = vmul.f32 %v1526_v47, %v620_v5  ;;  %v764_v10 = vmul.f32 %v1526_v47, %v684_v6 }
  0xff   : > { %v622_v11 = vpop.f32.mrf.mxu0  ;;  %v686_v12 = vpop.f32.mrf.mxu1 }
 0x100   : > { %v1233_v13 = vpack.c.bf16 %v818_v7, %v818_v7  ;;  %v1249_v14 = vpack.c.bf16 %v834_v8, %v834_v8  ;;  %v787_v15 = vadd.f32 %v1531_v49, %v748_v9  ;;  %v803_v16 = vadd.f32 %v1531_v49, %v764_v10 }
 0x101   : > { %v623_v17 = vpop.f32.mrf.mxu0  ;;  %v687_v18 = vpop.f32.mrf.mxu1 }
 0x102   : > { %979 = vst.msk [vmem:[%s1543_s29 + $0x4] sm:$0xf] %vm977_vm3, %v1233_v13  ;;  %995 = vst.msk [vmem:[%s1543_s29 + $0x44] sm:$0xf] %vm977_vm3, %v1249_v14  ;;  %v819_v19 = vmax.f32 %v787_v15, 0.0  ;;  %v835_v20 = vmax.f32 %v803_v16, 0.0  ;;  %v749_v21 = vmul.f32 %v1526_v47, %v623_v17  ;;  %v765_v22 = vmul.f32 %v1526_v47, %v687_v18 }
 0x103   : > { %v625_v23 = vpop.f32.mrf.mxu0  ;;  %v689_v24 = vpop.f32.mrf.mxu1 }
 0x104   : > { %v1234_v25 = vpack.c.bf16 %v819_v19, %v819_v19  ;;  %v1250_v26 = vpack.c.bf16 %v835_v20, %v835_v20  ;;  %v788_v27 = vadd.f32 %v1531_v49, %v749_v21  ;;  %v804_v28 = vadd.f32 %v1531_v49, %v765_v22 }
 0x105   : > { %v628_v29 = vpop.f32.mrf.mxu0  ;;  %v692_v30 = vpop.f32.mrf.mxu1 }
 0x106   : > { %980 = vst.msk [vmem:[%s1543_s29 + $0x8] sm:$0xf] %vm977_vm3, %v1234_v25  ;;  %996 = vst.msk [vmem:[%s1543_s29 + $0x48] sm:$0xf] %vm977_vm3, %v1250_v26  ;;  %v820_v31 = vmax.f32 %v788_v27, 0.0  ;;  %v836_v32 = vmax.f32 %v804_v28, 0.0  ;;  %v750_v33 = vmul.f32 %v1526_v47, %v628_v29  ;;  %v766_v34 = vmul.f32 %v1526_v47, %v692_v30 }
 0x107   : > { %v630_v35 = vpop.f32.mrf.mxu0  ;;  %v694_v36 = vpop.f32.mrf.mxu1 }
 0x108   : > { %v1235_v37 = vpack.c.bf16 %v820_v31, %v820_v31  ;;  %v1251_v38 = vpack.c.bf16 %v836_v32, %v836_v32  ;;  %v789_v39 = vadd.f32 %v1531_v49, %v750_v33  ;;  %v805_v40 = vadd.f32 %v1531_v49, %v766_v34 }
 0x109   : > { %v631_v41 = vpop.f32.mrf.mxu0  ;;  %v695_v42 = vpop.f32.mrf.mxu1 }
 0x10a   : > { %981 = vst.msk [vmem:[%s1543_s29 + $0xc] sm:$0xf] %vm977_vm3, %v1235_v37  ;;  %997 = vst.msk [vmem:[%s1543_s29 + $0x4c] sm:$0xf] %vm977_vm3, %v1251_v38  ;;  %v821_v43 = vmax.f32 %v789_v39, 0.0  ;;  %v837_v44 = vmax.f32 %v805_v40, 0.0  ;;  %v751_v45 = vmul.f32 %v1526_v47, %v631_v41  ;;  %v767_v46 = vmul.f32 %v1526_v47, %v695_v42 }
 0x10b   : > { %v633_v48 = vpop.f32.mrf.mxu0  ;;  %v697_v50 = vpop.f32.mrf.mxu1 }
 0x10c   : > { %v1236_v51 = vpack.c.bf16 %v821_v43, %v821_v43  ;;  %v1252_v52 = vpack.c.bf16 %v837_v44, %v837_v44  ;;  %v790_v53 = vadd.f32 %v1531_v49, %v751_v45  ;;  %v806_v54 = vadd.f32 %v1531_v49, %v767_v46 }
 0x10d   : > { %v636_v55 = vpop.f32.mrf.mxu0  ;;  %v700_v56 = vpop.f32.mrf.mxu1 }
 0x10e   : > { %982 = vst.msk [vmem:[%s1543_s29 + $0x10] sm:$0xf] %vm977_vm3, %v1236_v51  ;;  %998 = vst.msk [vmem:[%s1543_s29 + $0x50] sm:$0xf] %vm977_vm3, %v1252_v52  ;;  %v822_v57 = vmax.f32 %v790_v53, 0.0  ;;  %v838_v58 = vmax.f32 %v806_v54, 0.0  ;;  %v752_v59 = vmul.f32 %v1526_v47, %v636_v55  ;;  %v768_v60 = vmul.f32 %v1526_v47, %v700_v56 }
 0x10f   : > { %v638_v61 = vpop.f32.mrf.mxu0  ;;  %v702_v62 = vpop.f32.mrf.mxu1 }
 0x110   : > { %v1237_v63 = vpack.c.bf16 %v822_v57, %v822_v57  ;;  %v1253_v0 = vpack.c.bf16 %v838_v58, %v838_v58  ;;  %v791_v1 = vadd.f32 %v1531_v49, %v752_v59  ;;  %v807_v2 = vadd.f32 %v1531_v49, %v768_v60 }
 0x111   : > { %v639_v3 = vpop.f32.mrf.mxu0  ;;  %v703_v4 = vpop.f32.mrf.mxu1 }
 0x112   : > { %983 = vst.msk [vmem:[%s1543_s29 + $0x14] sm:$0xf] %vm977_vm3, %v1237_v63  ;;  %999 = vst.msk [vmem:[%s1543_s29 + $0x54] sm:$0xf] %vm977_vm3, %v1253_v0  ;;  %v823_v5 = vmax.f32 %v791_v1, 0.0  ;;  %v839_v6 = vmax.f32 %v807_v2, 0.0  ;;  %v753_v7 = vmul.f32 %v1526_v47, %v639_v3  ;;  %v769_v8 = vmul.f32 %v1526_v47, %v703_v4 }
 0x113   : > { %v641_v9 = vpop.f32.mrf.mxu0  ;;  %v705_v10 = vpop.f32.mrf.mxu1 }
 0x114   : > { %v1238_v11 = vpack.c.bf16 %v823_v5, %v823_v5  ;;  %v1254_v12 = vpack.c.bf16 %v839_v6, %v839_v6  ;;  %v792_v13 = vadd.f32 %v1531_v49, %v753_v7  ;;  %v808_v14 = vadd.f32 %v1531_v49, %v769_v8 }
 0x115   : > { %v644_v15 = vpop.f32.mrf.mxu0  ;;  %v708_v16 = vpop.f32.mrf.mxu1 }
 0x116   : > { %984 = vst.msk [vmem:[%s1543_s29 + $0x18] sm:$0xf] %vm977_vm3, %v1238_v11  ;;  %1000 = vst.msk [vmem:[%s1543_s29 + $0x58] sm:$0xf] %vm977_vm3, %v1254_v12  ;;  %v824_v17 = vmax.f32 %v792_v13, 0.0  ;;  %v840_v18 = vmax.f32 %v808_v14, 0.0  ;;  %v754_v19 = vmul.f32 %v1526_v47, %v644_v15  ;;  %v770_v20 = vmul.f32 %v1526_v47, %v708_v16 }
 0x117   : > { %v646_v21 = vpop.f32.mrf.mxu0  ;;  %v710_v22 = vpop.f32.mrf.mxu1 }
 0x118   : > { %v1239_v23 = vpack.c.bf16 %v824_v17, %v824_v17  ;;  %v1255_v24 = vpack.c.bf16 %v840_v18, %v840_v18  ;;  %v793_v25 = vadd.f32 %v1531_v49, %v754_v19  ;;  %v809_v26 = vadd.f32 %v1531_v49, %v770_v20 }
 0x119   : > { %v647_v27 = vpop.f32.mrf.mxu0  ;;  %v711_v28 = vpop.f32.mrf.mxu1 }
 0x11a   : > { %985 = vst.msk [vmem:[%s1543_s29 + $0x1c] sm:$0xf] %vm977_vm3, %v1239_v23  ;;  %1001 = vst.msk [vmem:[%s1543_s29 + $0x5c] sm:$0xf] %vm977_vm3, %v1255_v24  ;;  %v825_v29 = vmax.f32 %v793_v25, 0.0  ;;  %v841_v30 = vmax.f32 %v809_v26, 0.0  ;;  %v755_v31 = vmul.f32 %v1526_v47, %v647_v27  ;;  %v771_v32 = vmul.f32 %v1526_v47, %v711_v28 }
 0x11b   : > { %v649_v33 = vpop.f32.mrf.mxu0  ;;  %v713_v34 = vpop.f32.mrf.mxu1 }
 0x11c   : > { %v1240_v35 = vpack.c.bf16 %v825_v29, %v825_v29  ;;  %v1256_v36 = vpack.c.bf16 %v841_v30, %v841_v30  ;;  %v794_v37 = vadd.f32 %v1531_v49, %v755_v31  ;;  %v810_v38 = vadd.f32 %v1531_v49, %v771_v32 }
 0x11d   : > { %v652_v39 = vpop.f32.mrf.mxu0  ;;  %v716_v40 = vpop.f32.mrf.mxu1 }
 0x11e   : > { %986 = vst.msk [vmem:[%s1543_s29 + $0x20] sm:$0xf] %vm977_vm3, %v1240_v35  ;;  %1002 = vst.msk [vmem:[%s1543_s29 + $0x60] sm:$0xf] %vm977_vm3, %v1256_v36  ;;  %v826_v41 = vmax.f32 %v794_v37, 0.0  ;;  %v842_v42 = vmax.f32 %v810_v38, 0.0  ;;  %v756_v43 = vmul.f32 %v1526_v47, %v652_v39  ;;  %v772_v44 = vmul.f32 %v1526_v47, %v716_v40 }
 0x11f   : > { %v654_v45 = vpop.f32.mrf.mxu0  ;;  %v718_v46 = vpop.f32.mrf.mxu1 }
 0x120   : > { %v1241_v48 = vpack.c.bf16 %v826_v41, %v826_v41  ;;  %v1257_v50 = vpack.c.bf16 %v842_v42, %v842_v42  ;;  %v795_v51 = vadd.f32 %v1531_v49, %v756_v43  ;;  %v811_v52 = vadd.f32 %v1531_v49, %v772_v44 }
 0x121   : > { %v655_v53 = vpop.f32.mrf.mxu0  ;;  %v719_v54 = vpop.f32.mrf.mxu1 }
 0x122   : > { %987 = vst.msk [vmem:[%s1543_s29 + $0x24] sm:$0xf] %vm977_vm3, %v1241_v48  ;;  %1003 = vst.msk [vmem:[%s1543_s29 + $0x64] sm:$0xf] %vm977_vm3, %v1257_v50  ;;  %v827_v55 = vmax.f32 %v795_v51, 0.0  ;;  %v843_v56 = vmax.f32 %v811_v52, 0.0  ;;  %v757_v57 = vmul.f32 %v1526_v47, %v655_v53  ;;  %v773_v58 = vmul.f32 %v1526_v47, %v719_v54 }
 0x123   : > { %v657_v59 = vpop.f32.mrf.mxu0  ;;  %v721_v60 = vpop.f32.mrf.mxu1 }
 0x124   : > { %v1242_v61 = vpack.c.bf16 %v827_v55, %v827_v55  ;;  %v1258_v62 = vpack.c.bf16 %v843_v56, %v843_v56  ;;  %v796_v63 = vadd.f32 %v1531_v49, %v757_v57  ;;  %v812_v0 = vadd.f32 %v1531_v49, %v773_v58 }
 0x125   : > { %v660_v1 = vpop.f32.mrf.mxu0  ;;  %v724_v2 = vpop.f32.mrf.mxu1 }
 0x126   : > { %988 = vst.msk [vmem:[%s1543_s29 + $0x28] sm:$0xf] %vm977_vm3, %v1242_v61  ;;  %1004 = vst.msk [vmem:[%s1543_s29 + $0x68] sm:$0xf] %vm977_vm3, %v1258_v62  ;;  %v828_v3 = vmax.f32 %v796_v63, 0.0  ;;  %v844_v4 = vmax.f32 %v812_v0, 0.0  ;;  %v758_v5 = vmul.f32 %v1526_v47, %v660_v1  ;;  %v774_v6 = vmul.f32 %v1526_v47, %v724_v2 }
 0x127   : > { %v662_v7 = vpop.f32.mrf.mxu0  ;;  %v726_v8 = vpop.f32.mrf.mxu1 }
 0x128   : > { %v1243_v9 = vpack.c.bf16 %v828_v3, %v828_v3  ;;  %v1259_v10 = vpack.c.bf16 %v844_v4, %v844_v4  ;;  %v797_v11 = vadd.f32 %v1531_v49, %v758_v5  ;;  %v813_v12 = vadd.f32 %v1531_v49, %v774_v6 }
 0x129   : > { %v663_v13 = vpop.f32.mrf.mxu0  ;;  %v727_v14 = vpop.f32.mrf.mxu1 }
 0x12a   : > { %989 = vst.msk [vmem:[%s1543_s29 + $0x2c] sm:$0xf] %vm977_vm3, %v1243_v9  ;;  %1005 = vst.msk [vmem:[%s1543_s29 + $0x6c] sm:$0xf] %vm977_vm3, %v1259_v10  ;;  %v829_v15 = vmax.f32 %v797_v11, 0.0  ;;  %v845_v16 = vmax.f32 %v813_v12, 0.0  ;;  %v759_v17 = vmul.f32 %v1526_v47, %v663_v13  ;;  %v775_v18 = vmul.f32 %v1526_v47, %v727_v14 }
 0x12b   : > { %v665_v19 = vpop.f32.mrf.mxu0  ;;  %v729_v20 = vpop.f32.mrf.mxu1 }
 0x12c   : > { %v1244_v21 = vpack.c.bf16 %v829_v15, %v829_v15  ;;  %v1260_v22 = vpack.c.bf16 %v845_v16, %v845_v16  ;;  %v798_v23 = vadd.f32 %v1531_v49, %v759_v17  ;;  %v814_v24 = vadd.f32 %v1531_v49, %v775_v18 }
 0x12d   : > { %v668_v25 = vpop.f32.mrf.mxu0  ;;  %v732_v26 = vpop.f32.mrf.mxu1 }
 0x12e   : > { %990 = vst.msk [vmem:[%s1543_s29 + $0x30] sm:$0xf] %vm977_vm3, %v1244_v21  ;;  %1006 = vst.msk [vmem:[%s1543_s29 + $0x70] sm:$0xf] %vm977_vm3, %v1260_v22  ;;  %v830_v27 = vmax.f32 %v798_v23, 0.0  ;;  %v846_v28 = vmax.f32 %v814_v24, 0.0  ;;  %v760_v29 = vmul.f32 %v1526_v47, %v668_v25  ;;  %v776_v30 = vmul.f32 %v1526_v47, %v732_v26 }
 0x12f   : > { %v670_v31 = vpop.f32.mrf.mxu0  ;;  %v734_v32 = vpop.f32.mrf.mxu1 }
 0x130   : > { %v1245_v33 = vpack.c.bf16 %v830_v27, %v830_v27  ;;  %v1261_v34 = vpack.c.bf16 %v846_v28, %v846_v28  ;;  %v799_v35 = vadd.f32 %v1531_v49, %v760_v29  ;;  %v815_v36 = vadd.f32 %v1531_v49, %v776_v30 }
 0x131   : > { %v671_v37 = vpop.f32.mrf.mxu0  ;;  %v735_v38 = vpop.f32.mrf.mxu1 }
 0x132   : > { %991 = vst.msk [vmem:[%s1543_s29 + $0x34] sm:$0xf] %vm977_vm3, %v1245_v33  ;;  %1007 = vst.msk [vmem:[%s1543_s29 + $0x74] sm:$0xf] %vm977_vm3, %v1261_v34  ;;  %v831_v39 = vmax.f32 %v799_v35, 0.0  ;;  %v847_v40 = vmax.f32 %v815_v36, 0.0  ;;  %v761_v41 = vmul.f32 %v1526_v47, %v671_v37  ;;  %v777_v42 = vmul.f32 %v1526_v47, %v735_v38 }
 0x133   : > { %v673_v43 = vpop.f32.mrf.mxu0  ;;  %v737_v44 = vpop.f32.mrf.mxu1 }
 0x134   : > { %v1246_v45 = vpack.c.bf16 %v831_v39, %v831_v39  ;;  %v1262_v46 = vpack.c.bf16 %v847_v40, %v847_v40  ;;  %v800_v48 = vadd.f32 %v1531_v49, %v761_v41  ;;  %v816_v50 = vadd.f32 %v1531_v49, %v777_v42 }
 0x136   : > { %992 = vst.msk [vmem:[%s1543_s29 + $0x38] sm:$0xf] %vm977_vm3, %v1246_v45  ;;  %1008 = vst.msk [vmem:[%s1543_s29 + $0x78] sm:$0xf] %vm977_vm3, %v1262_v46  ;;  %v832_v51 = vmax.f32 %v800_v48, 0.0  ;;  %v848_v52 = vmax.f32 %v816_v50, 0.0 }
 0x138   : > { %v1247_v53 = vpack.c.bf16 %v832_v51, %v832_v51  ;;  %v1263_v54 = vpack.c.bf16 %v848_v52, %v848_v52 }
 0x13a   : > { %993 = vst.msk [vmem:[%s1543_s29 + $0x3c] sm:$0xf] %vm977_vm3, %v1247_v53  ;;  %1009 = vst.msk [vmem:[%s1543_s29 + $0x7c] sm:$0xf] %vm977_vm3, %v1263_v54 }
 0x13b PF: > { %s14_s17 = sadd.s32 1, %s1390_s17   ;;  %s1681_s15 = smov %s1386_s16 }
 0x13c   : > { %p11_p5 = scmp.ge.s32.totalorder %s14_s17, 4   ;;  %s1682_s16 = smov %s1684_s18 }
 0x13e   :  { %13 = sbr.rel (!%p11_p5) target bundleno = 2 (0x2), region = 75 }

// kernel: densenet_forward.13
= control target key start
LH: loop header
LB: loop body
LE: loop exit
PB: predicated region body
PF: predicated region fallthrough
CT: control target
= control target key end

     0   :  { %vm259_vm0 = vcmask 1043456   ;;  %vm234_vm1 = vcmask 64512   ;;  %vm488_vm2 = vcmask 130048   ;;  %vm703_vm3 = vcmask 125952   ;;  %s1243_s1 = inlined_call_operand.vmem [shape: bf16[2,8,16], index: 1, kind: input, shape index: {}]   ;;  %s1244_s0 = inlined_call_operand.vmem [shape: bf16[16,128,8], index: 0, kind: input, shape index: {}]   ;;  %s1245_s2 = inlined_call_operand.vmem [shape: f32[2,1,8], index: 2, kind: input, shape index: {}]   ;;  %s1246_s3 = inlined_call_operand.vmem [shape: f32[2,1,8], index: 3, kind: input, shape index: {}]   ;;  %s1247_s4 = inlined_call_operand.vmem [shape: f32[1,16], index: 4, kind: input, shape index: {}]   ;;  %s1248_s5 = inlined_call_operand.vmem [shape: f32[1,16], index: 5, kind: input, shape index: {}]   ;;  %s1249_s6 = inlined_call_operand.vmem [shape: bf16[128,16], index: 6, kind: output, shape index: {}]  }
   0x1   :  { %v746_v0 = vld [vmem:[%s1243_s1 + $0x4] sm:$0xf]  ;;  %v126_v1 = vld [vmem:[%s1243_s1] sm:$0xf]  ;;  %v869_v15 = vld [vmem:[%s1244_s0 + $0x48] sm:$0xff]  }
   0x2   :  { %v868_v2 = vld [vmem:[%s1244_s0 + $0x40] sm:$0xff]   ;;  %930 = vmatprep.subr.msk.bf16.mxu0 %vm259_vm0, %v746_v0  ;;  %931 = vmatprep.subr.msk.bf16.mxu1 %vm259_vm0, %v126_v1  ;;  %v261_v3 = vsel %vm259_vm0, %v746_v0, 0  ;;  %v385_v4 = vsel %vm259_vm0, %v126_v1, 0  ;;  %v861_v16 = vld [vmem:[%s1244_s0 + $0x8] sm:$0xff]   ;;  %v835_v18 = vunpack.c.l.bf16 %v869_v15  ;;  %v836_v19 = vunpack.c.h.bf16 %v869_v15  ;;  %v870_v30 = vld [vmem:[%s1244_s0 + $0x50] sm:$0xff]  }
   0x3   :  { %v831_v5 = vunpack.c.l.bf16 %v868_v2  ;;  %v832_v6 = vunpack.c.h.bf16 %v868_v2  ;;  %v979_v7 = vld [vmem:[%s1245_s2 + $0x1] ss:$0 sm:$0xff]  ;;  %895 = vmatpush3.bf16.msra.mxu0 %v261_v3  ;;  %913 = vmatpush3.bf16.msra.mxu1 %v385_v4  ;;  %v992_v10 = vld [vmem:[%s1245_s2] ss:$0 sm:$0xff]  ;;  %v803_v20 = vunpack.c.l.bf16 %v861_v16  ;;  %v804_v21 = vunpack.c.h.bf16 %v861_v16  ;;  %v862_v39 = vld [vmem:[%s1244_s0 + $0x10] sm:$0xff]  }
   0x4   :  { %v984_v8 = vld [vmem:[%s1246_s3 + $0x1] ss:$0 sm:$0xff]  ;;  %v1005_v17 = vld [vmem:[%s1246_s3] ss:$0 sm:$0xff]  ;;  %v170_v26 = vmul.f32 %v835_v18, %v979_v7  ;;  %v171_v27 = vmul.f32 %v836_v19, %v979_v7  ;;  %v839_v43 = vunpack.c.l.bf16 %v870_v30  ;;  %v871_v44 = vld [vmem:[%s1244_s0 + $0x58] sm:$0xff]   ;;  %v840_v50 = vunpack.c.h.bf16 %v870_v30 }
   0x5   :  { %v798_v9 = vld [vmem:[%s1244_s0] sm:$0xff]   ;;  %v168_v11 = vmul.f32 %v831_v5, %v979_v7  ;;  %v169_v12 = vmul.f32 %v832_v6, %v979_v7  ;;  %v65_v28 = vmul.f32 %v803_v20, %v992_v10  ;;  %v66_v29 = vmul.f32 %v804_v21, %v992_v10  ;;  %v863_v53 = vld [vmem:[%s1244_s0 + $0x18] sm:$0xff]  }
   0x6   :  { %v799_v13 = vunpack.c.l.bf16 %v798_v9  ;;  %v800_v14 = vunpack.c.h.bf16 %v798_v9  ;;  %v194_v35 = vadd.f32 %v984_v8, %v170_v26  ;;  %v195_v36 = vadd.f32 %v984_v8, %v171_v27  ;;  %v872_v2 = vld [vmem:[%s1244_s0 + $0x60] sm:$0xff]  }
   0x7   :  { %v192_v22 = vadd.f32 %v984_v8, %v168_v11  ;;  %v193_v23 = vadd.f32 %v984_v8, %v169_v12  ;;  %v88_v37 = vadd.f32 %v1005_v17, %v65_v28  ;;  %v89_v38 = vadd.f32 %v1005_v17, %v66_v29  ;;  %v864_v19 = vld [vmem:[%s1244_s0 + $0x20] sm:$0xff]   ;;  %v873_v28 = vld [vmem:[%s1244_s0 + $0x68] sm:$0xff]  }
   0x8   :  { %v63_v24 = vmul.f32 %v799_v13, %v992_v10  ;;  %v64_v25 = vmul.f32 %v800_v14, %v992_v10  ;;  %v210_v45 = vmax.f32 %v194_v35, 0.0  ;;  %v211_v46 = vmax.f32 %v195_v36, 0.0 }
   0x9   :  { %v208_v31 = vmax.f32 %v192_v22, 0.0  ;;  %v209_v32 = vmax.f32 %v193_v23, 0.0  ;;  %v104_v47 = vmax.f32 %v88_v37, 0.0  ;;  %v105_v48 = vmax.f32 %v89_v38, 0.0 }
   0xa   :  { %v86_v33 = vadd.f32 %v1005_v17, %v63_v24  ;;  %v87_v34 = vadd.f32 %v1005_v17, %v64_v25  ;;  %v172_v51 = vmul.f32 %v839_v43, %v979_v7  ;;  %v807_v52 = vunpack.c.l.bf16 %v862_v39 }
   0xb   :  { %v224_v40 = vpack.c.bf16 %v209_v32, %v208_v31  ;;  %v225_v54 = vpack.c.bf16 %v211_v46, %v210_v45  ;;  %v119_v55 = vpack.c.bf16 %v105_v48, %v104_v47  ;;  %v808_v56 = vunpack.c.h.bf16 %v862_v39 }
   0xc   :  { %v102_v41 = vmax.f32 %v86_v33, 0.0  ;;  %v103_v42 = vmax.f32 %v87_v34, 0.0  ;;  %v843_v57 = vunpack.c.l.bf16 %v871_v44  ;;  %v173_v58 = vmul.f32 %v840_v50, %v979_v7  ;;  %v865_v33 = vld [vmem:[%s1244_s0 + $0x28] sm:$0xff]  }
   0xd   :  { %896 = vmatprep.mubr.msk.bf16.mxu0 %vm234_vm1, %v224_v40  ;;  %v196_v59 = vadd.f32 %v984_v8, %v172_v51  ;;  %v67_v60 = vmul.f32 %v807_v52, %v992_v10  ;;  %v844_v61 = vunpack.c.h.bf16 %v871_v44  ;;  %v68_v62 = vmul.f32 %v808_v56, %v992_v10 }
   0xe   :  { %v118_v49 = vpack.c.bf16 %v103_v42, %v102_v41  ;;  %897 = vmatmul.mubr.msk.bf16.vlgmr.msra.gmra.mxu0 %vm234_vm1, %v225_v54  ;;  %v174_v63 = vmul.f32 %v843_v57, %v979_v7  ;;  %v811_v0 = vunpack.c.l.bf16 %v863_v53  ;;  %v812_v1 = vunpack.c.h.bf16 %v863_v53  ;;  %v874_v42 = vld [vmem:[%s1244_s0 + $0x70] sm:$0xff]  }
   0xf   :  { %v197_v3 = vadd.f32 %v984_v8, %v173_v58  ;;  %v212_v4 = vmax.f32 %v196_v59, 0.0  ;;  %v90_v5 = vadd.f32 %v1005_v17, %v67_v60  ;;  %v175_v6 = vmul.f32 %v844_v61, %v979_v7  ;;  %v866_v59 = vld [vmem:[%s1244_s0 + $0x30] sm:$0xff]  }
  0x10   :  { %914 = vmatprep.mubr.msk.bf16.mxu1 %vm234_vm1, %v118_v49  ;;  %v91_v9 = vadd.f32 %v1005_v17, %v68_v62  ;;  %v198_v11 = vadd.f32 %v984_v8, %v174_v63  ;;  %v69_v12 = vmul.f32 %v811_v0, %v992_v10  ;;  %v70_v13 = vmul.f32 %v812_v1, %v992_v10 }
  0x11   :  { %915 = vmatmul.mubr.msk.bf16.vlgmr.msra.gmra.mxu1 %vm234_vm1, %v119_v55  ;;  %v213_v14 = vmax.f32 %v197_v3, 0.0  ;;  %v106_v15 = vmax.f32 %v90_v5, 0.0  ;;  %v199_v16 = vadd.f32 %v984_v8, %v175_v6  ;;  %v847_v18 = vunpack.c.l.bf16 %v872_v2 }
  0x12   :  { %v107_v20 = vmax.f32 %v91_v9, 0.0  ;;  %v214_v21 = vmax.f32 %v198_v11, 0.0  ;;  %v92_v22 = vadd.f32 %v1005_v17, %v69_v12  ;;  %v93_v23 = vadd.f32 %v1005_v17, %v70_v13  ;;  %v867_v12 = vld [vmem:[%s1244_s0 + $0x38] sm:$0xff]  }
  0x13   :  { %v226_v24 = vpack.c.bf16 %v213_v14, %v212_v4  ;;  %v215_v25 = vmax.f32 %v199_v16, 0.0  ;;  %v848_v26 = vunpack.c.h.bf16 %v872_v2  ;;  %v176_v27 = vmul.f32 %v847_v18, %v979_v7  ;;  %v875_v4 = vld [vmem:[%s1244_s0 + $0x78] sm:$0xff]  }
  0x14   :  { %v120_v29 = vpack.c.bf16 %v107_v20, %v106_v15  ;;  %v108_v30 = vmax.f32 %v92_v22, 0.0  ;;  %v109_v31 = vmax.f32 %v93_v23, 0.0  ;;  %v815_v32 = vunpack.c.l.bf16 %v864_v19 }
  0x15   :  { %900 = vmatprep.mubr.msk.bf16.mxu0 %vm234_vm1, %v226_v24  ;;  %v227_v34 = vpack.c.bf16 %v215_v25, %v214_v21  ;;  %v177_v35 = vmul.f32 %v848_v26, %v979_v7  ;;  %v200_v36 = vadd.f32 %v984_v8, %v176_v27  ;;  %v816_v37 = vunpack.c.h.bf16 %v864_v19 }
  0x16   :  { %918 = vmatprep.mubr.msk.bf16.mxu1 %vm234_vm1, %v120_v29  ;;  %v121_v38 = vpack.c.bf16 %v109_v31, %v108_v30  ;;  %v71_v39 = vmul.f32 %v815_v32, %v992_v10  ;;  %v851_v40 = vunpack.c.l.bf16 %v873_v28  ;;  %v852_v41 = vunpack.c.h.bf16 %v873_v28 }
  0x17   :  { %901 = vmatmul.mubr.msk.bf16.gmra.mxu0 %vm234_vm1, %v227_v34  ;;  %v201_v43 = vadd.f32 %v984_v8, %v177_v35  ;;  %v216_v44 = vmax.f32 %v200_v36, 0.0  ;;  %v72_v45 = vmul.f32 %v816_v37, %v992_v10  ;;  %v819_v46 = vunpack.c.l.bf16 %v865_v33 }
  0x18   :  { %v94_v47 = vadd.f32 %v1005_v17, %v71_v39  ;;  %v178_v48 = vmul.f32 %v851_v40, %v979_v7  ;;  %v179_v49 = vmul.f32 %v852_v41, %v979_v7  ;;  %v820_v50 = vunpack.c.h.bf16 %v865_v33 }
  0x19   :  { %919 = vmatmul.mubr.msk.bf16.gmra.mxu1 %vm234_vm1, %v121_v38  ;;  %v217_v51 = vmax.f32 %v201_v43, 0.0  ;;  %v95_v52 = vadd.f32 %v1005_v17, %v72_v45  ;;  %v73_v53 = vmul.f32 %v819_v46, %v992_v10  ;;  %v855_v54 = vunpack.c.l.bf16 %v874_v42 }
  0x1a   :  { %v110_v55 = vmax.f32 %v94_v47, 0.0  ;;  %v202_v56 = vadd.f32 %v984_v8, %v178_v48  ;;  %v203_v57 = vadd.f32 %v984_v8, %v179_v49  ;;  %v74_v58 = vmul.f32 %v820_v50, %v992_v10 }
  0x1b   :  { %v228_v60 = vpack.c.bf16 %v217_v51, %v216_v44  ;;  %v111_v61 = vmax.f32 %v95_v52, 0.0  ;;  %v96_v62 = vadd.f32 %v1005_v17, %v73_v53  ;;  %v856_v63 = vunpack.c.h.bf16 %v874_v42 }
  0x1c   :  { %v218_v0 = vmax.f32 %v202_v56, 0.0  ;;  %v219_v1 = vmax.f32 %v203_v57, 0.0  ;;  %v97_v2 = vadd.f32 %v1005_v17, %v74_v58  ;;  %v180_v3 = vmul.f32 %v855_v54, %v979_v7  ;;  %v1127_v56 = vld [vmem:[%s1247_s4] ss:$0 sm:$0xff] }
  0x1d   :  { %904 = vmatprep.mubr.msk.bf16.mxu0 %vm234_vm1, %v228_v60  ;;  %v122_v5 = vpack.c.bf16 %v111_v61, %v110_v55  ;;  %v112_v6 = vmax.f32 %v96_v62, 0.0  ;;  %v181_v9 = vmul.f32 %v856_v63, %v979_v7  ;;  %v823_v11 = vunpack.c.l.bf16 %v866_v59 }
  0x1e   :  { %v229_v13 = vpack.c.bf16 %v219_v1, %v218_v0  ;;  %v113_v14 = vmax.f32 %v97_v2, 0.0  ;;  %v204_v15 = vadd.f32 %v984_v8, %v180_v3  ;;  %v824_v16 = vunpack.c.h.bf16 %v866_v59  ;;  %v1133_v59 = vld [vmem:[%s1248_s5] ss:$0 sm:$0xff] }
  0x1f   :  { %922 = vmatprep.mubr.msk.bf16.mxu1 %vm234_vm1, %v122_v5  ;;  %v205_v18 = vadd.f32 %v984_v8, %v181_v9  ;;  %v75_v19 = vmul.f32 %v823_v11, %v992_v10  ;;  %v859_v20 = vunpack.c.l.bf16 %v875_v4  ;;  %v860_v21 = vunpack.c.h.bf16 %v875_v4 }
  0x20   :  { %905 = vmatmul.mubr.msk.bf16.gmra.mxu0 %vm234_vm1, %v229_v13  ;;  %v123_v22 = vpack.c.bf16 %v113_v14, %v112_v6  ;;  %v220_v23 = vmax.f32 %v204_v15, 0.0  ;;  %v76_v24 = vmul.f32 %v824_v16, %v992_v10  ;;  %v827_v25 = vunpack.c.l.bf16 %v867_v12 }
  0x21   :  { %v221_v26 = vmax.f32 %v205_v18, 0.0  ;;  %v98_v27 = vadd.f32 %v1005_v17, %v75_v19  ;;  %v182_v28 = vmul.f32 %v859_v20, %v979_v7  ;;  %v183_v29 = vmul.f32 %v860_v21, %v979_v7 }
  0x22   :  { %923 = vmatmul.mubr.msk.bf16.gmra.mxu1 %vm234_vm1, %v123_v22  ;;  %v99_v30 = vadd.f32 %v1005_v17, %v76_v24  ;;  %v828_v31 = vunpack.c.h.bf16 %v867_v12  ;;  %v77_v32 = vmul.f32 %v827_v25, %v992_v10 }
  0x23   :  { %v230_v33 = vpack.c.bf16 %v221_v26, %v220_v23  ;;  %v114_v34 = vmax.f32 %v98_v27, 0.0  ;;  %v206_v35 = vadd.f32 %v984_v8, %v182_v28  ;;  %v207_v36 = vadd.f32 %v984_v8, %v183_v29 }
  0x24   :  { %v115_v37 = vmax.f32 %v99_v30, 0.0  ;;  %v78_v38 = vmul.f32 %v828_v31, %v992_v10  ;;  %v100_v39 = vadd.f32 %v1005_v17, %v77_v32 }
  0x25   :  { %908 = vmatprep.mubr.msk.bf16.mxu0 %vm234_vm1, %v230_v33  ;;  %v222_v7 = vmax.f32 %v206_v35, 0.0  ;;  %v223_v40 = vmax.f32 %v207_v36, 0.0 }
  0x26   :  { %v124_v41 = vpack.c.bf16 %v115_v37, %v114_v34  ;;  %v101_v42 = vadd.f32 %v1005_v17, %v78_v38  ;;  %v116_v43 = vmax.f32 %v100_v39, 0.0 }
  0x27   :  { %v231_v44 = vpack.c.bf16 %v223_v40, %v222_v7 }
  0x28   :  { %926 = vmatprep.mubr.msk.bf16.mxu1 %vm234_vm1, %v124_v41  ;;  %v117_v45 = vmax.f32 %v101_v42, 0.0 }
  0x29   :  { %909 = vmatmul.mubr.msk.bf16.gmra.mxu0 %vm234_vm1, %v231_v44 }
  0x2a   :  { %v125_v8 = vpack.c.bf16 %v117_v45, %v116_v43 }
  0x2c   :  { %927 = vmatmul.mubr.msk.bf16.gmra.mxu1 %vm234_vm1, %v125_v8 }
  0xce   :  { %v898_v10 = vpop.f32.mrf.mxu0 }
  0xd0   :  { %v297_v48 = vpop.f32.mrf.mxu0 }
  0xd1   :  { %v916_v46 = vpop.f32.mrf.mxu1 }
  0xd2   :  { %v430_v47 = vadd.f32 %v916_v46, %v898_v10  ;;  %v899_v17 = vpop.f32.mrf.mxu0 }
  0xd3   :  { %v421_v49 = vpop.f32.mrf.mxu1 }
  0xd4   :  { %491 = vst.msk [vmem:[#allocation2 + $0x10] sm:$0xff] %vm488_vm2, %v430_v47  ;;  %v422_v50 = vadd.f32 %v421_v49, %v297_v48  ;;  %v300_v53 = vpop.f32.mrf.mxu0 }
  0xd5   :  { %v917_v51 = vpop.f32.mrf.mxu1 }
  0xd6   :  { %489 = vst.msk [vmem:[#allocation2] sm:$0xff] %vm488_vm2, %v422_v50  ;;  %v433_v52 = vadd.f32 %v917_v51, %v899_v17 }
  0xd7   :  { %v424_v54 = vpop.f32.mrf.mxu1  ;;  %v902_v57 = vpop.f32.mrf.mxu0 }
  0xd8   :  { %492 = vst.msk [vmem:[#allocation2 + $0x18] sm:$0xff] %vm488_vm2, %v433_v52  ;;  %v425_v55 = vadd.f32 %v424_v54, %v300_v53 }
  0xd9   :  { %v920_v60 = vpop.f32.mrf.mxu1  ;;  %v313_v63 = vpop.f32.mrf.mxu0 }
  0xda   :  { %490 = vst.msk [vmem:[#allocation2 + $0x8] sm:$0xff] %vm488_vm2, %v425_v55  ;;  %v446_v62 = vadd.f32 %v920_v60, %v902_v57 }
  0xdb   :  { %v563_v58 = vld [vmem:[#allocation2 + $0x10] sm:$0xff]  ;;  %v437_v1 = vpop.f32.mrf.mxu1  ;;  %v903_v5 = vpop.f32.mrf.mxu0 }
  0xdc   :  { %v586_v61 = vmul.f32 %v1127_v56, %v563_v58  ;;  %495 = vst.msk [vmem:[#allocation2 + $0x30] sm:$0xff] %vm488_vm2, %v446_v62  ;;  %v438_v4 = vadd.f32 %v437_v1, %v313_v63 }
  0xdd   :  { %v561_v0 = vld [vmem:[#allocation2] sm:$0xff]  ;;  %v921_v9 = vpop.f32.mrf.mxu1  ;;  %v316_v15 = vpop.f32.mrf.mxu0 }
  0xde   :  { %v609_v2 = vadd.f32 %v1133_v59, %v586_v61  ;;  %v584_v3 = vmul.f32 %v1127_v56, %v561_v0  ;;  %493 = vst.msk [vmem:[#allocation2 + $0x20] sm:$0xff] %vm488_vm2, %v438_v4  ;;  %v449_v14 = vadd.f32 %v921_v9, %v903_v5 }
  0xdf   :  { %v564_v6 = vld [vmem:[#allocation2 + $0x18] sm:$0xff]  ;;  %v440_v18 = vpop.f32.mrf.mxu1 }
  0xe0   :  { %v625_v11 = vmax.f32 %v609_v2, 0.0  ;;  %v607_v12 = vadd.f32 %v1133_v59, %v584_v3  ;;  %v587_v13 = vmul.f32 %v1127_v56, %v564_v6  ;;  %496 = vst.msk [vmem:[#allocation2 + $0x38] sm:$0xff] %vm488_vm2, %v449_v14  ;;  %v441_v23 = vadd.f32 %v440_v18, %v316_v15  ;;  %v906_v24 = vpop.f32.mrf.mxu0 }
  0xe1   :  { %v562_v16 = vld [vmem:[#allocation2 + $0x8] sm:$0xff] }
  0xe2   :  { %v783_v19 = vpack.c.bf16 %v625_v11, %v625_v11  ;;  %v623_v20 = vmax.f32 %v607_v12, 0.0  ;;  %v610_v21 = vadd.f32 %v1133_v59, %v587_v13  ;;  %v585_v22 = vmul.f32 %v1127_v56, %v562_v16  ;;  %494 = vst.msk [vmem:[#allocation2 + $0x28] sm:$0xff] %vm488_vm2, %v441_v23  ;;  %v924_v29 = vpop.f32.mrf.mxu1  ;;  %v329_v30 = vpop.f32.mrf.mxu0 }
  0xe3   :  { %v567_v28 = vld [vmem:[#allocation2 + $0x30] sm:$0xff]  ;;  %v462_v34 = vadd.f32 %v924_v29, %v906_v24 }
  0xe4   :  { %706 = vst.msk [vmem:[%s1249_s6 + $0x8] sm:$0xf] %vm703_vm3, %v783_v19  ;;  %v781_v25 = vpack.c.bf16 %v623_v20, %v623_v20  ;;  %v626_v26 = vmax.f32 %v610_v21, 0.0  ;;  %v608_v27 = vadd.f32 %v1133_v59, %v585_v22  ;;  %v590_v33 = vmul.f32 %v1127_v56, %v567_v28  ;;  %v453_v36 = vpop.f32.mrf.mxu1  ;;  %v907_v37 = vpop.f32.mrf.mxu0 }
  0xe5   :  { %v565_v35 = vld [vmem:[#allocation2 + $0x20] sm:$0xff]  ;;  %499 = vst.msk [vmem:[#allocation2 + $0x50] sm:$0xff] %vm488_vm2, %v462_v34  ;;  %v454_v40 = vadd.f32 %v453_v36, %v329_v30 }
  0xe6   :  { %704 = vst.msk [vmem:[%s1249_s6] sm:$0xf] %vm703_vm3, %v781_v25  ;;  %v784_v31 = vpack.c.bf16 %v626_v26, %v626_v26  ;;  %v624_v32 = vmax.f32 %v608_v27, 0.0  ;;  %v613_v39 = vadd.f32 %v1133_v59, %v590_v33  ;;  %v588_v7 = vmul.f32 %v1127_v56, %v565_v35  ;;  %v925_v42 = vpop.f32.mrf.mxu1  ;;  %v332_v43 = vpop.f32.mrf.mxu0 }
  0xe7   :  { %v568_v41 = vld [vmem:[#allocation2 + $0x38] sm:$0xff]  ;;  %497 = vst.msk [vmem:[#allocation2 + $0x40] sm:$0xff] %vm488_vm2, %v454_v40  ;;  %v465_v10 = vadd.f32 %v925_v42, %v907_v37 }
  0xe8   :  { %707 = vst.msk [vmem:[%s1249_s6 + $0xc] sm:$0xf] %vm703_vm3, %v784_v31  ;;  %v782_v38 = vpack.c.bf16 %v624_v32, %v624_v32  ;;  %v629_v44 = vmax.f32 %v613_v39, 0.0  ;;  %v611_v45 = vadd.f32 %v1133_v59, %v588_v7  ;;  %v591_v8 = vmul.f32 %v1127_v56, %v568_v41  ;;  %v456_v46 = vpop.f32.mrf.mxu1 }
  0xe9   :  { %v566_v50 = vld [vmem:[#allocation2 + $0x28] sm:$0xff]  ;;  %500 = vst.msk [vmem:[#allocation2 + $0x58] sm:$0xff] %vm488_vm2, %v465_v10  ;;  %v457_v17 = vadd.f32 %v456_v46, %v332_v43  ;;  %v910_v51 = vpop.f32.mrf.mxu0 }
  0xea   :  { %705 = vst.msk [vmem:[%s1249_s6 + $0x4] sm:$0xf] %vm703_vm3, %v782_v38  ;;  %v787_v47 = vpack.c.bf16 %v629_v44, %v629_v44  ;;  %v627_v48 = vmax.f32 %v611_v45, 0.0  ;;  %v614_v49 = vadd.f32 %v1133_v59, %v591_v8  ;;  %v589_v52 = vmul.f32 %v1127_v56, %v566_v50 }
  0xeb   :  { %498 = vst.msk [vmem:[#allocation2 + $0x48] sm:$0xff] %vm488_vm2, %v457_v17  ;;  %v345_v55 = vpop.f32.mrf.mxu0 }
  0xec   :  { %710 = vst.msk [vmem:[%s1249_s6 + $0x18] sm:$0xf] %vm703_vm3, %v787_v47  ;;  %v785_v53 = vpack.c.bf16 %v627_v48, %v627_v48  ;;  %v630_v54 = vmax.f32 %v614_v49, 0.0  ;;  %v612_v57 = vadd.f32 %v1133_v59, %v589_v52  ;;  %v571_v58 = vld [vmem:[#allocation2 + $0x50] sm:$0xff]  ;;  %v928_v60 = vpop.f32.mrf.mxu1 }
  0xed   :  { %v594_v62 = vmul.f32 %v1127_v56, %v571_v58  ;;  %v478_v63 = vadd.f32 %v928_v60, %v910_v51  ;;  %v911_v0 = vpop.f32.mrf.mxu0 }
  0xee   :  { %708 = vst.msk [vmem:[%s1249_s6 + $0x10] sm:$0xf] %vm703_vm3, %v785_v53  ;;  %v788_v61 = vpack.c.bf16 %v630_v54, %v630_v54  ;;  %v628_v1 = vmax.f32 %v612_v57, 0.0  ;;  %v569_v2 = vld [vmem:[#allocation2 + $0x40] sm:$0xff]  ;;  %v469_v3 = vpop.f32.mrf.mxu1 }
  0xef   :  { %v617_v4 = vadd.f32 %v1133_v59, %v594_v62  ;;  %v592_v5 = vmul.f32 %v1127_v56, %v569_v2  ;;  %503 = vst.msk [vmem:[#allocation2 + $0x70] sm:$0xff] %vm488_vm2, %v478_v63  ;;  %v470_v6 = vadd.f32 %v469_v3, %v345_v55  ;;  %v348_v18 = vpop.f32.mrf.mxu0 }
  0xf0   :  { %711 = vst.msk [vmem:[%s1249_s6 + $0x1c] sm:$0xf] %vm703_vm3, %v788_v61  ;;  %v786_v9 = vpack.c.bf16 %v628_v1, %v628_v1  ;;  %v572_v11 = vld [vmem:[#allocation2 + $0x58] sm:$0xff]  ;;  %v929_v12 = vpop.f32.mrf.mxu1 }
  0xf1   :  { %v633_v13 = vmax.f32 %v617_v4, 0.0  ;;  %v615_v14 = vadd.f32 %v1133_v59, %v592_v5  ;;  %v595_v15 = vmul.f32 %v1127_v56, %v572_v11  ;;  %501 = vst.msk [vmem:[#allocation2 + $0x60] sm:$0xff] %vm488_vm2, %v470_v6  ;;  %v481_v16 = vadd.f32 %v929_v12, %v911_v0 }
  0xf2   :  { %709 = vst.msk [vmem:[%s1249_s6 + $0x14] sm:$0xf] %vm703_vm3, %v786_v9  ;;  %v570_v19 = vld [vmem:[#allocation2 + $0x48] sm:$0xff]  ;;  %v472_v20 = vpop.f32.mrf.mxu1 }
  0xf3   :  { %v791_v21 = vpack.c.bf16 %v633_v13, %v633_v13  ;;  %v631_v22 = vmax.f32 %v615_v14, 0.0  ;;  %v618_v23 = vadd.f32 %v1133_v59, %v595_v15  ;;  %v593_v24 = vmul.f32 %v1127_v56, %v570_v19  ;;  %504 = vst.msk [vmem:[#allocation2 + $0x78] sm:$0xff] %vm488_vm2, %v481_v16 }
  0xf4   :  { %v473_v25 = vadd.f32 %v472_v20, %v348_v18 }
  0xf5   :  { %714 = vst.msk [vmem:[%s1249_s6 + $0x28] sm:$0xf] %vm703_vm3, %v791_v21  ;;  %v789_v26 = vpack.c.bf16 %v631_v22, %v631_v22  ;;  %v634_v27 = vmax.f32 %v618_v23, 0.0  ;;  %v616_v28 = vadd.f32 %v1133_v59, %v593_v24 }
  0xf6   :  { %v575_v29 = vld [vmem:[#allocation2 + $0x70] sm:$0xff]  ;;  %502 = vst.msk [vmem:[#allocation2 + $0x68] sm:$0xff] %vm488_vm2, %v473_v25 }
  0xf7   :  { %712 = vst.msk [vmem:[%s1249_s6 + $0x20] sm:$0xf] %vm703_vm3, %v789_v26  ;;  %v792_v30 = vpack.c.bf16 %v634_v27, %v634_v27  ;;  %v632_v31 = vmax.f32 %v616_v28, 0.0  ;;  %v598_v32 = vmul.f32 %v1127_v56, %v575_v29 }
  0xf8   :  { %v573_v33 = vld [vmem:[#allocation2 + $0x60] sm:$0xff] }
  0xf9   :  { %715 = vst.msk [vmem:[%s1249_s6 + $0x2c] sm:$0xf] %vm703_vm3, %v792_v30  ;;  %v790_v34 = vpack.c.bf16 %v632_v31, %v632_v31  ;;  %v621_v35 = vadd.f32 %v1133_v59, %v598_v32  ;;  %v596_v36 = vmul.f32 %v1127_v56, %v573_v33 }
  0xfa   :  { %v576_v37 = vld [vmem:[#allocation2 + $0x78] sm:$0xff] }
  0xfb   :  { %713 = vst.msk [vmem:[%s1249_s6 + $0x24] sm:$0xf] %vm703_vm3, %v790_v34  ;;  %v637_v38 = vmax.f32 %v621_v35, 0.0  ;;  %v619_v39 = vadd.f32 %v1133_v59, %v596_v36  ;;  %v599_v7 = vmul.f32 %v1127_v56, %v576_v37 }
  0xfd   :  { %v795_v40 = vpack.c.bf16 %v637_v38, %v637_v38  ;;  %v635_v41 = vmax.f32 %v619_v39, 0.0  ;;  %v622_v42 = vadd.f32 %v1133_v59, %v599_v7  ;;  %v574_v43 = vld [vmem:[#allocation2 + $0x68] sm:$0xff] }
  0xfe   :  { %v597_v44 = vmul.f32 %v1127_v56, %v574_v43 }
  0xff   :  { %718 = vst.msk [vmem:[%s1249_s6 + $0x38] sm:$0xf] %vm703_vm3, %v795_v40  ;;  %v793_v45 = vpack.c.bf16 %v635_v41, %v635_v41  ;;  %v638_v8 = vmax.f32 %v622_v42, 0.0 }
 0x100   :  { %v620_v10 = vadd.f32 %v1133_v59, %v597_v44 }
 0x101   :  { %716 = vst.msk [vmem:[%s1249_s6 + $0x30] sm:$0xf] %vm703_vm3, %v793_v45  ;;  %v796_v46 = vpack.c.bf16 %v638_v8, %v638_v8 }
 0x102   :  { %v636_v47 = vmax.f32 %v620_v10, 0.0 }
 0x103   :  { %719 = vst.msk [vmem:[%s1249_s6 + $0x3c] sm:$0xf] %vm703_vm3, %v796_v46 }
 0x104   :  { %v794_v56 = vpack.c.bf16 %v636_v47, %v636_v47 }
 0x106   :  { %717 = vst.msk [vmem:[%s1249_s6 + $0x34] sm:$0xf] %vm703_vm3, %v794_v56 }

// kernel: densenet_forward.14
= control target key start
LH: loop header
LB: loop body
LE: loop exit
PB: predicated region body
PF: predicated region fallthrough
CT: control target
= control target key end

     0   :  { %vm82_vm0 = vcmask 130048   ;;  %vm314_vm1 = vcmask 584704   ;;  %s590_s1 = inlined_call_operand.vmem [shape: bf16[16,72], index: 1, kind: input, shape index: {}]   ;;  %s591_s0 = inlined_call_operand.vmem [shape: bf16[128,16], index: 0, kind: input, shape index: {}]   ;;  %s592_s2 = inlined_call_operand.vmem [shape: f32[1,72], index: 2, kind: input, shape index: {}]   ;;  %s593_s3 = inlined_call_operand.vmem [shape: f32[1,72], index: 3, kind: input, shape index: {}]   ;;  %s594_s4 = inlined_call_operand.vmem [shape: bf16[128,72], index: 4, kind: output, shape index: {}]  }
   0x1   :  { %v415_v0 = vld [vmem:[%s590_s1] sm:$0xff]   ;;  %v418_v3 = vld [vmem:[%s591_s0 + $0x8] sm:$0xff]   ;;  %v420_v5 = vld [vmem:[%s591_s0 + $0x10] sm:$0xff]  }
   0x2   :  { %v416_v1 = vld [vmem:[%s591_s0] sm:$0xff]   ;;  %395 = vmatprep.subr.bf16.mxu0 %v415_v0  ;;  %413 = vmatprep.subr.bf16.mxu1 %v415_v0  ;;  %v419_v4 = vld [vmem:[%s591_s0 + $0x28] sm:$0xff]   ;;  %v421_v6 = vld [vmem:[%s591_s0 + $0x30] sm:$0xff]  }
   0x3   :  { %v417_v2 = vld [vmem:[%s591_s0 + $0x20] sm:$0xff]   ;;  %396 = vmatpush3.bf16.msra.mxu0 %v415_v0  ;;  %414 = vmatpush3.bf16.msra.mxu1 %v415_v0  ;;  %v422_v7 = vld [vmem:[%s591_s0 + $0x18] sm:$0xff]  }
   0x4   :  { %397 = vmatprep.mubr.msk.bf16.mxu0 %vm82_vm0, %v416_v1  ;;  %405 = vmatprep.mubr.msk.bf16.mxu1 %vm82_vm0, %v417_v2  ;;  %v423_v8 = vld [vmem:[%s591_s0 + $0x38] sm:$0xff]   ;;  %v487_v9 = vld [vmem:[%s592_s2] ss:$0 sm:$0xff] }
   0x5   :  { %v492_v11 = vld [vmem:[%s593_s3] ss:$0 sm:$0xff] }
   0x6   :  { %398 = vmatmul.mubr.msk.bf16.vlgmr.msra.gmra.mxu0 %vm82_vm0, %v418_v3  ;;  %406 = vmatmul.mubr.msk.bf16.vlgmr.msra.gmra.mxu1 %vm82_vm0, %v419_v4 }
   0x7   :  { %401 = vmatprep.mubr.msk.bf16.mxu0 %vm82_vm0, %v420_v5  ;;  %409 = vmatprep.mubr.msk.bf16.mxu1 %vm82_vm0, %v421_v6 }
   0xe   :  { %402 = vmatmul.mubr.msk.bf16.gmra.mxu0 %vm82_vm0, %v422_v7  ;;  %410 = vmatmul.mubr.msk.bf16.gmra.mxu1 %vm82_vm0, %v423_v8 }
  0xc6   :  { %v399_v10 = vpop.f32.mrf.mxu0  ;;  %v407_v12 = vpop.f32.mrf.mxu1 }
  0xc7   :  { %v213_v13 = vmul.f32 %v399_v10, %v487_v9  ;;  %v221_v14 = vmul.f32 %v407_v12, %v487_v9 }
  0xc8   :  { %v141_v15 = vpop.f32.mrf.mxu0  ;;  %v173_v16 = vpop.f32.mrf.mxu1 }
  0xc9   :  { %v236_v17 = vadd.f32 %v492_v11, %v213_v13  ;;  %v244_v18 = vadd.f32 %v492_v11, %v221_v14  ;;  %v211_v19 = vmul.f32 %v487_v9, %v141_v15  ;;  %v219_v20 = vmul.f32 %v487_v9, %v173_v16 }
  0xca   :  { %v400_v21 = vpop.f32.mrf.mxu0  ;;  %v408_v22 = vpop.f32.mrf.mxu1 }
  0xcb   :  { %v372_v23 = vpack.c.bf16 %v236_v17, %v236_v17  ;;  %v380_v24 = vpack.c.bf16 %v244_v18, %v244_v18  ;;  %v234_v25 = vadd.f32 %v492_v11, %v211_v19  ;;  %v242_v26 = vadd.f32 %v492_v11, %v219_v20 }
  0xcc   :  { %v214_v27 = vmul.f32 %v400_v21, %v487_v9  ;;  %v222_v28 = vmul.f32 %v408_v22, %v487_v9  ;;  %v144_v29 = vpop.f32.mrf.mxu0  ;;  %v176_v30 = vpop.f32.mrf.mxu1 }
  0xcd   :  { %317 = vst.msk [vmem:[%s594_s4 + $0x8] sm:$0xf] %vm314_vm1, %v372_v23  ;;  %325 = vst.msk [vmem:[%s594_s4 + $0x28] sm:$0xf] %vm314_vm1, %v380_v24  ;;  %v370_v31 = vpack.c.bf16 %v234_v25, %v234_v25  ;;  %v378_v32 = vpack.c.bf16 %v242_v26, %v242_v26  ;;  %v212_v33 = vmul.f32 %v487_v9, %v144_v29 }
  0xce   :  { %v220_v34 = vmul.f32 %v487_v9, %v176_v30  ;;  %v237_v35 = vadd.f32 %v492_v11, %v214_v27  ;;  %v245_v36 = vadd.f32 %v492_v11, %v222_v28  ;;  %v403_v37 = vpop.f32.mrf.mxu0  ;;  %v411_v38 = vpop.f32.mrf.mxu1 }
  0xcf   :  { %315 = vst.msk [vmem:[%s594_s4] sm:$0xf] %vm314_vm1, %v370_v31  ;;  %323 = vst.msk [vmem:[%s594_s4 + $0x20] sm:$0xf] %vm314_vm1, %v378_v32  ;;  %v235_v39 = vadd.f32 %v492_v11, %v212_v33  ;;  %v217_v41 = vmul.f32 %v403_v37, %v487_v9  ;;  %v225_v42 = vmul.f32 %v411_v38, %v487_v9 }
  0xd0   :  { %v243_v40 = vadd.f32 %v492_v11, %v220_v34  ;;  %v373_v43 = vpack.c.bf16 %v237_v35, %v237_v35  ;;  %v381_v44 = vpack.c.bf16 %v245_v36, %v245_v36  ;;  %v157_v45 = vpop.f32.mrf.mxu0  ;;  %v189_v46 = vpop.f32.mrf.mxu1 }
  0xd1   :  { %v371_v47 = vpack.c.bf16 %v235_v39, %v235_v39  ;;  %v240_v49 = vadd.f32 %v492_v11, %v217_v41  ;;  %v248_v50 = vadd.f32 %v492_v11, %v225_v42  ;;  %v215_v51 = vmul.f32 %v487_v9, %v157_v45 }
  0xd2   :  { %v379_v48 = vpack.c.bf16 %v243_v40, %v243_v40  ;;  %318 = vst.msk [vmem:[%s594_s4 + $0xc] sm:$0xf] %vm314_vm1, %v373_v43  ;;  %326 = vst.msk [vmem:[%s594_s4 + $0x2c] sm:$0xf] %vm314_vm1, %v381_v44  ;;  %v223_v52 = vmul.f32 %v487_v9, %v189_v46  ;;  %v404_v53 = vpop.f32.mrf.mxu0  ;;  %v412_v54 = vpop.f32.mrf.mxu1 }
  0xd3   :  { %316 = vst.msk [vmem:[%s594_s4 + $0x4] sm:$0xf] %vm314_vm1, %v371_v47  ;;  %v376_v55 = vpack.c.bf16 %v240_v49, %v240_v49  ;;  %v384_v56 = vpack.c.bf16 %v248_v50, %v248_v50  ;;  %v218_v57 = vmul.f32 %v404_v53, %v487_v9  ;;  %v226_v58 = vmul.f32 %v412_v54, %v487_v9 }
  0xd4   :  { %324 = vst.msk [vmem:[%s594_s4 + $0x24] sm:$0xf] %vm314_vm1, %v379_v48  ;;  %v238_v59 = vadd.f32 %v492_v11, %v215_v51  ;;  %v246_v60 = vadd.f32 %v492_v11, %v223_v52  ;;  %v160_v61 = vpop.f32.mrf.mxu0  ;;  %v192_v62 = vpop.f32.mrf.mxu1 }
  0xd5   :  { %321 = vst.msk [vmem:[%s594_s4 + $0x18] sm:$0xf] %vm314_vm1, %v376_v55  ;;  %329 = vst.msk [vmem:[%s594_s4 + $0x38] sm:$0xf] %vm314_vm1, %v384_v56  ;;  %v241_v63 = vadd.f32 %v492_v11, %v218_v57  ;;  %v249_v0 = vadd.f32 %v492_v11, %v226_v58  ;;  %v216_v1 = vmul.f32 %v487_v9, %v160_v61 }
  0xd6   :  { %v224_v2 = vmul.f32 %v487_v9, %v192_v62  ;;  %v374_v3 = vpack.c.bf16 %v238_v59, %v238_v59  ;;  %v382_v4 = vpack.c.bf16 %v246_v60, %v246_v60 }
  0xd7   :  { %v377_v5 = vpack.c.bf16 %v241_v63, %v241_v63  ;;  %v385_v6 = vpack.c.bf16 %v249_v0, %v249_v0  ;;  %v239_v7 = vadd.f32 %v492_v11, %v216_v1 }
  0xd8   :  { %v247_v8 = vadd.f32 %v492_v11, %v224_v2  ;;  %319 = vst.msk [vmem:[%s594_s4 + $0x10] sm:$0xf] %vm314_vm1, %v374_v3  ;;  %327 = vst.msk [vmem:[%s594_s4 + $0x30] sm:$0xf] %vm314_vm1, %v382_v4 }
  0xd9   :  { %322 = vst.msk [vmem:[%s594_s4 + $0x1c] sm:$0xf] %vm314_vm1, %v377_v5  ;;  %330 = vst.msk [vmem:[%s594_s4 + $0x3c] sm:$0xf] %vm314_vm1, %v385_v6  ;;  %v375_v9 = vpack.c.bf16 %v239_v7, %v239_v7 }
  0xda   :  { %v383_v10 = vpack.c.bf16 %v247_v8, %v247_v8 }
  0xdb   :  { %320 = vst.msk [vmem:[%s594_s4 + $0x14] sm:$0xf] %vm314_vm1, %v375_v9 }
  0xdc   :  { %328 = vst.msk [vmem:[%s594_s4 + $0x34] sm:$0xf] %vm314_vm1, %v383_v10 }

// kernel: densenet_forward.15
= control target key start
LH: loop header
LB: loop body
LE: loop exit
PB: predicated region body
PF: predicated region fallthrough
CT: control target
= control target key end

     0   :  { %vm259_vm0 = vcmask 1043456   ;;  %vm234_vm1 = vcmask 64512   ;;  %vm735_vm2 = vcmask 130048   ;;  %vm950_vm3 = vcmask 125952   ;;  %s1698_s1 = inlined_call_operand.vmem [shape: bf16[3,8,16], index: 1, kind: input, shape index: {}]   ;;  %s1699_s0 = inlined_call_operand.vmem [shape: bf16[16,128,8], index: 0, kind: input, shape index: {}]   ;;  %s1700_s2 = inlined_call_operand.vmem [shape: f32[3,1,8], index: 2, kind: input, shape index: {}]   ;;  %s1701_s3 = inlined_call_operand.vmem [shape: f32[3,1,8], index: 3, kind: input, shape index: {}]   ;;  %s1702_s4 = inlined_call_operand.vmem [shape: f32[1,16], index: 4, kind: input, shape index: {}]   ;;  %s1703_s5 = inlined_call_operand.vmem [shape: f32[1,16], index: 5, kind: input, shape index: {}]   ;;  %s1704_s6 = inlined_call_operand.vmem [shape: bf16[128,16], index: 6, kind: output, shape index: {}]  }
   0x1   :  { %v993_v0 = vld [vmem:[%s1698_s1 + $0x4] sm:$0xf]  ;;  %v1326_v3 = vld [vmem:[%s1700_s2 + $0x1] ss:$0 sm:$0xff]  ;;  %v1177_v11 = vld [vmem:[%s1699_s0 + $0x48] sm:$0xff]  }
   0x2   :  { %1276 = vmatprep.subr.msk.bf16.mxu1 %vm259_vm0, %v993_v0  ;;  %1275 = vmatprep.subr.msk.bf16.mxu0 %vm259_vm0, %v993_v0  ;;  %v261_v1 = vsel %vm259_vm0, %v993_v0, 0  ;;  %v1176_v2 = vld [vmem:[%s1699_s0 + $0x40] sm:$0xff]   ;;  %v1181_v12 = vld [vmem:[%s1699_s0 + $0x68] sm:$0xff]   ;;  %v1111_v15 = vunpack.c.l.bf16 %v1177_v11  ;;  %v1112_v16 = vunpack.c.h.bf16 %v1177_v11  ;;  %v1178_v38 = vld [vmem:[%s1699_s0 + $0x50] sm:$0xff]  }
   0x3   :  { %1274 = vmatpush3.bf16.msra.mxu1 %v261_v1  ;;  %1220 = vmatpush3.bf16.msra.mxu0 %v261_v1  ;;  %v1107_v4 = vunpack.c.l.bf16 %v1176_v2  ;;  %v1108_v5 = vunpack.c.h.bf16 %v1176_v2  ;;  %v1331_v6 = vld [vmem:[%s1701_s3 + $0x1] ss:$0 sm:$0xff]  ;;  %v1030_v17 = vld [vmem:[%s1698_s1 + $0x8] sm:$0xf]  ;;  %v1127_v20 = vunpack.c.l.bf16 %v1181_v12  ;;  %v1128_v21 = vunpack.c.h.bf16 %v1181_v12  ;;  %v1182_v39 = vld [vmem:[%s1699_s0 + $0x70] sm:$0xff]  }
   0x4   :  { %v1180_v7 = vld [vmem:[%s1699_s0 + $0x60] sm:$0xff]   ;;  %1278 = vmatprep.subr.msk.bf16.mxu0 %vm259_vm0, %v1030_v17  ;;  %v170_v24 = vmul.f32 %v1111_v15, %v1326_v3  ;;  %v171_v25 = vmul.f32 %v1112_v16, %v1326_v3  ;;  %v1179_v44 = vld [vmem:[%s1699_s0 + $0x58] sm:$0xff]   ;;  %v616_v48 = vsel %vm259_vm0, %v1030_v17, 0  ;;  %v1115_v51 = vunpack.c.l.bf16 %v1178_v38 }
   0x5   :  { %v1123_v8 = vunpack.c.l.bf16 %v1180_v7  ;;  %v1124_v9 = vunpack.c.h.bf16 %v1180_v7  ;;  %v126_v10 = vld [vmem:[%s1698_s1] sm:$0xf]  ;;  %v168_v13 = vmul.f32 %v1107_v4, %v1326_v3  ;;  %v169_v14 = vmul.f32 %v1108_v5, %v1326_v3  ;;  %v1183_v49 = vld [vmem:[%s1699_s0 + $0x78] sm:$0xff]  }
   0x6   :  { %1277 = vmatprep.subr.msk.bf16.mxu1 %vm259_vm0, %v126_v10  ;;  %v178_v28 = vmul.f32 %v1127_v20, %v1326_v3  ;;  %v179_v29 = vmul.f32 %v1128_v21, %v1326_v3  ;;  %v194_v32 = vadd.f32 %v1331_v6, %v170_v24  ;;  %v195_v33 = vadd.f32 %v1331_v6, %v171_v25  ;;  %v1074_v12 = vld [vmem:[%s1699_s0] sm:$0xff]  }
   0x7   :  { %v176_v18 = vmul.f32 %v1123_v8, %v1326_v3  ;;  %v177_v19 = vmul.f32 %v1124_v9, %v1326_v3  ;;  %v192_v22 = vadd.f32 %v1331_v6, %v168_v13  ;;  %v193_v23 = vadd.f32 %v1331_v6, %v169_v14  ;;  %v1184_v17 = vld [vmem:[%s1699_s0 + $0x80] sm:$0xff]  }
   0x8   :  { %v202_v36 = vadd.f32 %v1331_v6, %v178_v28  ;;  %v203_v37 = vadd.f32 %v1331_v6, %v179_v29  ;;  %v210_v41 = vmax.f32 %v194_v32, 0.0  ;;  %v211_v42 = vmax.f32 %v195_v33, 0.0  ;;  %v1185_v28 = vld [vmem:[%s1699_s0 + $0x88] sm:$0xff]   ;;  %v1430_v33 = vld [vmem:[%s1701_s3 + $0x2] ss:$0 sm:$0xff] }
   0x9   :  { %v200_v26 = vadd.f32 %v1331_v6, %v176_v18  ;;  %v201_v27 = vadd.f32 %v1331_v6, %v177_v19  ;;  %v208_v30 = vmax.f32 %v192_v22, 0.0  ;;  %v209_v31 = vmax.f32 %v193_v23, 0.0  ;;  %v1408_v18 = vld [vmem:[%s1700_s2] ss:$0 sm:$0xff]  ;;  %v1169_v22 = vld [vmem:[%s1699_s0 + $0x8] sm:$0xff]  }
   0xa   :  { %v385_v43 = vsel %vm259_vm0, %v126_v10, 0  ;;  %v218_v46 = vmax.f32 %v202_v36, 0.0  ;;  %v219_v47 = vmax.f32 %v203_v37, 0.0  ;;  %v225_v50 = vpack.c.bf16 %v211_v42, %v210_v41  ;;  %v1417_v23 = vld [vmem:[%s1700_s2 + $0x2] ss:$0 sm:$0xff] }
   0xb   :  { %v216_v34 = vmax.f32 %v200_v26, 0.0  ;;  %v217_v35 = vmax.f32 %v201_v27, 0.0  ;;  %v224_v40 = vpack.c.bf16 %v209_v31, %v208_v30  ;;  %v1116_v52 = vunpack.c.h.bf16 %v1178_v38 }
   0xc   :  { %v1131_v53 = vunpack.c.l.bf16 %v1182_v39  ;;  %v229_v54 = vpack.c.bf16 %v219_v47, %v218_v46  ;;  %v1132_v55 = vunpack.c.h.bf16 %v1182_v39  ;;  %v1119_v56 = vunpack.c.l.bf16 %v1179_v44 }
   0xd   :  { %v228_v45 = vpack.c.bf16 %v217_v35, %v216_v34  ;;  %1221 = vmatprep.mubr.msk.bf16.mxu0 %vm234_vm1, %v224_v40  ;;  %v1120_v57 = vunpack.c.h.bf16 %v1179_v44  ;;  %v172_v58 = vmul.f32 %v1115_v51, %v1326_v3  ;;  %v173_v59 = vmul.f32 %v1116_v52, %v1326_v3 }
   0xe   :  { %1222 = vmatmul.mubr.msk.bf16.vlgmr.msra.gmra.mxu0 %vm234_vm1, %v225_v50  ;;  %v180_v60 = vmul.f32 %v1131_v53, %v1326_v3  ;;  %v1135_v61 = vunpack.c.l.bf16 %v1183_v49  ;;  %v181_v62 = vmul.f32 %v1132_v55, %v1326_v3  ;;  %v174_v63 = vmul.f32 %v1119_v56, %v1326_v3  ;;  %v1170_v50 = vld [vmem:[%s1699_s0 + $0x10] sm:$0xff]  }
   0xf   :  { %1229 = vmatprep.mubr.msk.bf16.mxu1 %vm234_vm1, %v228_v45  ;;  %1256 = vmatpush3.bf16.msra.mxu0 %v616_v48  ;;  %v175_v0 = vmul.f32 %v1120_v57, %v1326_v3  ;;  %v1136_v1 = vunpack.c.h.bf16 %v1183_v49  ;;  %v196_v2 = vadd.f32 %v1331_v6, %v172_v58  ;;  %v197_v4 = vadd.f32 %v1331_v6, %v173_v59  ;;  %v1186_v59 = vld [vmem:[%s1699_s0 + $0x90] sm:$0xff]  }
  0x10   :  { %1230 = vmatmul.mubr.msk.bf16.vlgmr.msra.gmra.mxu1 %vm234_vm1, %v229_v54  ;;  %v204_v5 = vadd.f32 %v1331_v6, %v180_v60  ;;  %v182_v7 = vmul.f32 %v1135_v61, %v1326_v3  ;;  %v205_v8 = vadd.f32 %v1331_v6, %v181_v62  ;;  %v198_v9 = vadd.f32 %v1331_v6, %v174_v63 }
  0x11   :  { %1238 = vmatpush3.bf16.msra.mxu1 %v385_v43  ;;  %v199_v10 = vadd.f32 %v1331_v6, %v175_v0  ;;  %v183_v11 = vmul.f32 %v1136_v1, %v1326_v3  ;;  %v212_v13 = vmax.f32 %v196_v2, 0.0  ;;  %v213_v14 = vmax.f32 %v197_v4, 0.0  ;;  %v1171_v0 = vld [vmem:[%s1699_s0 + $0x18] sm:$0xff]  }
  0x12   :  { %v220_v15 = vmax.f32 %v204_v5, 0.0  ;;  %v206_v16 = vadd.f32 %v1331_v6, %v182_v7  ;;  %v221_v19 = vmax.f32 %v205_v8, 0.0  ;;  %v214_v3 = vmax.f32 %v198_v9, 0.0 }
  0x13   :  { %v215_v20 = vmax.f32 %v199_v10, 0.0  ;;  %v207_v21 = vadd.f32 %v1331_v6, %v183_v11  ;;  %v226_v24 = vpack.c.bf16 %v213_v14, %v212_v13  ;;  %v1075_v26 = vunpack.c.l.bf16 %v1074_v12  ;;  %v1425_v6 = vld [vmem:[%s1701_s3] ss:$0 sm:$0xff]  ;;  %v1187_v11 = vld [vmem:[%s1699_s0 + $0x98] sm:$0xff]  }
  0x14   :  { %v222_v25 = vmax.f32 %v206_v16, 0.0  ;;  %v1076_v27 = vunpack.c.h.bf16 %v1074_v12  ;;  %v230_v29 = vpack.c.bf16 %v221_v19, %v220_v15  ;;  %v1139_v32 = vunpack.c.l.bf16 %v1184_v17 }
  0x15   :  { %v227_v30 = vpack.c.bf16 %v215_v20, %v214_v3  ;;  %v223_v31 = vmax.f32 %v207_v21, 0.0  ;;  %1225 = vmatprep.mubr.msk.bf16.mxu0 %vm234_vm1, %v226_v24  ;;  %v63_v34 = vmul.f32 %v1075_v26, %v1408_v18  ;;  %v1140_v36 = vunpack.c.h.bf16 %v1184_v17 }
  0x16   :  { %v64_v35 = vmul.f32 %v1076_v27, %v1408_v18  ;;  %v1079_v37 = vunpack.c.l.bf16 %v1169_v22  ;;  %1233 = vmatprep.mubr.msk.bf16.mxu1 %vm234_vm1, %v230_v29  ;;  %v525_v39 = vmul.f32 %v1139_v32, %v1417_v23  ;;  %v1080_v40 = vunpack.c.h.bf16 %v1169_v22 }
  0x17   :  { %1226 = vmatmul.mubr.msk.bf16.gmra.mxu0 %vm234_vm1, %v227_v30  ;;  %v231_v38 = vpack.c.bf16 %v223_v31, %v222_v25  ;;  %v1143_v41 = vunpack.c.l.bf16 %v1185_v28  ;;  %v86_v42 = vadd.f32 %v1425_v6, %v63_v34  ;;  %v526_v44 = vmul.f32 %v1140_v36, %v1417_v23  ;;  %v1172_v25 = vld [vmem:[%s1699_s0 + $0x20] sm:$0xff]  }
  0x18   :  { %v87_v43 = vadd.f32 %v1425_v6, %v64_v35  ;;  %v65_v45 = vmul.f32 %v1079_v37, %v1408_v18  ;;  %v549_v46 = vadd.f32 %v1430_v33, %v525_v39  ;;  %v66_v47 = vmul.f32 %v1080_v40, %v1408_v18  ;;  %v1188_v39 = vld [vmem:[%s1699_s0 + $0xa0] sm:$0xff]  }
  0x19   :  { %1234 = vmatmul.mubr.msk.bf16.gmra.mxu1 %vm234_vm1, %v231_v38  ;;  %v1144_v48 = vunpack.c.h.bf16 %v1185_v28  ;;  %v527_v49 = vmul.f32 %v1143_v41, %v1417_v23  ;;  %v102_v51 = vmax.f32 %v86_v42, 0.0  ;;  %v550_v53 = vadd.f32 %v1430_v33, %v526_v44  ;;  %v1173_v44 = vld [vmem:[%s1699_s0 + $0x28] sm:$0xff]  }
  0x1a   :  { %v103_v52 = vmax.f32 %v87_v43, 0.0  ;;  %v88_v54 = vadd.f32 %v1425_v6, %v65_v45  ;;  %v565_v55 = vmax.f32 %v549_v46, 0.0  ;;  %v89_v56 = vadd.f32 %v1425_v6, %v66_v47 }
  0x1b   :  { %v528_v57 = vmul.f32 %v1144_v48, %v1417_v23  ;;  %v551_v58 = vadd.f32 %v1430_v33, %v527_v49  ;;  %v566_v61 = vmax.f32 %v550_v53, 0.0  ;;  %v1083_v63 = vunpack.c.l.bf16 %v1170_v50  ;;  %v1189_v53 = vld [vmem:[%s1699_s0 + $0xa8] sm:$0xff]  }
  0x1c   :  { %v118_v60 = vpack.c.bf16 %v103_v52, %v102_v51  ;;  %v104_v62 = vmax.f32 %v88_v54, 0.0  ;;  %v105_v1 = vmax.f32 %v89_v56, 0.0  ;;  %v1084_v5 = vunpack.c.h.bf16 %v1170_v50 }
  0x1d   :  { %v552_v2 = vadd.f32 %v1430_v33, %v528_v57  ;;  %v567_v4 = vmax.f32 %v551_v58, 0.0  ;;  %v581_v7 = vpack.c.bf16 %v566_v61, %v565_v55  ;;  %v67_v8 = vmul.f32 %v1083_v63, %v1408_v18 }
  0x1e   :  { %1239 = vmatprep.mubr.msk.bf16.mxu1 %vm234_vm1, %v118_v60  ;;  %v1147_v9 = vunpack.c.l.bf16 %v1186_v59  ;;  %v1148_v10 = vunpack.c.h.bf16 %v1186_v59  ;;  %v119_v12 = vpack.c.bf16 %v105_v1, %v104_v62  ;;  %v68_v14 = vmul.f32 %v1084_v5, %v1408_v18 }
  0x1f   :  { %v568_v13 = vmax.f32 %v552_v2, 0.0  ;;  %v1087_v15 = vunpack.c.l.bf16 %v1171_v0  ;;  %1257 = vmatprep.mubr.msk.bf16.mxu0 %vm234_vm1, %v581_v7  ;;  %v90_v16 = vadd.f32 %v1425_v6, %v67_v8  ;;  %v1088_v3 = vunpack.c.h.bf16 %v1171_v0  ;;  %v1174_v2 = vld [vmem:[%s1699_s0 + $0x30] sm:$0xff]  }
  0x20   :  { %v529_v17 = vmul.f32 %v1147_v9, %v1417_v23  ;;  %v530_v19 = vmul.f32 %v1148_v10, %v1417_v23  ;;  %v91_v21 = vadd.f32 %v1425_v6, %v68_v14  ;;  %v1151_v24 = vunpack.c.l.bf16 %v1187_v11 }
  0x21   :  { %1240 = vmatmul.mubr.msk.bf16.vlgmr.msra.gmra.mxu1 %vm234_vm1, %v119_v12  ;;  %v582_v20 = vpack.c.bf16 %v568_v13, %v567_v4  ;;  %v69_v22 = vmul.f32 %v1087_v15, %v1408_v18  ;;  %v106_v26 = vmax.f32 %v90_v16, 0.0  ;;  %v70_v29 = vmul.f32 %v1088_v3, %v1408_v18 }
  0x22   :  { %v553_v27 = vadd.f32 %v1430_v33, %v529_v17  ;;  %v554_v28 = vadd.f32 %v1430_v33, %v530_v19  ;;  %v107_v30 = vmax.f32 %v91_v21, 0.0  ;;  %v1152_v32 = vunpack.c.h.bf16 %v1187_v11  ;;  %v1190_v17 = vld [vmem:[%s1699_s0 + $0xb0] sm:$0xff]  }
  0x23   :  { %1258 = vmatmul.mubr.msk.bf16.vlgmr.msra.gmra.mxu0 %vm234_vm1, %v582_v20  ;;  %v92_v31 = vadd.f32 %v1425_v6, %v69_v22  ;;  %v531_v34 = vmul.f32 %v1151_v24, %v1417_v23  ;;  %v93_v37 = vadd.f32 %v1425_v6, %v70_v29  ;;  %v1091_v38 = vunpack.c.l.bf16 %v1172_v25  ;;  %v1175_v22 = vld [vmem:[%s1699_s0 + $0x38] sm:$0xff]  }
  0x24   :  { %v569_v35 = vmax.f32 %v553_v27, 0.0  ;;  %v570_v36 = vmax.f32 %v554_v28, 0.0  ;;  %v120_v40 = vpack.c.bf16 %v107_v30, %v106_v26  ;;  %v532_v42 = vmul.f32 %v1152_v32, %v1417_v23  ;;  %v1191_v32 = vld [vmem:[%s1699_s0 + $0xb8] sm:$0xff]  }
  0x25   :  { %v108_v41 = vmax.f32 %v92_v31, 0.0  ;;  %v555_v43 = vadd.f32 %v1430_v33, %v531_v34  ;;  %v109_v46 = vmax.f32 %v93_v37, 0.0  ;;  %v1092_v47 = vunpack.c.h.bf16 %v1172_v25 }
  0x26   :  { %v583_v45 = vpack.c.bf16 %v570_v36, %v569_v35  ;;  %v71_v48 = vmul.f32 %v1091_v38, %v1408_v18  ;;  %1243 = vmatprep.mubr.msk.bf16.mxu1 %vm234_vm1, %v120_v40  ;;  %v556_v49 = vadd.f32 %v1430_v33, %v532_v42  ;;  %v1155_v51 = vunpack.c.l.bf16 %v1188_v39 }
  0x27   :  { %v571_v50 = vmax.f32 %v555_v43, 0.0  ;;  %v1156_v52 = vunpack.c.h.bf16 %v1188_v39  ;;  %v121_v54 = vpack.c.bf16 %v109_v46, %v108_v41  ;;  %v72_v55 = vmul.f32 %v1092_v47, %v1408_v18 }
  0x28   :  { %1261 = vmatprep.mubr.msk.bf16.mxu0 %vm234_vm1, %v583_v45  ;;  %v94_v56 = vadd.f32 %v1425_v6, %v71_v48  ;;  %v1095_v57 = vunpack.c.l.bf16 %v1173_v44  ;;  %v572_v58 = vmax.f32 %v556_v49, 0.0  ;;  %v533_v59 = vmul.f32 %v1155_v51, %v1417_v23 }
  0x29   :  { %v534_v60 = vmul.f32 %v1156_v52, %v1417_v23  ;;  %v1096_v61 = vunpack.c.h.bf16 %v1173_v44  ;;  %1244 = vmatmul.mubr.msk.bf16.gmra.mxu1 %vm234_vm1, %v121_v54  ;;  %v95_v62 = vadd.f32 %v1425_v6, %v72_v55  ;;  %v1159_v1 = vunpack.c.l.bf16 %v1189_v53 }
  0x2a   :  { %v110_v63 = vmax.f32 %v94_v56, 0.0  ;;  %v73_v0 = vmul.f32 %v1095_v57, %v1408_v18  ;;  %v584_v4 = vpack.c.bf16 %v572_v58, %v571_v50  ;;  %v557_v5 = vadd.f32 %v1430_v33, %v533_v59 }
  0x2b   :  { %v558_v7 = vadd.f32 %v1430_v33, %v534_v60  ;;  %v74_v8 = vmul.f32 %v1096_v61, %v1408_v18  ;;  %v111_v9 = vmax.f32 %v95_v62, 0.0  ;;  %v1160_v11 = vunpack.c.h.bf16 %v1189_v53 }
  0x2c   :  { %v96_v10 = vadd.f32 %v1425_v6, %v73_v0  ;;  %v535_v12 = vmul.f32 %v1159_v1, %v1417_v23  ;;  %1262 = vmatmul.mubr.msk.bf16.gmra.mxu0 %vm234_vm1, %v584_v4  ;;  %v573_v13 = vmax.f32 %v557_v5, 0.0  ;;  %v1099_v16 = vunpack.c.l.bf16 %v1174_v2 }
  0x2d   :  { %v574_v14 = vmax.f32 %v558_v7, 0.0  ;;  %v97_v15 = vadd.f32 %v1425_v6, %v74_v8  ;;  %v122_v19 = vpack.c.bf16 %v111_v9, %v110_v63  ;;  %v536_v20 = vmul.f32 %v1160_v11, %v1417_v23 }
  0x2e   :  { %v112_v3 = vmax.f32 %v96_v10, 0.0  ;;  %v559_v21 = vadd.f32 %v1430_v33, %v535_v12  ;;  %v1100_v26 = vunpack.c.h.bf16 %v1174_v2  ;;  %v75_v27 = vmul.f32 %v1099_v16, %v1408_v18 }
  0x2f   :  { %v585_v24 = vpack.c.bf16 %v574_v14, %v573_v13  ;;  %v113_v25 = vmax.f32 %v97_v15, 0.0  ;;  %1247 = vmatprep.mubr.msk.bf16.mxu1 %vm234_vm1, %v122_v19  ;;  %v560_v28 = vadd.f32 %v1430_v33, %v536_v20  ;;  %v1163_v30 = vunpack.c.l.bf16 %v1190_v17 }
  0x30   :  { %v575_v29 = vmax.f32 %v559_v21, 0.0  ;;  %v1164_v31 = vunpack.c.h.bf16 %v1190_v17  ;;  %v76_v35 = vmul.f32 %v1100_v26, %v1408_v18  ;;  %v98_v36 = vadd.f32 %v1425_v6, %v75_v27 }
  0x31   :  { %1265 = vmatprep.mubr.msk.bf16.mxu0 %vm234_vm1, %v585_v24  ;;  %v123_v34 = vpack.c.bf16 %v113_v25, %v112_v3  ;;  %v1103_v37 = vunpack.c.l.bf16 %v1175_v22  ;;  %v576_v38 = vmax.f32 %v560_v28, 0.0  ;;  %v537_v39 = vmul.f32 %v1163_v30, %v1417_v23 }
  0x32   :  { %v538_v40 = vmul.f32 %v1164_v31, %v1417_v23  ;;  %v1104_v41 = vunpack.c.h.bf16 %v1175_v22  ;;  %v99_v42 = vadd.f32 %v1425_v6, %v76_v35  ;;  %v114_v43 = vmax.f32 %v98_v36, 0.0 }
  0x33   :  { %1248 = vmatmul.mubr.msk.bf16.gmra.mxu1 %vm234_vm1, %v123_v34  ;;  %v77_v44 = vmul.f32 %v1103_v37, %v1408_v18  ;;  %v1167_v45 = vunpack.c.l.bf16 %v1191_v32  ;;  %v586_v46 = vpack.c.bf16 %v576_v38, %v575_v29  ;;  %v561_v47 = vadd.f32 %v1430_v33, %v537_v39  ;;  %v1574_v37 = vld [vmem:[%s1702_s4] ss:$0 sm:$0xff] }
  0x34   :  { %v562_v48 = vadd.f32 %v1430_v33, %v538_v40  ;;  %v78_v49 = vmul.f32 %v1104_v41, %v1408_v18  ;;  %v115_v50 = vmax.f32 %v99_v42, 0.0  ;;  %v1168_v52 = vunpack.c.h.bf16 %v1191_v32  ;;  %v1580_v41 = vld [vmem:[%s1703_s5] ss:$0 sm:$0xff] }
  0x35   :  { %v100_v51 = vadd.f32 %v1425_v6, %v77_v44  ;;  %v539_v53 = vmul.f32 %v1167_v45, %v1417_v23  ;;  %1266 = vmatmul.mubr.msk.bf16.gmra.mxu0 %vm234_vm1, %v586_v46  ;;  %v577_v54 = vmax.f32 %v561_v47, 0.0 }
  0x36   :  { %v578_v55 = vmax.f32 %v562_v48, 0.0  ;;  %v101_v56 = vadd.f32 %v1425_v6, %v78_v49  ;;  %v124_v57 = vpack.c.bf16 %v115_v50, %v114_v43  ;;  %v540_v59 = vmul.f32 %v1168_v52, %v1417_v23 }
  0x37   :  { %v116_v58 = vmax.f32 %v100_v51, 0.0  ;;  %v563_v60 = vadd.f32 %v1430_v33, %v539_v53 }
  0x38   :  { %v587_v61 = vpack.c.bf16 %v578_v55, %v577_v54  ;;  %v117_v18 = vmax.f32 %v101_v56, 0.0  ;;  %1251 = vmatprep.mubr.msk.bf16.mxu1 %vm234_vm1, %v124_v57  ;;  %v564_v62 = vadd.f32 %v1430_v33, %v540_v59 }
  0x39   :  { %v579_v63 = vmax.f32 %v563_v60, 0.0 }
  0x3a   :  { %1269 = vmatprep.mubr.msk.bf16.mxu0 %vm234_vm1, %v587_v61  ;;  %v125_v0 = vpack.c.bf16 %v117_v18, %v116_v58  ;;  %v580_v1 = vmax.f32 %v564_v62, 0.0 }
  0x3c   :  { %1252 = vmatmul.mubr.msk.bf16.gmra.mxu1 %vm234_vm1, %v125_v0  ;;  %v588_v6 = vpack.c.bf16 %v580_v1, %v579_v63 }
  0x3e   :  { %1270 = vmatmul.mubr.msk.bf16.gmra.mxu0 %vm234_vm1, %v588_v6 }
  0xce   :  { %v1223_v2 = vpop.f32.mrf.mxu0 }
  0xd0   :  { %v1552_v23 = vpop.f32.mrf.mxu1  ;;  %v297_v4 = vpop.f32.mrf.mxu0 }
  0xd2   :  { %v1554_v5 = vpop.f32.mrf.mxu1  ;;  %v1224_v7 = vpop.f32.mrf.mxu0 }
  0xd4   :  { %v1556_v8 = vpop.f32.mrf.mxu1  ;;  %v300_v33 = vpop.f32.mrf.mxu0 }
  0xd6   :  { %v1558_v9 = vpop.f32.mrf.mxu1 }
  0xd7   :  { %v1227_v10 = vpop.f32.mrf.mxu0 }
  0xd9   :  { %v1560_v11 = vpop.f32.mrf.mxu1  ;;  %v313_v12 = vpop.f32.mrf.mxu0 }
  0xdb   :  { %v1562_v13 = vpop.f32.mrf.mxu1  ;;  %v1228_v14 = vpop.f32.mrf.mxu0 }
  0xdd   :  { %v1564_v15 = vpop.f32.mrf.mxu1  ;;  %v316_v16 = vpop.f32.mrf.mxu0 }
  0xdf   :  { %v1566_v17 = vpop.f32.mrf.mxu1 }
  0xe1   :  { %v1241_v19 = vpop.f32.mrf.mxu1 }
  0xe2   :  { %v430_v3 = vadd.f32 %v1241_v19, %v1223_v2 }
  0xe3   :  { %v1259_v20 = vpop.f32.mrf.mxu0  ;;  %v421_v21 = vpop.f32.mrf.mxu1 }
  0xe4   :  { %v717_v22 = vadd.f32 %v1259_v20, %v430_v3  ;;  %v422_v24 = vadd.f32 %v421_v21, %v297_v4 }
  0xe5   :  { %v652_v25 = vpop.f32.mrf.mxu0  ;;  %v1242_v26 = vpop.f32.mrf.mxu1 }
  0xe6   :  { %738 = vst.msk [vmem:[#allocation2 + $0x10] sm:$0xff] %vm735_vm2, %v717_v22  ;;  %v715_v27 = vadd.f32 %v652_v25, %v422_v24  ;;  %v433_v28 = vadd.f32 %v1242_v26, %v1224_v7 }
  0xe7   :  { %v1260_v29 = vpop.f32.mrf.mxu0  ;;  %v424_v30 = vpop.f32.mrf.mxu1 }
  0xe8   :  { %736 = vst.msk [vmem:[#allocation2] sm:$0xff] %vm735_vm2, %v715_v27  ;;  %v718_v31 = vadd.f32 %v1260_v29, %v433_v28  ;;  %v425_v32 = vadd.f32 %v424_v30, %v300_v33 }
  0xe9   :  { %v655_v34 = vpop.f32.mrf.mxu0  ;;  %v1245_v36 = vpop.f32.mrf.mxu1 }
  0xea   :  { %739 = vst.msk [vmem:[#allocation2 + $0x18] sm:$0xff] %vm735_vm2, %v718_v31  ;;  %v716_v35 = vadd.f32 %v655_v34, %v425_v32  ;;  %v446_v38 = vadd.f32 %v1245_v36, %v1227_v10 }
  0xeb   :  { %v437_v39 = vpop.f32.mrf.mxu1 }
  0xec   :  { %737 = vst.msk [vmem:[#allocation2 + $0x8] sm:$0xff] %vm735_vm2, %v716_v35  ;;  %v1263_v42 = vpop.f32.mrf.mxu0  ;;  %v438_v43 = vadd.f32 %v437_v39, %v313_v12 }
  0xed   :  { %v810_v40 = vld [vmem:[#allocation2 + $0x10] sm:$0xff]  ;;  %v721_v45 = vadd.f32 %v1263_v42, %v446_v38  ;;  %v1246_v46 = vpop.f32.mrf.mxu1 }
  0xee   :  { %v833_v44 = vmul.f32 %v1574_v37, %v810_v40  ;;  %v668_v48 = vpop.f32.mrf.mxu0  ;;  %v449_v49 = vadd.f32 %v1246_v46, %v1228_v14 }
  0xef   :  { %v808_v47 = vld [vmem:[#allocation2] sm:$0xff]  ;;  %742 = vst.msk [vmem:[#allocation2 + $0x30] sm:$0xff] %vm735_vm2, %v721_v45  ;;  %v719_v52 = vadd.f32 %v668_v48, %v438_v43  ;;  %v440_v53 = vpop.f32.mrf.mxu1 }
  0xf0   :  { %v856_v50 = vadd.f32 %v1580_v41, %v833_v44  ;;  %v831_v51 = vmul.f32 %v1574_v37, %v808_v47  ;;  %v1264_v55 = vpop.f32.mrf.mxu0  ;;  %v441_v56 = vadd.f32 %v440_v53, %v316_v16 }
  0xf1   :  { %v811_v54 = vld [vmem:[#allocation2 + $0x18] sm:$0xff]  ;;  %740 = vst.msk [vmem:[#allocation2 + $0x20] sm:$0xff] %vm735_vm2, %v719_v52  ;;  %v722_v60 = vadd.f32 %v1264_v55, %v449_v49 }
  0xf2   :  { %v872_v57 = vmax.f32 %v856_v50, 0.0  ;;  %v854_v58 = vadd.f32 %v1580_v41, %v831_v51  ;;  %v834_v59 = vmul.f32 %v1574_v37, %v811_v54  ;;  %v671_v18 = vpop.f32.mrf.mxu0 }
  0xf3   :  { %v809_v61 = vld [vmem:[#allocation2 + $0x8] sm:$0xff]  ;;  %v1249_v62 = vpop.f32.mrf.mxu1  ;;  %743 = vst.msk [vmem:[#allocation2 + $0x38] sm:$0xff] %vm735_vm2, %v722_v60  ;;  %v720_v2 = vadd.f32 %v671_v18, %v441_v56 }
  0xf4   :  { %v1059_v63 = vpack.c.bf16 %v872_v57, %v872_v57  ;;  %v870_v0 = vmax.f32 %v854_v58, 0.0  ;;  %v857_v1 = vadd.f32 %v1580_v41, %v834_v59  ;;  %v832_v6 = vmul.f32 %v1574_v37, %v809_v61 }
  0xf5   :  { %v462_v4 = vadd.f32 %v1249_v62, %v1552_v23  ;;  %v453_v7 = vpop.f32.mrf.mxu1  ;;  %v1267_v14 = vpop.f32.mrf.mxu0  ;;  %741 = vst.msk [vmem:[#allocation2 + $0x28] sm:$0xff] %vm735_vm2, %v720_v2 }
  0xf6   :  { %953 = vst.msk [vmem:[%s1704_s6 + $0x8] sm:$0xf] %vm950_vm3, %v1059_v63  ;;  %v1057_v33 = vpack.c.bf16 %v870_v0, %v870_v0  ;;  %v873_v10 = vmax.f32 %v857_v1, 0.0  ;;  %v855_v12 = vadd.f32 %v1580_v41, %v832_v6  ;;  %v454_v16 = vadd.f32 %v453_v7, %v1554_v5  ;;  %v814_v19 = vld [vmem:[#allocation2 + $0x30] sm:$0xff] }
  0xf7   :  { %v725_v3 = vadd.f32 %v1267_v14, %v462_v4  ;;  %v1250_v20 = vpop.f32.mrf.mxu1  ;;  %v837_v22 = vmul.f32 %v1574_v37, %v814_v19  ;;  %v684_v24 = vpop.f32.mrf.mxu0 }
  0xf8   :  { %951 = vst.msk [vmem:[%s1704_s6] sm:$0xf] %vm950_vm3, %v1057_v33  ;;  %v1060_v23 = vpack.c.bf16 %v873_v10, %v873_v10  ;;  %v871_v21 = vmax.f32 %v855_v12, 0.0  ;;  %v465_v25 = vadd.f32 %v1250_v20, %v1556_v8  ;;  %v812_v26 = vld [vmem:[#allocation2 + $0x20] sm:$0xff]  ;;  %v723_v5 = vadd.f32 %v684_v24, %v454_v16 }
  0xf9   :  { %746 = vst.msk [vmem:[#allocation2 + $0x50] sm:$0xff] %vm735_vm2, %v725_v3  ;;  %v456_v27 = vpop.f32.mrf.mxu1  ;;  %v860_v29 = vadd.f32 %v1580_v41, %v837_v22  ;;  %v835_v30 = vmul.f32 %v1574_v37, %v812_v26  ;;  %v1268_v31 = vpop.f32.mrf.mxu0 }
  0xfa   :  { %954 = vst.msk [vmem:[%s1704_s6 + $0xc] sm:$0xf] %vm950_vm3, %v1060_v23  ;;  %v1058_v28 = vpack.c.bf16 %v871_v21, %v871_v21  ;;  %v457_v32 = vadd.f32 %v456_v27, %v1558_v9  ;;  %v815_v34 = vld [vmem:[#allocation2 + $0x38] sm:$0xff]  ;;  %v726_v8 = vadd.f32 %v1268_v31, %v465_v25 }
  0xfb   :  { %744 = vst.msk [vmem:[#allocation2 + $0x40] sm:$0xff] %vm735_vm2, %v723_v5  ;;  %v876_v35 = vmax.f32 %v860_v29, 0.0  ;;  %v858_v36 = vadd.f32 %v1580_v41, %v835_v30  ;;  %v838_v38 = vmul.f32 %v1574_v37, %v815_v34  ;;  %v687_v39 = vpop.f32.mrf.mxu0 }
  0xfc   :  { %952 = vst.msk [vmem:[%s1704_s6 + $0x4] sm:$0xf] %vm950_vm3, %v1058_v28  ;;  %v1253_v40 = vpop.f32.mrf.mxu1  ;;  %v724_v42 = vadd.f32 %v687_v39, %v457_v32  ;;  %v813_v46 = vld [vmem:[#allocation2 + $0x28] sm:$0xff] }
  0xfd   :  { %747 = vst.msk [vmem:[#allocation2 + $0x58] sm:$0xff] %vm735_vm2, %v726_v8  ;;  %v478_v9 = vadd.f32 %v1253_v40, %v1560_v11  ;;  %v1063_v43 = vpack.c.bf16 %v876_v35, %v876_v35  ;;  %v874_v44 = vmax.f32 %v858_v36, 0.0  ;;  %v861_v45 = vadd.f32 %v1580_v41, %v838_v38 }
  0xfe   :  { %v469_v47 = vpop.f32.mrf.mxu1  ;;  %v836_v48 = vmul.f32 %v1574_v37, %v813_v46  ;;  %745 = vst.msk [vmem:[#allocation2 + $0x48] sm:$0xff] %vm735_vm2, %v724_v42  ;;  %v1271_v49 = vpop.f32.mrf.mxu0 }
  0xff   :  { %v470_v50 = vadd.f32 %v469_v47, %v1562_v13  ;;  %957 = vst.msk [vmem:[%s1704_s6 + $0x18] sm:$0xf] %vm950_vm3, %v1063_v43  ;;  %v1061_v51 = vpack.c.bf16 %v874_v44, %v874_v44  ;;  %v877_v11 = vmax.f32 %v861_v45, 0.0  ;;  %v729_v53 = vadd.f32 %v1271_v49, %v478_v9 }
 0x100   :  { %v818_v52 = vld [vmem:[#allocation2 + $0x50] sm:$0xff]  ;;  %v1254_v54 = vpop.f32.mrf.mxu1  ;;  %v859_v55 = vadd.f32 %v1580_v41, %v836_v48  ;;  %v700_v57 = vpop.f32.mrf.mxu0 }
 0x101   :  { %v841_v56 = vmul.f32 %v1574_v37, %v818_v52  ;;  %v481_v58 = vadd.f32 %v1254_v54, %v1564_v15  ;;  %955 = vst.msk [vmem:[%s1704_s6 + $0x10] sm:$0xf] %vm950_vm3, %v1061_v51  ;;  %v1064_v13 = vpack.c.bf16 %v877_v11, %v877_v11  ;;  %v727_v60 = vadd.f32 %v700_v57, %v470_v50 }
 0x102   :  { %v816_v59 = vld [vmem:[#allocation2 + $0x40] sm:$0xff]  ;;  %750 = vst.msk [vmem:[#allocation2 + $0x70] sm:$0xff] %vm735_vm2, %v729_v53  ;;  %v472_v61 = vpop.f32.mrf.mxu1  ;;  %v875_v18 = vmax.f32 %v859_v55, 0.0  ;;  %v1272_v0 = vpop.f32.mrf.mxu0 }
 0x103   :  { %v864_v62 = vadd.f32 %v1580_v41, %v841_v56  ;;  %v839_v63 = vmul.f32 %v1574_v37, %v816_v59  ;;  %v473_v1 = vadd.f32 %v472_v61, %v1566_v17  ;;  %958 = vst.msk [vmem:[%s1704_s6 + $0x1c] sm:$0xf] %vm950_vm3, %v1064_v13  ;;  %v730_v6 = vadd.f32 %v1272_v0, %v481_v58 }
 0x104   :  { %v819_v15 = vld [vmem:[#allocation2 + $0x58] sm:$0xff]  ;;  %748 = vst.msk [vmem:[#allocation2 + $0x60] sm:$0xff] %vm735_vm2, %v727_v60  ;;  %v1062_v2 = vpack.c.bf16 %v875_v18, %v875_v18  ;;  %v703_v10 = vpop.f32.mrf.mxu0 }
 0x105   :  { %v880_v4 = vmax.f32 %v864_v62, 0.0  ;;  %v862_v7 = vadd.f32 %v1580_v41, %v839_v63  ;;  %v842_v33 = vmul.f32 %v1574_v37, %v819_v15  ;;  %v817_v12 = vld [vmem:[#allocation2 + $0x48] sm:$0xff]  ;;  %751 = vst.msk [vmem:[#allocation2 + $0x78] sm:$0xff] %vm735_vm2, %v730_v6  ;;  %v728_v17 = vadd.f32 %v703_v10, %v473_v1 }
 0x106   :  { %956 = vst.msk [vmem:[%s1704_s6 + $0x14] sm:$0xf] %vm950_vm3, %v1062_v2  ;;  %v840_v3 = vmul.f32 %v1574_v37, %v817_v12 }
 0x107   :  { %v1067_v14 = vpack.c.bf16 %v880_v4, %v880_v4  ;;  %v878_v16 = vmax.f32 %v862_v7, 0.0  ;;  %v865_v19 = vadd.f32 %v1580_v41, %v842_v33  ;;  %749 = vst.msk [vmem:[#allocation2 + $0x68] sm:$0xff] %vm735_vm2, %v728_v17 }
 0x108   :  { %v863_v21 = vadd.f32 %v1580_v41, %v840_v3 }
 0x109   :  { %961 = vst.msk [vmem:[%s1704_s6 + $0x28] sm:$0xf] %vm950_vm3, %v1067_v14  ;;  %v1065_v20 = vpack.c.bf16 %v878_v16, %v878_v16  ;;  %v881_v23 = vmax.f32 %v865_v19, 0.0  ;;  %v822_v22 = vld [vmem:[#allocation2 + $0x70] sm:$0xff] }
 0x10a   :  { %v845_v24 = vmul.f32 %v1574_v37, %v822_v22  ;;  %v879_v26 = vmax.f32 %v863_v21, 0.0 }
 0x10b   :  { %959 = vst.msk [vmem:[%s1704_s6 + $0x20] sm:$0xf] %vm950_vm3, %v1065_v20  ;;  %v1068_v25 = vpack.c.bf16 %v881_v23, %v881_v23  ;;  %v820_v5 = vld [vmem:[#allocation2 + $0x60] sm:$0xff] }
 0x10c   :  { %v868_v27 = vadd.f32 %v1580_v41, %v845_v24  ;;  %v843_v28 = vmul.f32 %v1574_v37, %v820_v5  ;;  %v1066_v29 = vpack.c.bf16 %v879_v26, %v879_v26  ;;  %v823_v30 = vld [vmem:[#allocation2 + $0x78] sm:$0xff] }
 0x10d   :  { %962 = vst.msk [vmem:[%s1704_s6 + $0x2c] sm:$0xf] %vm950_vm3, %v1068_v25  ;;  %v846_v34 = vmul.f32 %v1574_v37, %v823_v30 }
 0x10e   :  { %v884_v31 = vmax.f32 %v868_v27, 0.0  ;;  %v866_v32 = vadd.f32 %v1580_v41, %v843_v28  ;;  %960 = vst.msk [vmem:[%s1704_s6 + $0x24] sm:$0xf] %vm950_vm3, %v1066_v29  ;;  %v821_v8 = vld [vmem:[#allocation2 + $0x68] sm:$0xff] }
 0x10f   :  { %v869_v38 = vadd.f32 %v1580_v41, %v846_v34  ;;  %v844_v39 = vmul.f32 %v1574_v37, %v821_v8 }
 0x110   :  { %v1071_v35 = vpack.c.bf16 %v884_v31, %v884_v31  ;;  %v882_v36 = vmax.f32 %v866_v32, 0.0 }
 0x111   :  { %v885_v42 = vmax.f32 %v869_v38, 0.0  ;;  %v867_v9 = vadd.f32 %v1580_v41, %v844_v39 }
 0x112   :  { %965 = vst.msk [vmem:[%s1704_s6 + $0x38] sm:$0xf] %vm950_vm3, %v1071_v35  ;;  %v1069_v40 = vpack.c.bf16 %v882_v36, %v882_v36 }
 0x113   :  { %v1072_v43 = vpack.c.bf16 %v885_v42, %v885_v42  ;;  %v883_v44 = vmax.f32 %v867_v9, 0.0 }
 0x114   :  { %963 = vst.msk [vmem:[%s1704_s6 + $0x30] sm:$0xf] %vm950_vm3, %v1069_v40 }
 0x115   :  { %966 = vst.msk [vmem:[%s1704_s6 + $0x3c] sm:$0xf] %vm950_vm3, %v1072_v43  ;;  %v1070_v37 = vpack.c.bf16 %v883_v44, %v883_v44 }
 0x117   :  { %964 = vst.msk [vmem:[%s1704_s6 + $0x34] sm:$0xf] %vm950_vm3, %v1070_v37 }

// kernel: densenet_forward.19
= control target key start
LH: loop header
LB: loop body
LE: loop exit
PB: predicated region body
PF: predicated region fallthrough
CT: control target
= control target key end

     0   :  { %vm40_vm0 = vcmask 130048   ;;  %vm134_vm1 = vcmask 584704   ;;  %s222_s1 = inlined_call_operand.vmem [shape: bf16[16,72], index: 1, kind: input, shape index: {}]   ;;  %s223_s0 = inlined_call_operand.vmem [shape: bf16[32,16], index: 0, kind: input, shape index: {}]   ;;  %s224_s2 = inlined_call_operand.vmem [shape: f32[1,72], index: 2, kind: input, shape index: {}]   ;;  %s225_s3 = inlined_call_operand.vmem [shape: f32[1,72], index: 3, kind: input, shape index: {}]   ;;  %s226_s4 = inlined_call_operand.vmem [shape: bf16[32,72], index: 4, kind: output, shape index: {}]  }
   0x1   :  { %v167_v0 = vld [vmem:[%s222_s1] sm:$0xff]   ;;  %v169_v2 = vld [vmem:[%s223_s0 + $0x8] sm:$0xff]  }
   0x2   :  { %v168_v1 = vld [vmem:[%s223_s0] sm:$0xff]   ;;  %161 = vmatprep.subr.bf16.mxu0 %v167_v0 }
   0x3   :  { %162 = vmatpush3.bf16.msra.mxu0 %v167_v0  ;;  %163 = vmatprep.mubr.msk.bf16.mxu0 %vm40_vm0, %v168_v1  ;;  %v148_v3 = vld [vmem:[%s224_s2] ss:$0 sm:$0xff] }
   0x4   :  { %v149_v5 = vld [vmem:[%s225_s3] ss:$0 sm:$0xff] }
   0x6   :  { %164 = vmatmul.mubr.msk.bf16.vlgmr.msra.gmra.mxu0 %vm40_vm0, %v169_v2 }
  0xc6   :  { %v165_v4 = vpop.f32.mrf.mxu0 }
  0xc7   :  { %v105_v6 = vmul.f32 %v165_v4, %v148_v3 }
  0xc8   :  { %v81_v7 = vpop.f32.mrf.mxu0 }
  0xc9   :  { %v116_v8 = vadd.f32 %v149_v5, %v105_v6  ;;  %v103_v9 = vmul.f32 %v148_v3, %v81_v7 }
  0xca   :  { %v166_v10 = vpop.f32.mrf.mxu0 }
  0xcb   :  { %v156_v11 = vpack.c.bf16 %v116_v8, %v116_v8  ;;  %v114_v12 = vadd.f32 %v149_v5, %v103_v9  ;;  %v106_v13 = vmul.f32 %v166_v10, %v148_v3 }
  0xcc   :  { %v84_v14 = vpop.f32.mrf.mxu0 }
  0xcd   :  { %137 = vst.msk [vmem:[%s226_s4 + $0x8] sm:$0xf] %vm134_vm1, %v156_v11  ;;  %v154_v15 = vpack.c.bf16 %v114_v12, %v114_v12  ;;  %v117_v16 = vadd.f32 %v149_v5, %v106_v13  ;;  %v104_v17 = vmul.f32 %v148_v3, %v84_v14 }
  0xcf   :  { %135 = vst.msk [vmem:[%s226_s4] sm:$0xf] %vm134_vm1, %v154_v15  ;;  %v157_v18 = vpack.c.bf16 %v117_v16, %v117_v16  ;;  %v115_v19 = vadd.f32 %v149_v5, %v104_v17 }
  0xd1   :  { %138 = vst.msk [vmem:[%s226_s4 + $0xc] sm:$0xf] %vm134_vm1, %v157_v18  ;;  %v155_v20 = vpack.c.bf16 %v115_v19, %v115_v19 }
  0xd3   :  { %136 = vst.msk [vmem:[%s226_s4 + $0x4] sm:$0xf] %vm134_vm1, %v155_v20 }

// kernel: densenet_forward.17
= control target key start
LH: loop header
LB: loop body
LE: loop exit
PB: predicated region body
PF: predicated region fallthrough
CT: control target
= control target key end

     0   :  { %vm259_vm0 = vcmask 1043456   ;;  %vm234_vm1 = vcmask 64512   ;;  %vm982_vm2 = vcmask 130048   ;;  %vm1181_vm3 = vcmask 125952   ;;  %s2125_s1 = inlined_call_operand.vmem [shape: bf16[4,8,16], index: 1, kind: input, shape index: {}]   ;;  %s2126_s0 = inlined_call_operand.vmem [shape: bf16[16,128,8], index: 0, kind: input, shape index: {}]   ;;  %s2127_s2 = inlined_call_operand.vmem [shape: f32[4,1,8], index: 2, kind: input, shape index: {}]   ;;  %s2128_s3 = inlined_call_operand.vmem [shape: f32[4,1,8], index: 3, kind: input, shape index: {}]   ;;  %s2129_s4 = inlined_call_operand.vmem [shape: f32[1,16], index: 4, kind: input, shape index: {}]   ;;  %s2130_s5 = inlined_call_operand.vmem [shape: f32[1,16], index: 5, kind: input, shape index: {}]   ;;  %s2131_s6 = inlined_call_operand.vmem [shape: bf16[128,16], index: 6, kind: output, shape index: {}]  }
   0x1   :  { %v1224_v0 = vld [vmem:[%s2125_s1 + $0x4] sm:$0xf]  ;;  %v126_v1 = vld [vmem:[%s2125_s1] sm:$0xf]  ;;  %v1261_v15 = vld [vmem:[%s2125_s1 + $0x8] sm:$0xf] }
   0x2   :  { %v1468_v2 = vld [vmem:[%s2126_s0 + $0x40] sm:$0xff]   ;;  %1600 = vmatprep.subr.msk.bf16.mxu0 %vm259_vm0, %v1224_v0  ;;  %v261_v3 = vsel %vm259_vm0, %v1224_v0, 0  ;;  %1601 = vmatprep.subr.msk.bf16.mxu1 %vm259_vm0, %v126_v1  ;;  %v385_v4 = vsel %vm259_vm0, %v126_v1, 0  ;;  %v1469_v16 = vld [vmem:[%s2126_s0 + $0x48] sm:$0xff]   ;;  %v1470_v40 = vld [vmem:[%s2126_s0 + $0x50] sm:$0xff]   ;;  %v616_v44 = vsel %vm259_vm0, %v1261_v15, 0 }
   0x3   :  { %v1367_v5 = vunpack.c.l.bf16 %v1468_v2  ;;  %v1368_v6 = vunpack.c.h.bf16 %v1468_v2  ;;  %v1655_v7 = vld [vmem:[%s2127_s2 + $0x1] ss:$0 sm:$0xff]  ;;  %1529 = vmatpush3.bf16.msra.mxu0 %v261_v3  ;;  %1547 = vmatpush3.bf16.msra.mxu1 %v385_v4  ;;  %v1668_v10 = vld [vmem:[%s2127_s2] ss:$0 sm:$0xff]  ;;  %v1461_v17 = vld [vmem:[%s2126_s0 + $0x8] sm:$0xff]   ;;  %v1371_v19 = vunpack.c.l.bf16 %v1469_v16  ;;  %v1372_v20 = vunpack.c.h.bf16 %v1469_v16 }
   0x4   :  { %v1660_v8 = vld [vmem:[%s2128_s3 + $0x1] ss:$0 sm:$0xff]  ;;  %v1684_v18 = vld [vmem:[%s2128_s3] ss:$0 sm:$0xff]  ;;  %1602 = vmatprep.subr.msk.bf16.mxu0 %vm259_vm0, %v1261_v15  ;;  %v1339_v21 = vunpack.c.l.bf16 %v1461_v17  ;;  %v1340_v22 = vunpack.c.h.bf16 %v1461_v17  ;;  %v1290_v23 = vld [vmem:[%s2125_s1 + $0xc] sm:$0xf]  ;;  %v1375_v53 = vunpack.c.l.bf16 %v1470_v40  ;;  %v1376_v54 = vunpack.c.h.bf16 %v1470_v40 }
   0x5   :  { %v1334_v9 = vld [vmem:[%s2126_s0] sm:$0xff]   ;;  %v168_v11 = vmul.f32 %v1367_v5, %v1655_v7  ;;  %v169_v12 = vmul.f32 %v1368_v6, %v1655_v7  ;;  %1603 = vmatprep.subr.msk.bf16.mxu1 %vm259_vm0, %v1290_v23  ;;  %v170_v28 = vmul.f32 %v1371_v19, %v1655_v7  ;;  %v171_v29 = vmul.f32 %v1372_v20, %v1655_v7  ;;  %v1462_v45 = vld [vmem:[%s2126_s0 + $0x10] sm:$0xff]   ;;  %v1471_v50 = vld [vmem:[%s2126_s0 + $0x58] sm:$0xff]  }
   0x6   :  { %v1335_v13 = vunpack.c.l.bf16 %v1334_v9  ;;  %v1336_v14 = vunpack.c.h.bf16 %v1334_v9  ;;  %v65_v30 = vmul.f32 %v1339_v21, %v1668_v10  ;;  %v66_v31 = vmul.f32 %v1340_v22, %v1668_v10  ;;  %v1463_v55 = vld [vmem:[%s2126_s0 + $0x18] sm:$0xff]   ;;  %v1472_v60 = vld [vmem:[%s2126_s0 + $0x60] sm:$0xff]  }
   0x7   :  { %v192_v24 = vadd.f32 %v1660_v8, %v168_v11  ;;  %v193_v25 = vadd.f32 %v1660_v8, %v169_v12  ;;  %v194_v36 = vadd.f32 %v1660_v8, %v170_v28  ;;  %v195_v37 = vadd.f32 %v1660_v8, %v171_v29 }
   0x8   :  { %v63_v26 = vmul.f32 %v1335_v13, %v1668_v10  ;;  %v64_v27 = vmul.f32 %v1336_v14, %v1668_v10  ;;  %v88_v38 = vadd.f32 %v1684_v18, %v65_v30  ;;  %v89_v39 = vadd.f32 %v1684_v18, %v66_v31  ;;  %v1473_v30 = vld [vmem:[%s2126_s0 + $0x68] sm:$0xff]  }
   0x9   :  { %v208_v32 = vmax.f32 %v192_v24, 0.0  ;;  %v209_v33 = vmax.f32 %v193_v25, 0.0  ;;  %v210_v46 = vmax.f32 %v194_v36, 0.0  ;;  %v211_v47 = vmax.f32 %v195_v37, 0.0  ;;  %v1464_v25 = vld [vmem:[%s2126_s0 + $0x20] sm:$0xff]  }
   0xa   :  { %v86_v34 = vadd.f32 %v1684_v18, %v63_v26  ;;  %v87_v35 = vadd.f32 %v1684_v18, %v64_v27  ;;  %v104_v48 = vmax.f32 %v88_v38, 0.0  ;;  %v105_v49 = vmax.f32 %v89_v39, 0.0  ;;  %v1465_v39 = vld [vmem:[%s2126_s0 + $0x28] sm:$0xff]  }
   0xb   :  { %v224_v41 = vpack.c.bf16 %v209_v33, %v208_v32  ;;  %v863_v52 = vsel %vm259_vm0, %v1290_v23, 0  ;;  %v225_v56 = vpack.c.bf16 %v211_v47, %v210_v46  ;;  %v1343_v58 = vunpack.c.l.bf16 %v1462_v45 }
   0xc   :  { %v102_v42 = vmax.f32 %v86_v34, 0.0  ;;  %v103_v43 = vmax.f32 %v87_v35, 0.0  ;;  %v119_v57 = vpack.c.bf16 %v105_v49, %v104_v48  ;;  %v1344_v59 = vunpack.c.h.bf16 %v1462_v45  ;;  %v1474_v48 = vld [vmem:[%s2126_s0 + $0x70] sm:$0xff]  }
   0xd   :  { %1530 = vmatprep.mubr.msk.bf16.mxu0 %vm234_vm1, %v224_v41  ;;  %v172_v61 = vmul.f32 %v1375_v53, %v1655_v7  ;;  %v173_v62 = vmul.f32 %v1376_v54, %v1655_v7  ;;  %v1379_v63 = vunpack.c.l.bf16 %v1471_v50  ;;  %v1380_v0 = vunpack.c.h.bf16 %v1471_v50 }
   0xe   :  { %v118_v51 = vpack.c.bf16 %v103_v43, %v102_v42  ;;  %1531 = vmatmul.mubr.msk.bf16.vlgmr.msra.gmra.mxu0 %vm234_vm1, %v225_v56  ;;  %v67_v1 = vmul.f32 %v1343_v58, %v1668_v10  ;;  %v68_v2 = vmul.f32 %v1344_v59, %v1668_v10  ;;  %v1347_v3 = vunpack.c.l.bf16 %v1463_v55 }
   0xf   :  { %v1348_v4 = vunpack.c.h.bf16 %v1463_v55  ;;  %1565 = vmatpush3.bf16.msra.mxu0 %v616_v44  ;;  %v196_v5 = vadd.f32 %v1660_v8, %v172_v61  ;;  %v197_v6 = vadd.f32 %v1660_v8, %v173_v62  ;;  %v174_v9 = vmul.f32 %v1379_v63, %v1655_v7  ;;  %v1466_v61 = vld [vmem:[%s2126_s0 + $0x30] sm:$0xff]  }
  0x10   :  { %1548 = vmatprep.mubr.msk.bf16.mxu1 %vm234_vm1, %v118_v51  ;;  %v1383_v11 = vunpack.c.l.bf16 %v1472_v60  ;;  %v90_v12 = vadd.f32 %v1684_v18, %v67_v1  ;;  %v91_v13 = vadd.f32 %v1684_v18, %v68_v2  ;;  %v175_v14 = vmul.f32 %v1380_v0, %v1655_v7 }
  0x11   :  { %1549 = vmatmul.mubr.msk.bf16.vlgmr.msra.gmra.mxu1 %vm234_vm1, %v119_v57  ;;  %v69_v15 = vmul.f32 %v1347_v3, %v1668_v10  ;;  %v212_v16 = vmax.f32 %v196_v5, 0.0  ;;  %v213_v17 = vmax.f32 %v197_v6, 0.0  ;;  %v198_v19 = vadd.f32 %v1660_v8, %v174_v9  ;;  %v1475_v6 = vld [vmem:[%s2126_s0 + $0x78] sm:$0xff]  }
  0x12   :  { %1583 = vmatpush3.bf16.msra.mxu1 %v863_v52  ;;  %v70_v20 = vmul.f32 %v1348_v4, %v1668_v10  ;;  %v106_v21 = vmax.f32 %v90_v12, 0.0  ;;  %v107_v22 = vmax.f32 %v91_v13, 0.0  ;;  %v199_v23 = vadd.f32 %v1660_v8, %v175_v14  ;;  %v1467_v14 = vld [vmem:[%s2126_s0 + $0x38] sm:$0xff]  }
  0x13   :  { %v92_v24 = vadd.f32 %v1684_v18, %v69_v15  ;;  %v226_v26 = vpack.c.bf16 %v213_v17, %v212_v16  ;;  %v214_v27 = vmax.f32 %v198_v19, 0.0  ;;  %v1384_v29 = vunpack.c.h.bf16 %v1472_v60 }
  0x14   :  { %v93_v28 = vadd.f32 %v1684_v18, %v70_v20  ;;  %v120_v31 = vpack.c.bf16 %v107_v22, %v106_v21  ;;  %v215_v32 = vmax.f32 %v199_v23, 0.0  ;;  %v176_v34 = vmul.f32 %v1383_v11, %v1655_v7 }
  0x15   :  { %v108_v33 = vmax.f32 %v92_v24, 0.0  ;;  %1534 = vmatprep.mubr.msk.bf16.mxu0 %vm234_vm1, %v226_v26  ;;  %v177_v36 = vmul.f32 %v1384_v29, %v1655_v7  ;;  %v1351_v37 = vunpack.c.l.bf16 %v1464_v25  ;;  %v1352_v38 = vunpack.c.h.bf16 %v1464_v25 }
  0x16   :  { %v109_v35 = vmax.f32 %v93_v28, 0.0  ;;  %1552 = vmatprep.mubr.msk.bf16.mxu1 %vm234_vm1, %v120_v31  ;;  %v227_v40 = vpack.c.bf16 %v215_v32, %v214_v27  ;;  %v200_v41 = vadd.f32 %v1660_v8, %v176_v34  ;;  %v1387_v42 = vunpack.c.l.bf16 %v1473_v30  ;;  %v1476_v28 = vld [vmem:[%s2126_s0 + $0x80] sm:$0xff]  }
  0x17   :  { %v1388_v43 = vunpack.c.h.bf16 %v1473_v30  ;;  %v201_v45 = vadd.f32 %v1660_v8, %v177_v36  ;;  %v71_v46 = vmul.f32 %v1351_v37, %v1668_v10  ;;  %v72_v47 = vmul.f32 %v1352_v38, %v1668_v10  ;;  %v1802_v37 = vld [vmem:[%s2127_s2 + $0x2] ss:$0 sm:$0xff] }
  0x18   :  { %v121_v44 = vpack.c.bf16 %v109_v35, %v108_v33  ;;  %1535 = vmatmul.mubr.msk.bf16.gmra.mxu0 %vm234_vm1, %v227_v40  ;;  %v216_v49 = vmax.f32 %v200_v41, 0.0  ;;  %v178_v50 = vmul.f32 %v1387_v42, %v1655_v7  ;;  %v1355_v52 = vunpack.c.l.bf16 %v1465_v39  ;;  %v1484_v42 = vld [vmem:[%s2126_s0 + $0xc0] sm:$0xff]  }
  0x19   :  { %v179_v51 = vmul.f32 %v1388_v43, %v1655_v7  ;;  %v217_v53 = vmax.f32 %v201_v45, 0.0  ;;  %v94_v54 = vadd.f32 %v1684_v18, %v71_v46  ;;  %v95_v55 = vadd.f32 %v1684_v18, %v72_v47  ;;  %v1815_v46 = vld [vmem:[%s2128_s3 + $0x2] ss:$0 sm:$0xff] }
  0x1a   :  { %1553 = vmatmul.mubr.msk.bf16.gmra.mxu1 %vm234_vm1, %v121_v44  ;;  %v1356_v56 = vunpack.c.h.bf16 %v1465_v39  ;;  %v202_v57 = vadd.f32 %v1660_v8, %v178_v50  ;;  %v73_v59 = vmul.f32 %v1355_v52, %v1668_v10  ;;  %v1391_v60 = vunpack.c.l.bf16 %v1474_v48 }
  0x1b   :  { %v203_v58 = vadd.f32 %v1660_v8, %v179_v51  ;;  %v228_v62 = vpack.c.bf16 %v217_v53, %v216_v49  ;;  %v110_v63 = vmax.f32 %v94_v54, 0.0  ;;  %v111_v0 = vmax.f32 %v95_v55, 0.0  ;;  %v1822_v51 = vld [vmem:[%s2127_s2 + $0x3] ss:$0 sm:$0xff] }
  0x1c   :  { %v74_v1 = vmul.f32 %v1356_v56, %v1668_v10  ;;  %v218_v2 = vmax.f32 %v202_v57, 0.0  ;;  %v96_v4 = vadd.f32 %v1684_v18, %v73_v59  ;;  %v1392_v5 = vunpack.c.h.bf16 %v1474_v48  ;;  %v1834_v59 = vld [vmem:[%s2128_s3 + $0x3] ss:$0 sm:$0xff] }
  0x1d   :  { %v219_v3 = vmax.f32 %v203_v58, 0.0  ;;  %1538 = vmatprep.mubr.msk.bf16.mxu0 %vm234_vm1, %v228_v62  ;;  %v122_v9 = vpack.c.bf16 %v111_v0, %v110_v63  ;;  %v180_v12 = vmul.f32 %v1391_v60, %v1655_v7  ;;  %v1359_v13 = vunpack.c.l.bf16 %v1466_v61  ;;  %v1485_v60 = vld [vmem:[%s2126_s0 + $0xc8] sm:$0xff]  }
  0x1e   :  { %v97_v11 = vadd.f32 %v1684_v18, %v74_v1  ;;  %v112_v16 = vmax.f32 %v96_v4, 0.0  ;;  %v181_v17 = vmul.f32 %v1392_v5, %v1655_v7  ;;  %v1360_v19 = vunpack.c.h.bf16 %v1466_v61  ;;  %v1478_v4 = vld [vmem:[%s2126_s0 + $0x90] sm:$0xff]  }
  0x1f   :  { %v229_v15 = vpack.c.bf16 %v219_v3, %v218_v2  ;;  %1556 = vmatprep.mubr.msk.bf16.mxu1 %vm234_vm1, %v122_v9  ;;  %v204_v21 = vadd.f32 %v1660_v8, %v180_v12  ;;  %v75_v22 = vmul.f32 %v1359_v13, %v1668_v10  ;;  %v1395_v23 = vunpack.c.l.bf16 %v1475_v6 }
  0x20   :  { %v113_v20 = vmax.f32 %v97_v11, 0.0  ;;  %v205_v24 = vadd.f32 %v1660_v8, %v181_v17  ;;  %v76_v25 = vmul.f32 %v1360_v19, %v1668_v10  ;;  %v1396_v26 = vunpack.c.h.bf16 %v1475_v6 }
  0x21   :  { %1539 = vmatmul.mubr.msk.bf16.gmra.mxu0 %vm234_vm1, %v229_v15  ;;  %v1363_v27 = vunpack.c.l.bf16 %v1467_v14  ;;  %v220_v30 = vmax.f32 %v204_v21, 0.0  ;;  %v98_v31 = vadd.f32 %v1684_v18, %v75_v22  ;;  %v182_v32 = vmul.f32 %v1395_v23, %v1655_v7  ;;  %v1486_v21 = vld [vmem:[%s2126_s0 + $0xd0] sm:$0xff]  }
  0x22   :  { %v123_v29 = vpack.c.bf16 %v113_v20, %v112_v16  ;;  %v221_v33 = vmax.f32 %v205_v24, 0.0  ;;  %v99_v34 = vadd.f32 %v1684_v18, %v76_v25  ;;  %v183_v35 = vmul.f32 %v1396_v26, %v1655_v7 }
  0x23   :  { %v1364_v36 = vunpack.c.h.bf16 %v1467_v14  ;;  %v114_v38 = vmax.f32 %v98_v31, 0.0  ;;  %v206_v39 = vadd.f32 %v1660_v8, %v182_v32  ;;  %v77_v40 = vmul.f32 %v1363_v27, %v1668_v10 }
  0x24   :  { %1557 = vmatmul.mubr.msk.bf16.gmra.mxu1 %vm234_vm1, %v123_v29  ;;  %v1399_v41 = vunpack.c.l.bf16 %v1476_v28  ;;  %v230_v43 = vpack.c.bf16 %v221_v33, %v220_v30  ;;  %v115_v7 = vmax.f32 %v99_v34, 0.0  ;;  %v207_v44 = vadd.f32 %v1660_v8, %v183_v35  ;;  %v1477_v8 = vld [vmem:[%s2126_s0 + $0x88] sm:$0xff]   ;;  %v1479_v30 = vld [vmem:[%s2126_s0 + $0x98] sm:$0xff]  }
  0x25   :  { %v78_v45 = vmul.f32 %v1364_v36, %v1668_v10  ;;  %v222_v47 = vmax.f32 %v206_v39, 0.0  ;;  %v100_v48 = vadd.f32 %v1684_v18, %v77_v40  ;;  %v1400_v49 = vunpack.c.h.bf16 %v1476_v28  ;;  %v1487_v40 = vld [vmem:[%s2126_s0 + $0xd8] sm:$0xff]  }
  0x26   :  { %v525_v50 = vmul.f32 %v1399_v41, %v1802_v37  ;;  %1542 = vmatprep.mubr.msk.bf16.mxu0 %vm234_vm1, %v230_v43  ;;  %v124_v10 = vpack.c.bf16 %v115_v7, %v114_v38  ;;  %v223_v52 = vmax.f32 %v207_v44, 0.0  ;;  %v1431_v54 = vunpack.c.l.bf16 %v1484_v42 }
  0x27   :  { %v101_v53 = vadd.f32 %v1684_v18, %v78_v45  ;;  %v116_v55 = vmax.f32 %v100_v48, 0.0  ;;  %v526_v56 = vmul.f32 %v1400_v49, %v1802_v37  ;;  %v1432_v58 = vunpack.c.h.bf16 %v1484_v42  ;;  %v1480_v49 = vld [vmem:[%s2126_s0 + $0xa0] sm:$0xff]  }
  0x28   :  { %v549_v57 = vadd.f32 %v1815_v46, %v525_v50  ;;  %1560 = vmatprep.mubr.msk.bf16.mxu1 %vm234_vm1, %v124_v10  ;;  %v231_v61 = vpack.c.bf16 %v223_v52, %v222_v47  ;;  %v772_v62 = vmul.f32 %v1431_v54, %v1822_v51  ;;  %v1403_v63 = vunpack.c.l.bf16 %v1477_v8 }
  0x29   :  { %v117_v18 = vmax.f32 %v101_v53, 0.0  ;;  %v550_v0 = vadd.f32 %v1815_v46, %v526_v56  ;;  %v773_v2 = vmul.f32 %v1432_v58, %v1822_v51  ;;  %v1404_v3 = vunpack.c.h.bf16 %v1477_v8 }
  0x2a   :  { %v565_v1 = vmax.f32 %v549_v57, 0.0  ;;  %1543 = vmatmul.mubr.msk.bf16.gmra.mxu0 %vm234_vm1, %v231_v61  ;;  %v796_v6 = vadd.f32 %v1834_v59, %v772_v62  ;;  %v527_v9 = vmul.f32 %v1403_v63, %v1802_v37  ;;  %v1435_v11 = vunpack.c.l.bf16 %v1485_v60 }
  0x2b   :  { %v125_v5 = vpack.c.bf16 %v117_v18, %v116_v55  ;;  %v566_v12 = vmax.f32 %v550_v0, 0.0  ;;  %v797_v13 = vadd.f32 %v1834_v59, %v773_v2  ;;  %v528_v14 = vmul.f32 %v1404_v3, %v1802_v37  ;;  %v1488_v18 = vld [vmem:[%s2126_s0 + $0xe0] sm:$0xff]  }
  0x2c   :  { %v1436_v15 = vunpack.c.h.bf16 %v1485_v60  ;;  %v812_v16 = vmax.f32 %v796_v6, 0.0  ;;  %v551_v17 = vadd.f32 %v1815_v46, %v527_v9  ;;  %v774_v19 = vmul.f32 %v1435_v11, %v1822_v51  ;;  %v1481_v6 = vld [vmem:[%s2126_s0 + $0xa8] sm:$0xff]  }
  0x2d   :  { %1561 = vmatmul.mubr.msk.bf16.gmra.mxu1 %vm234_vm1, %v125_v5  ;;  %v1407_v20 = vunpack.c.l.bf16 %v1478_v4  ;;  %v581_v22 = vpack.c.bf16 %v566_v12, %v565_v1  ;;  %v813_v23 = vmax.f32 %v797_v13, 0.0  ;;  %v552_v24 = vadd.f32 %v1815_v46, %v528_v14 }
  0x2e   :  { %v775_v25 = vmul.f32 %v1436_v15, %v1822_v51  ;;  %v567_v26 = vmax.f32 %v551_v17, 0.0  ;;  %v798_v27 = vadd.f32 %v1834_v59, %v774_v19  ;;  %v1408_v28 = vunpack.c.h.bf16 %v1478_v4  ;;  %v1489_v19 = vld [vmem:[%s2126_s0 + $0xe8] sm:$0xff]  }
  0x2f   :  { %v529_v29 = vmul.f32 %v1407_v20, %v1802_v37  ;;  %1566 = vmatprep.mubr.msk.bf16.mxu0 %vm234_vm1, %v581_v22  ;;  %v828_v31 = vpack.c.bf16 %v813_v23, %v812_v16  ;;  %v568_v32 = vmax.f32 %v552_v24, 0.0  ;;  %v1439_v34 = vunpack.c.l.bf16 %v1486_v21 }
  0x30   :  { %v799_v33 = vadd.f32 %v1834_v59, %v775_v25  ;;  %v814_v35 = vmax.f32 %v798_v27, 0.0  ;;  %v530_v36 = vmul.f32 %v1408_v28, %v1802_v37  ;;  %v1440_v39 = vunpack.c.h.bf16 %v1486_v21  ;;  %v1482_v28 = vld [vmem:[%s2126_s0 + $0xb0] sm:$0xff]  }
  0x31   :  { %v553_v38 = vadd.f32 %v1815_v46, %v529_v29  ;;  %1584 = vmatprep.mubr.msk.bf16.mxu1 %vm234_vm1, %v828_v31  ;;  %v582_v41 = vpack.c.bf16 %v568_v32, %v567_v26  ;;  %v776_v43 = vmul.f32 %v1439_v34, %v1822_v51  ;;  %v1411_v7 = vunpack.c.l.bf16 %v1479_v30 }
  0x32   :  { %v815_v42 = vmax.f32 %v799_v33, 0.0  ;;  %v554_v44 = vadd.f32 %v1815_v46, %v530_v36  ;;  %v777_v47 = vmul.f32 %v1440_v39, %v1822_v51  ;;  %v1412_v48 = vunpack.c.h.bf16 %v1479_v30 }
  0x33   :  { %v569_v45 = vmax.f32 %v553_v38, 0.0  ;;  %1567 = vmatmul.mubr.msk.bf16.vlgmr.msra.gmra.mxu0 %vm234_vm1, %v582_v41  ;;  %v800_v8 = vadd.f32 %v1834_v59, %v776_v43  ;;  %v531_v10 = vmul.f32 %v1411_v7, %v1802_v37  ;;  %v1443_v52 = vunpack.c.l.bf16 %v1487_v40 }
  0x34   :  { %v829_v50 = vpack.c.bf16 %v815_v42, %v814_v35  ;;  %v570_v53 = vmax.f32 %v554_v44, 0.0  ;;  %v801_v54 = vadd.f32 %v1834_v59, %v777_v47  ;;  %v532_v55 = vmul.f32 %v1412_v48, %v1802_v37  ;;  %v1490_v42 = vld [vmem:[%s2126_s0 + $0xf0] sm:$0xff]  }
  0x35   :  { %v1444_v56 = vunpack.c.h.bf16 %v1487_v40  ;;  %v816_v57 = vmax.f32 %v800_v8, 0.0  ;;  %v555_v58 = vadd.f32 %v1815_v46, %v531_v10  ;;  %v778_v60 = vmul.f32 %v1443_v52, %v1822_v51  ;;  %v1483_v8 = vld [vmem:[%s2126_s0 + $0xb8] sm:$0xff]  }
  0x36   :  { %1585 = vmatmul.mubr.msk.bf16.vlgmr.msra.gmra.mxu1 %vm234_vm1, %v829_v50  ;;  %v1415_v61 = vunpack.c.l.bf16 %v1480_v49  ;;  %v583_v62 = vpack.c.bf16 %v570_v53, %v569_v45  ;;  %v817_v63 = vmax.f32 %v801_v54, 0.0  ;;  %v556_v0 = vadd.f32 %v1815_v46, %v532_v55 }
  0x37   :  { %v779_v1 = vmul.f32 %v1444_v56, %v1822_v51  ;;  %v571_v2 = vmax.f32 %v555_v58, 0.0  ;;  %v802_v3 = vadd.f32 %v1834_v59, %v778_v60  ;;  %v1416_v4 = vunpack.c.h.bf16 %v1480_v49  ;;  %v1491_v60 = vld [vmem:[%s2126_s0 + $0xf8] sm:$0xff]  }
  0x38   :  { %v533_v5 = vmul.f32 %v1415_v61, %v1802_v37  ;;  %1570 = vmatprep.mubr.msk.bf16.mxu0 %vm234_vm1, %v583_v62  ;;  %v830_v9 = vpack.c.bf16 %v817_v63, %v816_v57  ;;  %v572_v11 = vmax.f32 %v556_v0, 0.0  ;;  %v1447_v13 = vunpack.c.l.bf16 %v1488_v18 }
  0x39   :  { %v803_v12 = vadd.f32 %v1834_v59, %v779_v1  ;;  %v818_v14 = vmax.f32 %v802_v3, 0.0  ;;  %v534_v15 = vmul.f32 %v1416_v4, %v1802_v37  ;;  %v1448_v17 = vunpack.c.h.bf16 %v1488_v18 }
  0x3a   :  { %v557_v16 = vadd.f32 %v1815_v46, %v533_v5  ;;  %1588 = vmatprep.mubr.msk.bf16.mxu1 %vm234_vm1, %v830_v9  ;;  %v584_v20 = vpack.c.bf16 %v572_v11, %v571_v2  ;;  %v780_v22 = vmul.f32 %v1447_v13, %v1822_v51  ;;  %v1419_v23 = vunpack.c.l.bf16 %v1481_v6 }
  0x3b   :  { %v819_v21 = vmax.f32 %v803_v12, 0.0  ;;  %v558_v24 = vadd.f32 %v1815_v46, %v534_v15  ;;  %v781_v26 = vmul.f32 %v1448_v17, %v1822_v51  ;;  %v1420_v27 = vunpack.c.h.bf16 %v1481_v6 }
  0x3c   :  { %v573_v25 = vmax.f32 %v557_v16, 0.0  ;;  %1571 = vmatmul.mubr.msk.bf16.gmra.mxu0 %vm234_vm1, %v584_v20  ;;  %v804_v30 = vadd.f32 %v1834_v59, %v780_v22  ;;  %v535_v31 = vmul.f32 %v1419_v23, %v1802_v37  ;;  %v1451_v32 = vunpack.c.l.bf16 %v1489_v19 }
  0x3d   :  { %v831_v29 = vpack.c.bf16 %v819_v21, %v818_v14  ;;  %v574_v33 = vmax.f32 %v558_v24, 0.0  ;;  %v805_v34 = vadd.f32 %v1834_v59, %v781_v26  ;;  %v536_v35 = vmul.f32 %v1420_v27, %v1802_v37 }
  0x3e   :  { %v1452_v36 = vunpack.c.h.bf16 %v1489_v19  ;;  %v820_v38 = vmax.f32 %v804_v30, 0.0  ;;  %v559_v39 = vadd.f32 %v1815_v46, %v535_v31  ;;  %v782_v40 = vmul.f32 %v1451_v32, %v1822_v51 }
  0x3f   :  { %1589 = vmatmul.mubr.msk.bf16.gmra.mxu1 %vm234_vm1, %v831_v29  ;;  %v1423_v41 = vunpack.c.l.bf16 %v1482_v28  ;;  %v585_v43 = vpack.c.bf16 %v574_v33, %v573_v25  ;;  %v821_v7 = vmax.f32 %v805_v34, 0.0  ;;  %v560_v44 = vadd.f32 %v1815_v46, %v536_v35 }
  0x40   :  { %v783_v45 = vmul.f32 %v1452_v36, %v1822_v51  ;;  %v575_v47 = vmax.f32 %v559_v39, 0.0  ;;  %v806_v48 = vadd.f32 %v1834_v59, %v782_v40  ;;  %v1424_v49 = vunpack.c.h.bf16 %v1482_v28 }
  0x41   :  { %v537_v50 = vmul.f32 %v1423_v41, %v1802_v37  ;;  %1574 = vmatprep.mubr.msk.bf16.mxu0 %vm234_vm1, %v585_v43  ;;  %v832_v10 = vpack.c.bf16 %v821_v7, %v820_v38  ;;  %v576_v52 = vmax.f32 %v560_v44, 0.0  ;;  %v1455_v54 = vunpack.c.l.bf16 %v1490_v42 }
  0x42   :  { %v807_v53 = vadd.f32 %v1834_v59, %v783_v45  ;;  %v822_v55 = vmax.f32 %v806_v48, 0.0  ;;  %v538_v56 = vmul.f32 %v1424_v49, %v1802_v37  ;;  %v1456_v58 = vunpack.c.h.bf16 %v1490_v42 }
  0x43   :  { %v561_v57 = vadd.f32 %v1815_v46, %v537_v50  ;;  %1592 = vmatprep.mubr.msk.bf16.mxu1 %vm234_vm1, %v832_v10  ;;  %v586_v61 = vpack.c.bf16 %v576_v52, %v575_v47  ;;  %v784_v62 = vmul.f32 %v1455_v54, %v1822_v51  ;;  %v1427_v63 = vunpack.c.l.bf16 %v1483_v8 }
  0x44   :  { %v823_v18 = vmax.f32 %v807_v53, 0.0  ;;  %v562_v0 = vadd.f32 %v1815_v46, %v538_v56  ;;  %v785_v2 = vmul.f32 %v1456_v58, %v1822_v51  ;;  %v1428_v3 = vunpack.c.h.bf16 %v1483_v8 }
  0x45   :  { %v577_v1 = vmax.f32 %v561_v57, 0.0  ;;  %1575 = vmatmul.mubr.msk.bf16.gmra.mxu0 %vm234_vm1, %v586_v61  ;;  %v808_v5 = vadd.f32 %v1834_v59, %v784_v62  ;;  %v539_v6 = vmul.f32 %v1427_v63, %v1802_v37  ;;  %v1459_v9 = vunpack.c.l.bf16 %v1491_v60 }
  0x46   :  { %v833_v4 = vpack.c.bf16 %v823_v18, %v822_v55  ;;  %v578_v11 = vmax.f32 %v562_v0, 0.0  ;;  %v809_v12 = vadd.f32 %v1834_v59, %v785_v2  ;;  %v540_v13 = vmul.f32 %v1428_v3, %v1802_v37 }
  0x47   :  { %v1460_v14 = vunpack.c.h.bf16 %v1491_v60  ;;  %v824_v15 = vmax.f32 %v808_v5, 0.0  ;;  %v563_v16 = vadd.f32 %v1815_v46, %v539_v6  ;;  %v786_v17 = vmul.f32 %v1459_v9, %v1822_v51 }
  0x48   :  { %1593 = vmatmul.mubr.msk.bf16.gmra.mxu1 %vm234_vm1, %v833_v4  ;;  %v587_v19 = vpack.c.bf16 %v578_v11, %v577_v1  ;;  %v825_v20 = vmax.f32 %v809_v12, 0.0  ;;  %v564_v21 = vadd.f32 %v1815_v46, %v540_v13 }
  0x49   :  { %v787_v22 = vmul.f32 %v1460_v14, %v1822_v51  ;;  %v579_v23 = vmax.f32 %v563_v16, 0.0  ;;  %v810_v24 = vadd.f32 %v1834_v59, %v786_v17 }
  0x4a   :  { %1578 = vmatprep.mubr.msk.bf16.mxu0 %vm234_vm1, %v587_v19  ;;  %v834_v37 = vpack.c.bf16 %v825_v20, %v824_v15  ;;  %v580_v25 = vmax.f32 %v564_v21, 0.0 }
  0x4b   :  { %v811_v26 = vadd.f32 %v1834_v59, %v787_v22  ;;  %v826_v27 = vmax.f32 %v810_v24, 0.0 }
  0x4c   :  { %1596 = vmatprep.mubr.msk.bf16.mxu1 %vm234_vm1, %v834_v37  ;;  %v588_v28 = vpack.c.bf16 %v580_v25, %v579_v23  ;;  %v1993_v23 = vld [vmem:[%s2129_s4] ss:$0 sm:$0xff] }
  0x4d   :  { %v827_v29 = vmax.f32 %v811_v26, 0.0 }
  0x4e   :  { %1579 = vmatmul.mubr.msk.bf16.gmra.mxu0 %vm234_vm1, %v588_v28  ;;  %v1999_v28 = vld [vmem:[%s2130_s5] ss:$0 sm:$0xff] }
  0x4f   :  { %v835_v30 = vpack.c.bf16 %v827_v29, %v826_v27 }
  0x51   :  { %1597 = vmatmul.mubr.msk.bf16.gmra.mxu1 %vm234_vm1, %v835_v30 }
  0xce   :  { %v1532_v46 = vpop.f32.mrf.mxu0 }
  0xd0   :  { %v297_v31 = vpop.f32.mrf.mxu0 }
  0xd1   :  { %v1550_v51 = vpop.f32.mrf.mxu1 }
  0xd2   :  { %v1533_v33 = vpop.f32.mrf.mxu0  ;;  %v430_v60 = vadd.f32 %v1550_v51, %v1532_v46 }
  0xd3   :  { %v421_v32 = vpop.f32.mrf.mxu1 }
  0xd4   :  { %v300_v35 = vpop.f32.mrf.mxu0  ;;  %v422_v62 = vadd.f32 %v421_v32, %v297_v31 }
  0xd5   :  { %v1551_v34 = vpop.f32.mrf.mxu1 }
  0xd6   :  { %v433_v2 = vadd.f32 %v1551_v34, %v1533_v33 }
  0xd7   :  { %v424_v36 = vpop.f32.mrf.mxu1 }
  0xd8   :  { %v1536_v38 = vpop.f32.mrf.mxu0  ;;  %v425_v9 = vadd.f32 %v424_v36, %v300_v35 }
  0xda   :  { %v1554_v59 = vpop.f32.mrf.mxu1  ;;  %v313_v39 = vpop.f32.mrf.mxu0 }
  0xdb   :  { %v446_v17 = vadd.f32 %v1554_v59, %v1536_v38 }
  0xdc   :  { %v437_v40 = vpop.f32.mrf.mxu1  ;;  %v1537_v41 = vpop.f32.mrf.mxu0 }
  0xdd   :  { %v438_v22 = vadd.f32 %v437_v40, %v313_v39 }
  0xde   :  { %v1555_v42 = vpop.f32.mrf.mxu1  ;;  %v316_v43 = vpop.f32.mrf.mxu0 }
  0xdf   :  { %v449_v26 = vadd.f32 %v1555_v42, %v1537_v41 }
  0xe0   :  { %v440_v7 = vpop.f32.mrf.mxu1 }
  0xe1   :  { %v1955_v44 = vpop.f32.mrf.mxu0  ;;  %v441_v32 = vadd.f32 %v440_v7, %v316_v43 }
  0xe3   :  { %v1957_v45 = vpop.f32.mrf.mxu0 }
  0xe4   :  { %v1959_v47 = vpop.f32.mrf.mxu1 }
  0xe5   :  { %v1961_v48 = vpop.f32.mrf.mxu0  ;;  %v462_v43 = vadd.f32 %v1959_v47, %v1955_v44 }
  0xe6   :  { %v1963_v49 = vpop.f32.mrf.mxu1 }
  0xe7   :  { %v1965_v50 = vpop.f32.mrf.mxu0 }
  0xe8   :  { %v1967_v8 = vpop.f32.mrf.mxu1 }
  0xea   :  { %v1969_v10 = vpop.f32.mrf.mxu1  ;;  %v1971_v52 = vpop.f32.mrf.mxu0 }
  0xec   :  { %v1975_v54 = vpop.f32.mrf.mxu0 }
  0xed   :  { %v1973_v53 = vpop.f32.mrf.mxu1 }
  0xee   :  { %v1979_v56 = vpop.f32.mrf.mxu0 }
  0xef   :  { %v1977_v55 = vpop.f32.mrf.mxu1 }
  0xf0   :  { %v1983_v58 = vpop.f32.mrf.mxu0 }
  0xf1   :  { %v1981_v57 = vpop.f32.mrf.mxu1 }
  0xf3   :  { %v1985_v61 = vpop.f32.mrf.mxu1  ;;  %v1568_v18 = vpop.f32.mrf.mxu0 }
  0xf4   :  { %v717_v63 = vadd.f32 %v1568_v18, %v430_v60 }
  0xf5   :  { %v652_v1 = vpop.f32.mrf.mxu0 }
  0xf6   :  { %v1586_v0 = vpop.f32.mrf.mxu1  ;;  %v715_v4 = vadd.f32 %v652_v1, %v422_v62 }
  0xf7   :  { %v964_v3 = vadd.f32 %v1586_v0, %v717_v63  ;;  %v1569_v6 = vpop.f32.mrf.mxu0  ;;  %v454_v63 = vadd.f32 %v1963_v49, %v1957_v45 }
  0xf8   :  { %v899_v5 = vpop.f32.mrf.mxu1  ;;  %v718_v12 = vadd.f32 %v1569_v6, %v433_v2 }
  0xf9   :  { %985 = vst.msk [vmem:[#allocation2 + $0x10] sm:$0xff] %vm982_vm2, %v964_v3  ;;  %v962_v11 = vadd.f32 %v899_v5, %v715_v4  ;;  %v655_v14 = vpop.f32.mrf.mxu0  ;;  %v465_v5 = vadd.f32 %v1967_v8, %v1961_v48  ;;  %v457_v48 = vadd.f32 %v1969_v10, %v1965_v50 }
  0xfa   :  { %v1587_v13 = vpop.f32.mrf.mxu1  ;;  %v716_v16 = vadd.f32 %v655_v14, %v425_v9 }
  0xfb   :  { %983 = vst.msk [vmem:[#allocation2] sm:$0xff] %vm982_vm2, %v962_v11  ;;  %v965_v15 = vadd.f32 %v1587_v13, %v718_v12 }
  0xfc   :  { %v902_v19 = vpop.f32.mrf.mxu1  ;;  %v1572_v21 = vpop.f32.mrf.mxu0 }
  0xfd   :  { %986 = vst.msk [vmem:[#allocation2 + $0x18] sm:$0xff] %vm982_vm2, %v965_v15  ;;  %v963_v20 = vadd.f32 %v902_v19, %v716_v16  ;;  %v721_v24 = vadd.f32 %v1572_v21, %v446_v17 }
  0xfe   :  { %v668_v25 = vpop.f32.mrf.mxu0 }
  0xff   :  { %984 = vst.msk [vmem:[#allocation2 + $0x8] sm:$0xff] %vm982_vm2, %v963_v20  ;;  %v1590_v37 = vpop.f32.mrf.mxu1  ;;  %v719_v30 = vadd.f32 %v668_v25, %v438_v22 }
 0x100   :  { %v1057_v27 = vld [vmem:[#allocation2 + $0x10] sm:$0xff]  ;;  %v968_v29 = vadd.f32 %v1590_v37, %v721_v24  ;;  %v1573_v31 = vpop.f32.mrf.mxu0 }
 0x101   :  { %v1080_v46 = vmul.f32 %v1993_v23, %v1057_v27  ;;  %v915_v51 = vpop.f32.mrf.mxu1  ;;  %v722_v35 = vadd.f32 %v1573_v31, %v449_v26  ;;  %v478_v26 = vadd.f32 %v1973_v53, %v1971_v52 }
 0x102   :  { %v1055_v33 = vld [vmem:[#allocation2] sm:$0xff]  ;;  %989 = vst.msk [vmem:[#allocation2 + $0x30] sm:$0xff] %vm982_vm2, %v968_v29  ;;  %v966_v34 = vadd.f32 %v915_v51, %v719_v30  ;;  %v671_v39 = vpop.f32.mrf.mxu0  ;;  %v470_v51 = vadd.f32 %v1977_v55, %v1975_v54 }
 0x103   :  { %v1103_v36 = vadd.f32 %v1999_v28, %v1080_v46  ;;  %v1078_v38 = vmul.f32 %v1993_v23, %v1055_v33  ;;  %v1591_v59 = vpop.f32.mrf.mxu1  ;;  %v720_v42 = vadd.f32 %v671_v39, %v441_v32 }
 0x104   :  { %v1058_v40 = vld [vmem:[#allocation2 + $0x18] sm:$0xff]  ;;  %987 = vst.msk [vmem:[#allocation2 + $0x20] sm:$0xff] %vm982_vm2, %v966_v34  ;;  %v969_v41 = vadd.f32 %v1591_v59, %v722_v35 }
 0x105   :  { %v1319_v7 = vpack.c.bf16 %v1103_v36, %v1103_v36  ;;  %v1101_v60 = vadd.f32 %v1999_v28, %v1078_v38  ;;  %v1081_v18 = vmul.f32 %v1993_v23, %v1058_v40  ;;  %v918_v62 = vpop.f32.mrf.mxu1  ;;  %v1576_v2 = vpop.f32.mrf.mxu0  ;;  %v481_v36 = vadd.f32 %v1981_v57, %v1979_v56 }
 0x106   :  { %v1056_v0 = vld [vmem:[#allocation2 + $0x8] sm:$0xff]  ;;  %990 = vst.msk [vmem:[#allocation2 + $0x38] sm:$0xff] %vm982_vm2, %v969_v41  ;;  %v967_v1 = vadd.f32 %v918_v62, %v720_v42  ;;  %v725_v4 = vadd.f32 %v1576_v2, %v462_v43  ;;  %v473_v56 = vadd.f32 %v1985_v61, %v1983_v58 }
 0x107   :  { %1184 = vst.msk [vmem:[%s2131_s6 + $0x8] sm:$0xf] %vm1181_vm3, %v1319_v7  ;;  %v1317_v44 = vpack.c.bf16 %v1101_v60, %v1101_v60  ;;  %v1104_v47 = vadd.f32 %v1999_v28, %v1081_v18  ;;  %v1079_v3 = vmul.f32 %v1993_v23, %v1056_v0  ;;  %v684_v49 = vpop.f32.mrf.mxu0 }
 0x108   :  { %988 = vst.msk [vmem:[#allocation2 + $0x28] sm:$0xff] %vm982_vm2, %v967_v1  ;;  %v1594_v45 = vpop.f32.mrf.mxu1  ;;  %v723_v13 = vadd.f32 %v684_v49, %v454_v63 }
 0x109   :  { %1182 = vst.msk [vmem:[%s2131_s6] sm:$0xf] %vm1181_vm3, %v1317_v44  ;;  %v1320_v6 = vpack.c.bf16 %v1104_v47, %v1104_v47  ;;  %v1102_v9 = vadd.f32 %v1999_v28, %v1079_v3  ;;  %v1061_v11 = vld [vmem:[#allocation2 + $0x30] sm:$0xff]  ;;  %v972_v12 = vadd.f32 %v1594_v45, %v725_v4  ;;  %v1577_v16 = vpop.f32.mrf.mxu0 }
 0x10a   :  { %v1084_v14 = vmul.f32 %v1993_v23, %v1061_v11  ;;  %v931_v15 = vpop.f32.mrf.mxu1  ;;  %v726_v20 = vadd.f32 %v1577_v16, %v465_v5 }
 0x10b   :  { %1185 = vst.msk [vmem:[%s2131_s6 + $0xc] sm:$0xf] %vm1181_vm3, %v1320_v6  ;;  %v1318_v8 = vpack.c.bf16 %v1102_v9, %v1102_v9  ;;  %v1059_v17 = vld [vmem:[#allocation2 + $0x20] sm:$0xff]  ;;  %v970_v19 = vadd.f32 %v931_v15, %v723_v13  ;;  %v687_v37 = vpop.f32.mrf.mxu0 }
 0x10c   :  { %993 = vst.msk [vmem:[#allocation2 + $0x50] sm:$0xff] %vm982_vm2, %v972_v12  ;;  %v1107_v21 = vadd.f32 %v1999_v28, %v1084_v14  ;;  %v1082_v22 = vmul.f32 %v1993_v23, %v1059_v17  ;;  %v1595_v24 = vpop.f32.mrf.mxu1  ;;  %v724_v25 = vadd.f32 %v687_v37, %v457_v48 }
 0x10d   :  { %1183 = vst.msk [vmem:[%s2131_s6 + $0x4] sm:$0xf] %vm1181_vm3, %v1318_v8  ;;  %v1062_v50 = vld [vmem:[#allocation2 + $0x38] sm:$0xff]  ;;  %v973_v10 = vadd.f32 %v1595_v24, %v726_v20 }
 0x10e   :  { %991 = vst.msk [vmem:[#allocation2 + $0x40] sm:$0xff] %vm982_vm2, %v970_v19  ;;  %v1323_v27 = vpack.c.bf16 %v1107_v21, %v1107_v21  ;;  %v1105_v29 = vadd.f32 %v1999_v28, %v1082_v22  ;;  %v1085_v30 = vmul.f32 %v1993_v23, %v1062_v50  ;;  %v934_v46 = vpop.f32.mrf.mxu1  ;;  %v1580_v33 = vpop.f32.mrf.mxu0 }
 0x10f   :  { %v1060_v31 = vld [vmem:[#allocation2 + $0x28] sm:$0xff]  ;;  %994 = vst.msk [vmem:[#allocation2 + $0x58] sm:$0xff] %vm982_vm2, %v973_v10  ;;  %v971_v32 = vadd.f32 %v934_v46, %v724_v25  ;;  %v729_v35 = vadd.f32 %v1580_v33, %v478_v26 }
 0x110   :  { %1188 = vst.msk [vmem:[%s2131_s6 + $0x18] sm:$0xf] %vm1181_vm3, %v1323_v27  ;;  %v1321_v52 = vpack.c.bf16 %v1105_v29, %v1105_v29  ;;  %v1108_v53 = vadd.f32 %v1999_v28, %v1085_v30  ;;  %v1083_v34 = vmul.f32 %v1993_v23, %v1060_v31  ;;  %v700_v55 = vpop.f32.mrf.mxu0 }
 0x111   :  { %992 = vst.msk [vmem:[#allocation2 + $0x48] sm:$0xff] %vm982_vm2, %v971_v32  ;;  %v1598_v54 = vpop.f32.mrf.mxu1  ;;  %v727_v41 = vadd.f32 %v700_v55, %v470_v51 }
 0x112   :  { %1186 = vst.msk [vmem:[%s2131_s6 + $0x10] sm:$0xf] %vm1181_vm3, %v1321_v52  ;;  %v1324_v38 = vpack.c.bf16 %v1108_v53, %v1108_v53  ;;  %v1106_v59 = vadd.f32 %v1999_v28, %v1083_v34  ;;  %v976_v40 = vadd.f32 %v1598_v54, %v729_v35  ;;  %v1581_v7 = vpop.f32.mrf.mxu0 }
 0x113   :  { %v1065_v39 = vld [vmem:[#allocation2 + $0x50] sm:$0xff]  ;;  %v947_v43 = vpop.f32.mrf.mxu1  ;;  %v730_v62 = vadd.f32 %v1581_v7, %v481_v36 }
 0x114   :  { %v1088_v42 = vmul.f32 %v1993_v23, %v1065_v39  ;;  %1189 = vst.msk [vmem:[%s2131_s6 + $0x1c] sm:$0xf] %vm1181_vm3, %v1324_v38  ;;  %v1322_v57 = vpack.c.bf16 %v1106_v59, %v1106_v59  ;;  %v974_v18 = vadd.f32 %v947_v43, %v727_v41  ;;  %v703_v2 = vpop.f32.mrf.mxu0 }
 0x115   :  { %v1063_v60 = vld [vmem:[#allocation2 + $0x40] sm:$0xff]  ;;  %997 = vst.msk [vmem:[#allocation2 + $0x70] sm:$0xff] %vm982_vm2, %v976_v40  ;;  %v1599_v1 = vpop.f32.mrf.mxu1  ;;  %v728_v44 = vadd.f32 %v703_v2, %v473_v56 }
 0x116   :  { %v1111_v63 = vadd.f32 %v1999_v28, %v1088_v42  ;;  %v1086_v0 = vmul.f32 %v1993_v23, %v1063_v60  ;;  %1187 = vst.msk [vmem:[%s2131_s6 + $0x14] sm:$0xf] %vm1181_vm3, %v1322_v57  ;;  %v1066_v58 = vld [vmem:[#allocation2 + $0x58] sm:$0xff]  ;;  %v977_v61 = vadd.f32 %v1599_v1, %v730_v62 }
 0x117   :  { %995 = vst.msk [vmem:[#allocation2 + $0x60] sm:$0xff] %vm982_vm2, %v974_v18  ;;  %v1089_v4 = vmul.f32 %v1993_v23, %v1066_v58  ;;  %v950_v5 = vpop.f32.mrf.mxu1 }
 0x118   :  { %v1327_v47 = vpack.c.bf16 %v1111_v63, %v1111_v63  ;;  %v1109_v3 = vadd.f32 %v1999_v28, %v1086_v0  ;;  %v1064_v45 = vld [vmem:[#allocation2 + $0x48] sm:$0xff]  ;;  %998 = vst.msk [vmem:[#allocation2 + $0x78] sm:$0xff] %vm982_vm2, %v977_v61  ;;  %v975_v49 = vadd.f32 %v950_v5, %v728_v44 }
 0x119   :  { %v1112_v9 = vadd.f32 %v1999_v28, %v1089_v4  ;;  %v1087_v11 = vmul.f32 %v1993_v23, %v1064_v45 }
 0x11a   :  { %1192 = vst.msk [vmem:[%s2131_s6 + $0x28] sm:$0xf] %vm1181_vm3, %v1327_v47  ;;  %v1325_v6 = vpack.c.bf16 %v1109_v3, %v1109_v3 }
 0x11b   :  { %996 = vst.msk [vmem:[#allocation2 + $0x68] sm:$0xff] %vm982_vm2, %v975_v49  ;;  %v1328_v12 = vpack.c.bf16 %v1112_v9, %v1112_v9  ;;  %v1110_v13 = vadd.f32 %v1999_v28, %v1087_v11 }
 0x11c   :  { %1190 = vst.msk [vmem:[%s2131_s6 + $0x20] sm:$0xf] %vm1181_vm3, %v1325_v6  ;;  %v1069_v14 = vld [vmem:[#allocation2 + $0x70] sm:$0xff] }
 0x11d   :  { %v1092_v15 = vmul.f32 %v1993_v23, %v1069_v14  ;;  %1193 = vst.msk [vmem:[%s2131_s6 + $0x2c] sm:$0xf] %vm1181_vm3, %v1328_v12  ;;  %v1326_v16 = vpack.c.bf16 %v1110_v13, %v1110_v13 }
 0x11e   :  { %v1067_v48 = vld [vmem:[#allocation2 + $0x60] sm:$0xff] }
 0x11f   :  { %v1115_v8 = vadd.f32 %v1999_v28, %v1092_v15  ;;  %v1090_v17 = vmul.f32 %v1993_v23, %v1067_v48  ;;  %1191 = vst.msk [vmem:[%s2131_s6 + $0x24] sm:$0xf] %vm1181_vm3, %v1326_v16  ;;  %v1070_v19 = vld [vmem:[#allocation2 + $0x78] sm:$0xff] }
 0x120   :  { %v1093_v22 = vmul.f32 %v1993_v23, %v1070_v19 }
 0x121   :  { %v1331_v20 = vpack.c.bf16 %v1115_v8, %v1115_v8  ;;  %v1113_v21 = vadd.f32 %v1999_v28, %v1090_v17 }
 0x122   :  { %v1068_v24 = vld [vmem:[#allocation2 + $0x68] sm:$0xff]  ;;  %v1116_v50 = vadd.f32 %v1999_v28, %v1093_v22 }
 0x123   :  { %1196 = vst.msk [vmem:[%s2131_s6 + $0x38] sm:$0xf] %vm1181_vm3, %v1331_v20  ;;  %v1329_v37 = vpack.c.bf16 %v1113_v21, %v1113_v21  ;;  %v1091_v10 = vmul.f32 %v1993_v23, %v1068_v24 }
 0x124   :  { %v1332_v25 = vpack.c.bf16 %v1116_v50, %v1116_v50 }
 0x125   :  { %1194 = vst.msk [vmem:[%s2131_s6 + $0x30] sm:$0xf] %vm1181_vm3, %v1329_v37  ;;  %v1114_v26 = vadd.f32 %v1999_v28, %v1091_v10 }
 0x126   :  { %1197 = vst.msk [vmem:[%s2131_s6 + $0x3c] sm:$0xf] %vm1181_vm3, %v1332_v25 }
 0x127   :  { %v1330_v27 = vpack.c.bf16 %v1114_v26, %v1114_v26 }
 0x129   :  { %1195 = vst.msk [vmem:[%s2131_s6 + $0x34] sm:$0xf] %vm1181_vm3, %v1330_v27 }

// kernel: densenet_forward.18
= control target key start
LH: loop header
LB: loop body
LE: loop exit
PB: predicated region body
PF: predicated region fallthrough
CT: control target
= control target key end

     0   :  { %vm109_vm0 = vcmask 1043456   ;;  %vm102_vm1 = vcmask 64512   ;;  %vm224_vm2 = vcmask 130048   ;;  %vm295_vm3 = vcmask 125952   ;;  %s459_s1 = inlined_call_operand.vmem [shape: bf16[2,8,16], index: 1, kind: input, shape index: {}]   ;;  %s460_s0 = inlined_call_operand.vmem [shape: bf16[16,32,8], index: 0, kind: input, shape index: {}]   ;;  %s461_s2 = inlined_call_operand.vmem [shape: f32[2,1,8], index: 2, kind: input, shape index: {}]   ;;  %s462_s3 = inlined_call_operand.vmem [shape: f32[2,1,8], index: 3, kind: input, shape index: {}]   ;;  %s463_s4 = inlined_call_operand.vmem [shape: f32[1,16], index: 4, kind: input, shape index: {}]   ;;  %s464_s5 = inlined_call_operand.vmem [shape: f32[1,16], index: 5, kind: input, shape index: {}]   ;;  %s465_s6 = inlined_call_operand.vmem [shape: bf16[32,16], index: 6, kind: output, shape index: {}]  }
   0x1   :  { %v314_v0 = vld [vmem:[%s459_s1 + $0x4] sm:$0xf]  ;;  %v60_v1 = vld [vmem:[%s459_s1] sm:$0xf]  ;;  %v346_v2 = vld [vmem:[%s460_s0 + $0x10] sm:$0xff]  }
   0x2   :  { %366 = vmatprep.subr.msk.bf16.mxu0 %vm109_vm0, %v314_v0  ;;  %367 = vmatprep.subr.msk.bf16.mxu1 %vm109_vm0, %v60_v1  ;;  %v111_v3 = vsel %vm109_vm0, %v314_v0, 0  ;;  %v169_v4 = vsel %vm109_vm0, %v60_v1, 0  ;;  %v339_v5 = vunpack.c.l.bf16 %v346_v2  ;;  %v340_v6 = vunpack.c.h.bf16 %v346_v2  ;;  %v311_v7 = vld [vmem:[%s461_s2 + $0x1] ss:$0 sm:$0xff]  ;;  %v304_v10 = vld [vmem:[%s461_s2] ss:$0 sm:$0xff] }
   0x3   :  { %355 = vmatpush3.bf16.msra.mxu0 %v111_v3  ;;  %361 = vmatpush3.bf16.msra.mxu1 %v169_v4  ;;  %v313_v8 = vld [vmem:[%s462_s3 + $0x1] ss:$0 sm:$0xff]  ;;  %v347_v15 = vld [vmem:[%s460_s0 + $0x18] sm:$0xff]   ;;  %v345_v16 = vld [vmem:[%s460_s0 + $0x8] sm:$0xff]  }
   0x4   :  { %v330_v9 = vld [vmem:[%s460_s0] sm:$0xff]   ;;  %v78_v11 = vmul.f32 %v339_v5, %v311_v7  ;;  %v79_v12 = vmul.f32 %v340_v6, %v311_v7  ;;  %v343_v18 = vunpack.c.l.bf16 %v347_v15  ;;  %v344_v19 = vunpack.c.h.bf16 %v347_v15 }
   0x5   :  { %v331_v13 = vunpack.c.l.bf16 %v330_v9  ;;  %v332_v14 = vunpack.c.h.bf16 %v330_v9  ;;  %v305_v17 = vld [vmem:[%s462_s3] ss:$0 sm:$0xff]  ;;  %v335_v20 = vunpack.c.l.bf16 %v345_v16  ;;  %v336_v21 = vunpack.c.h.bf16 %v345_v16 }
   0x6   :  { %v90_v22 = vadd.f32 %v313_v8, %v78_v11  ;;  %v91_v23 = vadd.f32 %v313_v8, %v79_v12  ;;  %v80_v26 = vmul.f32 %v343_v18, %v311_v7  ;;  %v81_v27 = vmul.f32 %v344_v19, %v311_v7  ;;  %v319_v60 = vld [vmem:[%s463_s4] ss:$0 sm:$0xff] }
   0x7   :  { %v39_v24 = vmul.f32 %v331_v13, %v304_v10  ;;  %v40_v25 = vmul.f32 %v332_v14, %v304_v10  ;;  %v41_v28 = vmul.f32 %v335_v20, %v304_v10  ;;  %v42_v29 = vmul.f32 %v336_v21, %v304_v10  ;;  %v320_v62 = vld [vmem:[%s464_s5] ss:$0 sm:$0xff] }
   0x8   :  { %v94_v30 = vmax.f32 %v90_v22, 0.0  ;;  %v95_v31 = vmax.f32 %v91_v23, 0.0  ;;  %v92_v34 = vadd.f32 %v313_v8, %v80_v26  ;;  %v93_v35 = vadd.f32 %v313_v8, %v81_v27 }
   0x9   :  { %v50_v32 = vadd.f32 %v305_v17, %v39_v24  ;;  %v51_v33 = vadd.f32 %v305_v17, %v40_v25  ;;  %v52_v36 = vadd.f32 %v305_v17, %v41_v28  ;;  %v53_v37 = vadd.f32 %v305_v17, %v42_v29 }
   0xa   :  { %v98_v38 = vpack.c.bf16 %v95_v31, %v94_v30  ;;  %v96_v41 = vmax.f32 %v92_v34, 0.0  ;;  %v97_v42 = vmax.f32 %v93_v35, 0.0 }
   0xb   :  { %v54_v39 = vmax.f32 %v50_v32, 0.0  ;;  %v55_v40 = vmax.f32 %v51_v33, 0.0  ;;  %v56_v43 = vmax.f32 %v52_v36, 0.0  ;;  %v57_v44 = vmax.f32 %v53_v37, 0.0 }
   0xc   :  { %356 = vmatprep.mubr.msk.bf16.mxu0 %vm102_vm1, %v98_v38  ;;  %v99_v46 = vpack.c.bf16 %v97_v42, %v96_v41 }
   0xd   :  { %v58_v45 = vpack.c.bf16 %v55_v40, %v54_v39  ;;  %v59_v47 = vpack.c.bf16 %v57_v44, %v56_v43 }
   0xe   :  { %357 = vmatmul.mubr.msk.bf16.vlgmr.msra.gmra.mxu0 %vm102_vm1, %v99_v46 }
   0xf   :  { %362 = vmatprep.mubr.msk.bf16.mxu1 %vm102_vm1, %v58_v45 }
  0x10   :  { %363 = vmatmul.mubr.msk.bf16.vlgmr.msra.gmra.mxu1 %vm102_vm1, %v59_v47 }
  0xce   :  { %v358_v48 = vpop.f32.mrf.mxu0 }
  0xd0   :  { %v364_v49 = vpop.f32.mrf.mxu1  ;;  %v147_v51 = vpop.f32.mrf.mxu0 }
  0xd1   :  { %v214_v50 = vadd.f32 %v364_v49, %v358_v48 }
  0xd2   :  { %v205_v52 = vpop.f32.mrf.mxu1  ;;  %v359_v54 = vpop.f32.mrf.mxu0 }
  0xd3   :  { %227 = vst.msk [vmem:[#allocation2 + $0x10] sm:$0xff] %vm224_vm2, %v214_v50  ;;  %v206_v53 = vadd.f32 %v205_v52, %v147_v51 }
  0xd4   :  { %v365_v55 = vpop.f32.mrf.mxu1  ;;  %v150_v57 = vpop.f32.mrf.mxu0 }
  0xd5   :  { %225 = vst.msk [vmem:[#allocation2] sm:$0xff] %vm224_vm2, %v206_v53  ;;  %v217_v56 = vadd.f32 %v365_v55, %v359_v54 }
  0xd6   :  { %v208_v58 = vpop.f32.mrf.mxu1 }
  0xd7   :  { %228 = vst.msk [vmem:[#allocation2 + $0x18] sm:$0xff] %vm224_vm2, %v217_v56  ;;  %v209_v59 = vadd.f32 %v208_v58, %v150_v57 }
  0xd9   :  { %226 = vst.msk [vmem:[#allocation2 + $0x8] sm:$0xff] %vm224_vm2, %v209_v59 }
  0xda   :  { %v251_v61 = vld [vmem:[#allocation2 + $0x10] sm:$0xff] }
  0xdb   :  { %v262_v63 = vmul.f32 %v319_v60, %v251_v61 }
  0xdc   :  { %v249_v0 = vld [vmem:[#allocation2] sm:$0xff] }
  0xdd   :  { %v273_v1 = vadd.f32 %v320_v62, %v262_v63  ;;  %v260_v2 = vmul.f32 %v319_v60, %v249_v0 }
  0xde   :  { %v252_v3 = vld [vmem:[#allocation2 + $0x18] sm:$0xff] }
  0xdf   :  { %v277_v4 = vmax.f32 %v273_v1, 0.0  ;;  %v271_v5 = vadd.f32 %v320_v62, %v260_v2  ;;  %v263_v6 = vmul.f32 %v319_v60, %v252_v3 }
  0xe0   :  { %v250_v7 = vld [vmem:[#allocation2 + $0x8] sm:$0xff] }
  0xe1   :  { %v327_v8 = vpack.c.bf16 %v277_v4, %v277_v4  ;;  %v275_v9 = vmax.f32 %v271_v5, 0.0  ;;  %v274_v10 = vadd.f32 %v320_v62, %v263_v6  ;;  %v261_v11 = vmul.f32 %v319_v60, %v250_v7 }
  0xe3   :  { %298 = vst.msk [vmem:[%s465_s6 + $0x8] sm:$0xf] %vm295_vm3, %v327_v8  ;;  %v325_v12 = vpack.c.bf16 %v275_v9, %v275_v9  ;;  %v278_v13 = vmax.f32 %v274_v10, 0.0  ;;  %v272_v14 = vadd.f32 %v320_v62, %v261_v11 }
  0xe5   :  { %296 = vst.msk [vmem:[%s465_s6] sm:$0xf] %vm295_vm3, %v325_v12  ;;  %v328_v15 = vpack.c.bf16 %v278_v13, %v278_v13  ;;  %v276_v16 = vmax.f32 %v272_v14, 0.0 }
  0xe7   :  { %299 = vst.msk [vmem:[%s465_s6 + $0xc] sm:$0xf] %vm295_vm3, %v328_v15  ;;  %v326_v17 = vpack.c.bf16 %v276_v16, %v276_v16 }
  0xe9   :  { %297 = vst.msk [vmem:[%s465_s6 + $0x4] sm:$0xf] %vm295_vm3, %v326_v17 }

// kernel: densenet_forward.22
= control target key start
LH: loop header
LB: loop body
LE: loop exit
PB: predicated region body
PF: predicated region fallthrough
CT: control target
= control target key end

     0   :  { %s486_s12 = smov 0   ;;  %s488_s13 = smov 0   ;;  %s549_s0 = inlined_call_operand.vmem [shape: bf16[16,2,16,8], index: 0, kind: input, shape index: {}]   ;;  %s550_s1 = inlined_call_operand.vmem [shape: f32[16,1,8], index: 1, kind: input, shape index: {}]   ;;  %s551_s2 = inlined_call_operand.vmem [shape: f32[16,1,8], index: 2, kind: input, shape index: {}]   ;;  %s552_s3 = inlined_call_operand.vmem [shape: f32[16,2,1,8], index: 3, kind: output, shape index: {}]  }
   0x1   :  { %s490_s14 = smov 0   ;;  %s492_s15 = smov 0  }
   0x2   :  { %s494_s16 = smov 0  }
   0x3 LB: > { %s22_s17 = sadd.s32 1, %s456_s14  ;;  %s25_s18 = sadd.s32 1, %s460_s15  ;;  %s464_s16 = sphi %s494_s16, %s13_s16   ;;  %s460_s15 = sphi %s492_s15, %s556_s15   ;;  %s456_s14 = sphi %s490_s14, %s555_s14   ;;  %s452_s13 = sphi %s488_s13, %s554_s13   ;;  %s448_s12 = sphi %s486_s12, %s553_s12  }
   0x4   : > { %p23_p0 = scmp.ge.s32.totalorder %s22_s17, 2  ;;  %p373_p1 = scmp.ge.s32.totalorder %s464_s16, 1 }
   0x5   : > { %p173_p2 = scmp.lt.s32.totalorder %s464_s16, 33 }
   0x6   : > { %s558_s17 = smov (%p23_p0, %s22_s17), 0  ;;  %s560_s18 = smov (!%p23_p0, %s25_s18), %s460_s15 }
   0x7   : > { %p174_p3 = pnand %p373_p1, %p173_p2  ;;  %p27_p4 = scmp.ge.s32.totalorder %s560_s18, 16 }
   0x8   : > { %p209_p5 = scmp.lt.s32.totalorder (!%p174_p3), %s452_s13, 15  ;;  %p211_p6 = scmp.lt.s32.totalorder (!%p174_p3), %s448_s12, 1 }
   0x9   : > { %s562_s18 = smov (%p27_p4, %s560_s18), 0  ;;  %177 = sbr.rel (%p174_p3) target bundleno = 46 (0x2e), region = 32 }
   0xe   : > { %s564_s13 = smov (!%p209_p5, %s452_s13), 15  ;;  %s566_s12 = smov (!%p211_p6, %s448_s12), 1  ;;  %vm255_vm0 = vcmask 64512   ;;  %vm266_vm1 = vcmask 57344  }
   0xf   : > { %s375_s19 = sshll.u32 %s564_s13, 2  ;;  %s374_s20 = sshll.u32 %s566_s12, 1 }
  0x10   : > { %s215_s21 = sadd.s32 %s375_s19, %s374_s20  ;;  %s220_s24 = scalar_lea.vmem %s550_s1, %s564_s13 }
  0x11   : > { %s376_s25 = sshll.u32 %s215_s21, 2  ;;  %s223_s4 = scalar_lea.vmem %s551_s2, %s564_s13  ;;  %v378_v1 = vld [vmem:[%s220_s24] ss:$0 sm:$0xff] }
  0x12   : > { %s217_s28 = scalar_lea.vmem %s549_s0, %s376_s25  ;;  %v379_v4 = vld [vmem:[%s223_s4] ss:$0 sm:$0xff]  ;;  %s377_s5 = sshll.u32 %s564_s13, 1 }
  0x13   : > { %v383_v0 = vld [vmem:[%s217_s28] sm:$0xff]   ;;  %s229_s6 = sadd.s32 %s377_s5, %s566_s12 }
  0x14   : > { %v384_v2 = vunpack.c.l.bf16 %v383_v0  ;;  %v385_v3 = vunpack.c.h.bf16 %v383_v0  ;;  %s230_s9 = scalar_lea.vmem %s552_s3, %s229_s6 }
  0x16   : > { %v242_v5 = vmul.f32 %v384_v2, %v378_v1  ;;  %v243_v6 = vmul.f32 %v385_v3, %v378_v1 }
  0x18   : > { %v251_v7 = vadd.f32 %v379_v4, %v242_v5  ;;  %v252_v8 = vadd.f32 %v379_v4, %v243_v6 }
  0x1a   : > { %v253_v9 = vmax.f32 %v251_v7, 0.0  ;;  %v254_v10 = vmax.f32 %v252_v8, 0.0 }
  0x1c   : > { %v256_v11 = vsel %vm255_vm0, %v253_v9, 0.0  ;;  %v257_v12 = vsel %vm255_vm0, %v254_v10, 0.0 }
  0x1d   : > { %v258_v13 = vadd.f32 %v257_v12, %v256_v11 }
  0x1f   : > { %v259_v14 = vrot.slane %v258_v13, 4 }
  0x21   : > { %v260_v15 = vadd.f32 %v259_v14, %v258_v13 }
  0x23   : > { %v261_v16 = vrot.slane %v260_v15, 2 }
  0x25   : > { %v262_v17 = vadd.f32 %v261_v16, %v260_v15 }
  0x27   : > { %v263_v18 = vrot.slane %v262_v17, 1 }
  0x29   : > { %v264_v19 = vadd.f32 %v263_v18, %v262_v17 }
  0x2b   : > { %v265_v20 = vmul.f32 0.0625, %v264_v19 }
  0x2d   : > { %267 = vst.msk [vmem:[%s230_s9] sm:$0x1] %vm266_vm1, %v265_v20 }
  0x2e PF: > { %s13_s16 = sadd.s32 1, %s464_s16   ;;  %s553_s12 = smov %s456_s14 }
  0x2f   : > { %p10_p7 = scmp.ge.s32.totalorder %s13_s16, 34   ;;  %s554_s13 = smov %s460_s15 }
  0x30   : > { %s555_s14 = smov %s558_s17  ;;  %s556_s15 = smov %s562_s18 }
  0x31   :  { %12 = sbr.rel (!%p10_p7) target bundleno = 3 (0x3), region = 68 }

// kernel: densenet_forward.20
= control target key start
LH: loop header
LB: loop body
LE: loop exit
PB: predicated region body
PF: predicated region fallthrough
CT: control target
= control target key end

     0   :  { %vm109_vm0 = vcmask 1043456   ;;  %vm102_vm1 = vcmask 64512   ;;  %vm327_vm2 = vcmask 130048   ;;  %vm398_vm3 = vcmask 125952   ;;  %s616_s1 = inlined_call_operand.vmem [shape: bf16[3,8,16], index: 1, kind: input, shape index: {}]   ;;  %s617_s0 = inlined_call_operand.vmem [shape: bf16[16,32,8], index: 0, kind: input, shape index: {}]   ;;  %s618_s2 = inlined_call_operand.vmem [shape: f32[3,1,8], index: 2, kind: input, shape index: {}]   ;;  %s619_s3 = inlined_call_operand.vmem [shape: f32[3,1,8], index: 3, kind: input, shape index: {}]   ;;  %s620_s4 = inlined_call_operand.vmem [shape: f32[1,16], index: 4, kind: input, shape index: {}]   ;;  %s621_s5 = inlined_call_operand.vmem [shape: f32[1,16], index: 5, kind: input, shape index: {}]   ;;  %s622_s6 = inlined_call_operand.vmem [shape: bf16[32,16], index: 6, kind: output, shape index: {}]  }
   0x1   :  { %v417_v0 = vld [vmem:[%s616_s1 + $0x4] sm:$0xf]  ;;  %v60_v1 = vld [vmem:[%s616_s1] sm:$0xf]  ;;  %v468_v2 = vld [vmem:[%s617_s0 + $0x10] sm:$0xff]  }
   0x2   :  { %499 = vmatprep.subr.msk.bf16.mxu0 %vm109_vm0, %v417_v0  ;;  %v111_v3 = vsel %vm109_vm0, %v417_v0, 0  ;;  %500 = vmatprep.subr.msk.bf16.mxu1 %vm109_vm0, %v60_v1  ;;  %v169_v4 = vsel %vm109_vm0, %v60_v1, 0  ;;  %v453_v5 = vunpack.c.l.bf16 %v468_v2  ;;  %v454_v6 = vunpack.c.h.bf16 %v468_v2  ;;  %v414_v7 = vld [vmem:[%s618_s2 + $0x1] ss:$0 sm:$0xff]  ;;  %v407_v14 = vld [vmem:[%s618_s2] ss:$0 sm:$0xff] }
   0x3   :  { %482 = vmatpush3.bf16.msra.mxu0 %v111_v3  ;;  %488 = vmatpush3.bf16.msra.mxu1 %v169_v4  ;;  %v416_v8 = vld [vmem:[%s619_s3 + $0x1] ss:$0 sm:$0xff]  ;;  %v430_v15 = vld [vmem:[%s616_s1 + $0x8] sm:$0xf]  ;;  %v408_v16 = vld [vmem:[%s619_s3] ss:$0 sm:$0xff] }
   0x4   :  { %v444_v9 = vld [vmem:[%s617_s0] sm:$0xff]   ;;  %v78_v10 = vmul.f32 %v453_v5, %v414_v7  ;;  %v79_v11 = vmul.f32 %v454_v6, %v414_v7  ;;  %501 = vmatprep.subr.msk.bf16.mxu0 %vm109_vm0, %v430_v15  ;;  %v469_v17 = vld [vmem:[%s617_s0 + $0x18] sm:$0xff]   ;;  %v467_v18 = vld [vmem:[%s617_s0 + $0x8] sm:$0xff]   ;;  %v268_v61 = vsel %vm109_vm0, %v430_v15, 0 }
   0x5   :  { %v445_v12 = vunpack.c.l.bf16 %v444_v9  ;;  %v446_v13 = vunpack.c.h.bf16 %v444_v9  ;;  %v457_v23 = vunpack.c.l.bf16 %v469_v17  ;;  %v458_v24 = vunpack.c.h.bf16 %v469_v17  ;;  %v470_v27 = vld [vmem:[%s617_s0 + $0x20] sm:$0xff]   ;;  %v471_v37 = vld [vmem:[%s617_s0 + $0x28] sm:$0xff]  }
   0x6   :  { %v90_v19 = vadd.f32 %v416_v8, %v78_v10  ;;  %v91_v20 = vadd.f32 %v416_v8, %v79_v11  ;;  %v449_v25 = vunpack.c.l.bf16 %v467_v18  ;;  %v450_v26 = vunpack.c.h.bf16 %v467_v18  ;;  %v427_v32 = vld [vmem:[%s618_s2 + $0x2] ss:$0 sm:$0xff] }
   0x7   :  { %v39_v21 = vmul.f32 %v445_v12, %v407_v14  ;;  %v40_v22 = vmul.f32 %v446_v13, %v407_v14  ;;  %v80_v33 = vmul.f32 %v457_v23, %v414_v7  ;;  %v81_v34 = vmul.f32 %v458_v24, %v414_v7  ;;  %v429_v42 = vld [vmem:[%s619_s3 + $0x2] ss:$0 sm:$0xff] }
   0x8   :  { %v94_v28 = vmax.f32 %v90_v19, 0.0  ;;  %v95_v29 = vmax.f32 %v91_v20, 0.0  ;;  %v41_v35 = vmul.f32 %v449_v25, %v407_v14  ;;  %v42_v36 = vmul.f32 %v450_v26, %v407_v14 }
   0x9   :  { %v50_v30 = vadd.f32 %v408_v16, %v39_v21  ;;  %v51_v31 = vadd.f32 %v408_v16, %v40_v22  ;;  %v461_v41 = vunpack.c.l.bf16 %v470_v27  ;;  %v92_v43 = vadd.f32 %v416_v8, %v80_v33 }
   0xa   :  { %v98_v38 = vpack.c.bf16 %v95_v29, %v94_v28  ;;  %v93_v44 = vadd.f32 %v416_v8, %v81_v34  ;;  %v52_v45 = vadd.f32 %v408_v16, %v41_v35  ;;  %v53_v46 = vadd.f32 %v408_v16, %v42_v36  ;;  %v433_v28 = vld [vmem:[%s620_s4] ss:$0 sm:$0xff] }
   0xb   :  { %v54_v39 = vmax.f32 %v50_v30, 0.0  ;;  %v55_v40 = vmax.f32 %v51_v31, 0.0  ;;  %v462_v48 = vunpack.c.h.bf16 %v470_v27  ;;  %v237_v49 = vmul.f32 %v461_v41, %v427_v32  ;;  %v434_v30 = vld [vmem:[%s621_s5] ss:$0 sm:$0xff] }
   0xc   :  { %483 = vmatprep.mubr.msk.bf16.mxu0 %vm102_vm1, %v98_v38  ;;  %v465_v50 = vunpack.c.l.bf16 %v471_v37  ;;  %v96_v51 = vmax.f32 %v92_v43, 0.0  ;;  %v97_v52 = vmax.f32 %v93_v44, 0.0  ;;  %v56_v53 = vmax.f32 %v52_v45, 0.0 }
   0xd   :  { %v58_v47 = vpack.c.bf16 %v55_v40, %v54_v39  ;;  %v57_v54 = vmax.f32 %v53_v46, 0.0  ;;  %v238_v55 = vmul.f32 %v462_v48, %v427_v32  ;;  %v249_v56 = vadd.f32 %v429_v42, %v237_v49 }
   0xe   :  { %v466_v57 = vunpack.c.h.bf16 %v471_v37  ;;  %v239_v58 = vmul.f32 %v465_v50, %v427_v32  ;;  %v99_v59 = vpack.c.bf16 %v97_v52, %v96_v51 }
   0xf   :  { %489 = vmatprep.mubr.msk.bf16.mxu1 %vm102_vm1, %v58_v47  ;;  %v59_v60 = vpack.c.bf16 %v57_v54, %v56_v53  ;;  %v250_v62 = vadd.f32 %v429_v42, %v238_v55  ;;  %v253_v63 = vmax.f32 %v249_v56, 0.0 }
  0x10   :  { %v240_v0 = vmul.f32 %v466_v57, %v427_v32  ;;  %v251_v1 = vadd.f32 %v429_v42, %v239_v58  ;;  %484 = vmatmul.mubr.msk.bf16.vlgmr.msra.gmra.mxu0 %vm102_vm1, %v99_v59 }
  0x11   :  { %490 = vmatmul.mubr.msk.bf16.vlgmr.msra.gmra.mxu1 %vm102_vm1, %v59_v60  ;;  %494 = vmatpush3.bf16.msra.mxu0 %v268_v61  ;;  %v254_v2 = vmax.f32 %v250_v62, 0.0 }
  0x12   :  { %v252_v3 = vadd.f32 %v429_v42, %v240_v0  ;;  %v255_v4 = vmax.f32 %v251_v1, 0.0 }
  0x13   :  { %v257_v5 = vpack.c.bf16 %v254_v2, %v253_v63 }
  0x14   :  { %v256_v6 = vmax.f32 %v252_v3, 0.0 }
  0x15   :  { %495 = vmatprep.mubr.msk.bf16.mxu0 %vm102_vm1, %v257_v5 }
  0x16   :  { %v258_v7 = vpack.c.bf16 %v256_v6, %v255_v4 }
  0x18   :  { %496 = vmatmul.mubr.msk.bf16.vlgmr.msra.gmra.mxu0 %vm102_vm1, %v258_v7 }
  0xd0   :  { %v485_v8 = vpop.f32.mrf.mxu0 }
  0xd1   :  { %v491_v9 = vpop.f32.mrf.mxu1 }
  0xd2   :  { %v147_v10 = vpop.f32.mrf.mxu0  ;;  %v214_v15 = vadd.f32 %v491_v9, %v485_v8 }
  0xd3   :  { %v205_v11 = vpop.f32.mrf.mxu1 }
  0xd4   :  { %v486_v12 = vpop.f32.mrf.mxu0  ;;  %v206_v17 = vadd.f32 %v205_v11, %v147_v10 }
  0xd5   :  { %v492_v13 = vpop.f32.mrf.mxu1 }
  0xd6   :  { %v150_v14 = vpop.f32.mrf.mxu0  ;;  %v217_v21 = vadd.f32 %v492_v13, %v486_v12 }
  0xd7   :  { %v208_v19 = vpop.f32.mrf.mxu1 }
  0xd8   :  { %v497_v16 = vpop.f32.mrf.mxu0  ;;  %v209_v24 = vadd.f32 %v208_v19, %v150_v14 }
  0xd9   :  { %v321_v18 = vadd.f32 %v497_v16, %v214_v15 }
  0xda   :  { %v304_v20 = vpop.f32.mrf.mxu0 }
  0xdb   :  { %330 = vst.msk [vmem:[#allocation2 + $0x10] sm:$0xff] %vm327_vm2, %v321_v18  ;;  %v319_v22 = vadd.f32 %v304_v20, %v206_v17 }
  0xdc   :  { %v498_v23 = vpop.f32.mrf.mxu0 }
  0xdd   :  { %328 = vst.msk [vmem:[#allocation2] sm:$0xff] %vm327_vm2, %v319_v22  ;;  %v322_v25 = vadd.f32 %v498_v23, %v217_v21 }
  0xde   :  { %v307_v26 = vpop.f32.mrf.mxu0 }
  0xdf   :  { %331 = vst.msk [vmem:[#allocation2 + $0x18] sm:$0xff] %vm327_vm2, %v322_v25  ;;  %v320_v27 = vadd.f32 %v307_v26, %v209_v24 }
  0xe1   :  { %329 = vst.msk [vmem:[#allocation2 + $0x8] sm:$0xff] %vm327_vm2, %v320_v27 }
  0xe2   :  { %v354_v29 = vld [vmem:[#allocation2 + $0x10] sm:$0xff] }
  0xe3   :  { %v365_v31 = vmul.f32 %v433_v28, %v354_v29 }
  0xe4   :  { %v352_v32 = vld [vmem:[#allocation2] sm:$0xff] }
  0xe5   :  { %v376_v33 = vadd.f32 %v434_v30, %v365_v31  ;;  %v363_v34 = vmul.f32 %v433_v28, %v352_v32 }
  0xe6   :  { %v355_v35 = vld [vmem:[#allocation2 + $0x18] sm:$0xff] }
  0xe7   :  { %v380_v36 = vmax.f32 %v376_v33, 0.0  ;;  %v374_v37 = vadd.f32 %v434_v30, %v363_v34  ;;  %v366_v38 = vmul.f32 %v433_v28, %v355_v35 }
  0xe8   :  { %v353_v39 = vld [vmem:[#allocation2 + $0x8] sm:$0xff] }
  0xe9   :  { %v441_v40 = vpack.c.bf16 %v380_v36, %v380_v36  ;;  %v378_v41 = vmax.f32 %v374_v37, 0.0  ;;  %v377_v42 = vadd.f32 %v434_v30, %v366_v38  ;;  %v364_v43 = vmul.f32 %v433_v28, %v353_v39 }
  0xeb   :  { %401 = vst.msk [vmem:[%s622_s6 + $0x8] sm:$0xf] %vm398_vm3, %v441_v40  ;;  %v439_v44 = vpack.c.bf16 %v378_v41, %v378_v41  ;;  %v381_v45 = vmax.f32 %v377_v42, 0.0  ;;  %v375_v46 = vadd.f32 %v434_v30, %v364_v43 }
  0xed   :  { %399 = vst.msk [vmem:[%s622_s6] sm:$0xf] %vm398_vm3, %v439_v44  ;;  %v442_v47 = vpack.c.bf16 %v381_v45, %v381_v45  ;;  %v379_v48 = vmax.f32 %v375_v46, 0.0 }
  0xef   :  { %402 = vst.msk [vmem:[%s622_s6 + $0xc] sm:$0xf] %vm398_vm3, %v442_v47  ;;  %v440_v49 = vpack.c.bf16 %v379_v48, %v379_v48 }
  0xf1   :  { %400 = vst.msk [vmem:[%s622_s6 + $0x4] sm:$0xf] %vm398_vm3, %v440_v49 }

// kernel: densenet_forward.23
= control target key start
LH: loop header
LB: loop body
LE: loop exit
PB: predicated region body
PF: predicated region fallthrough
CT: control target
= control target key end

     0   :  { %v228_v1 = vmov 0.0   ;;  %vm229_vm0 = vmmov 0   ;;  %s292_s0 = inlined_call_operand.vmem [shape: bf16[2,128], index: 0, kind: input, shape index: {}]   ;;  %s293_s1 = inlined_call_operand.vmem [shape: bf16[128,10], index: 1, kind: input, shape index: {}]   ;;  %s294_s2 = inlined_call_operand.vmem [shape: f32[1,10], index: 2, kind: input, shape index: {}]   ;;  %s295_s3 = inlined_call_operand.vmem [shape: f32[1,10], index: 3, kind: input, shape index: {}]   ;;  %s296_s4 = inlined_call_operand.hbm [shape: f32[2,10], index: 4, kind: output, shape index: {}]  }
   0x1   :  { %v198_v0 = vld [vmem:[%s293_s1 + $0x38] sm:$0xff]   ;;  %175 = vmatprep.subr.bf16.mxu0 %v228_v1  ;;  %v199_v2 = vld [vmem:[%s293_s1 + $0x30] sm:$0xff]   ;;  %191 = vmatprep.mubr.msk.bf16.mxu0 %vm229_vm0, %v228_v1  ;;  %v200_v3 = vld [vmem:[%s293_s1 + $0x28] sm:$0xff]  }
   0x2   :  { %176 = vmatpush3.bf16.msra.mxu0 %v198_v0 }
   0x3   :  { %177 = vmatprep.subr.bf16.mxu0 %v228_v1 }
   0x6   :  { %178 = vmatpush3.bf16.msra.mxu0 %v199_v2 }
   0x7   :  { %179 = vmatprep.subr.bf16.mxu0 %v228_v1 }
   0x8   :  { %9 = vsyncpa [#allocation3], 0  ;;  %v201_v4 = vld [vmem:[%s293_s1 + $0x20] sm:$0xff]   ;;  %v202_v5 = vld [vmem:[%s293_s1 + $0x18] sm:$0xff]   ;;  %s230_s11 = smov [#allocation2]   ;;  %vm140_vm1 = vcmask 74752  }
   0x9   :  { %v203_v6 = vld [vmem:[%s293_s1 + $0x10] sm:$0xff]   ;;  %v204_v7 = vld [vmem:[%s293_s1 + $0x8] sm:$0xff]   ;;  %v205_v8 = vld [vmem:[%s293_s1] sm:$0xff]   ;;  %s148_s12 = sshll.u32 %s230_s11, 4  ;;  %s149_s12 = int_to_ptr.vmem [resolvable:$true] %s148_s12 }
   0xa   :  { %180 = vmatpush3.bf16.msra.mxu0 %v200_v3  ;;  %v19_v9 = vld [vmem:[%s292_s0] sm:$0x1]  ;;  %s206_s0 = scalar_lea.vmem %s149_s12, 32  ;;  %p211_p1 = scmp.lt.s32.totalorder %s149_s12, %s149_s12 }
   0xb   :  { %181 = vmatprep.subr.bf16.mxu0 %v228_v1  ;;  %v164_v10 = vld [vmem:[%s294_s2] ss:$0 sm:$0xff]  ;;  %p207_p0 = scmp.ne.s32.totalorder %s149_s12, %s206_s0  ;;  %p212_p2 = scmp.lt.s32.totalorder %s206_s0, %s206_s0 }
   0xc   :  { %v165_v12 = vld [vmem:[%s295_s3] ss:$0 sm:$0xff] }
   0xd   :  { %p213_p3 = por %p212_p2, %p211_p1 }
   0xe   :  { %182 = vmatpush3.bf16.msra.mxu0 %v201_v4 }
   0xf   :  { %183 = vmatprep.subr.bf16.mxu0 %v228_v1  ;;  %p214_p4 = pnand %p213_p3, %p207_p0 }
  0x12   :  { %184 = vmatpush3.bf16.msra.mxu0 %v202_v5 }
  0x13   :  { %185 = vmatprep.subr.bf16.mxu0 %v228_v1 }
  0x16   :  { %186 = vmatpush3.bf16.msra.mxu0 %v203_v6 }
  0x17   :  { %187 = vmatprep.subr.bf16.mxu0 %v228_v1 }
  0x1a   :  { %188 = vmatpush3.bf16.msra.mxu0 %v204_v7 }
  0x1b   :  { %189 = vmatprep.subr.bf16.mxu0 %v228_v1 }
  0x1e   :  { %190 = vmatpush3.bf16.msra.mxu0 %v205_v8 }
  0x21   :  { %192 = vmatmul.mubr.bf16.vlgmr.msra.gmra.mxu0 %v19_v9 }
  0xe1   :  { %v118_v11 = vpop.f32.mrf.mxu0 }
  0xe2   :  { %v131_v13 = vmul.f32 %v164_v10, %v118_v11 }
  0xe3   :  { %v193_v14 = vpop.f32.mrf.mxu0 }
  0xe4   :  { %v139_v15 = vadd.f32 %v165_v12, %v131_v13 }
  0xe5   :  { %v121_v16 = vpop.f32.mrf.mxu0 }
  0xe6   :  { %141 = vst.msk [vmem:[#allocation2] sm:$0x3] %vm140_vm1, %v139_v15 }
  0xe7   :  { %v194_v17 = vpop.f32.mrf.mxu0 }
  0xe8   :  { %217 = shalt.err (!%p214_p4)
}
  0xe9   :  { %151 = dma.vmem_to_hbm [thread:$0]  %s149_s12, 32, %s296_s4, [#allocation3]  }
  0xea   :  { %226 = dma.done.wait [#allocation3], 32  }
  0xeb   :  { %227 = vsyncadd [#allocation3], 4294967264 }
  0xec   :  { %155 = vsyncpa [#allocation3], 1 }

</bundles_post_ra>
